<compile_context>
chip_gen: v6e
topology: v6e:2x2x1
jax: 0.10.0
libtpu: 0.0.40
codegen_flags: <defaults>
</compile_context>

<pallas_src>
import jax
import jax.numpy as jnp
from jax.experimental import pallas as pl
from jax.experimental.pallas import tpu as pltpu

IN_DIM = 1024
HID_DIM = 512
OUT_DIM = 2
OUT_PAD = 128   # lane-dense padded output width (full vst instead of masked 2-col store)


def _round_up(n, m):
    return ((n + m - 1) // m) * m


def _choose_tiling(B, bm_max):
    """Pick (bm, padded_B).  Prefer an 8-aligned tile that divides B (no jnp.pad copy)."""
    bm_max = max(8, (bm_max // 8) * 8)
    if B <= bm_max:
        bm = _round_up(B, 8)
        return bm, bm
    for bm in range(bm_max, 7, -8):
        if B % bm == 0:
            return bm, B
    return bm_max, _round_up(B, bm_max)


def discriminator_kernel(x_ref, w1_ref, b1_ref, w2_ref, b2_ref, o_ref):
    # GRL forward is identity (input * 1.0): nothing to do.
    # TODO(synk): GRL backward (-coeff * grad) needs jax.custom_vjp around the pallas_call
    # if this head is trained DANN-style; forward semantics are unaffected.
    x = x_ref[...].astype(jnp.bfloat16)                      # in-kernel cast, hides under MXU
    # fc1: bf16 x bf16 -> f32 accumulate on the MXU.
    h = jnp.dot(x, w1_ref[...], preferred_element_type=jnp.float32)   # [bm, 512] f32
    # Bias + ReLU in f32 (v5e has no bf16 VPU path).
    h = jnp.maximum(h + b1_ref[...], 0.0)
    # TODO(synk): Dropout(0.5) is identity in eval mode; training-mode dropout
    # (pltpu.prng_random_bits mask + 2x rescale) intentionally not applied.
    h = h.astype(jnp.bfloat16)
    # fc2 against zero-padded [512, 128] weights -> lane-dense (bm, 128) store.
    # (On v5e this wastes ~12% MXU time on zero columns; acceptable on v6e/v7x.)
    out = jnp.dot(h, w2_ref[...], preferred_element_type=jnp.float32)
    o_ref[...] = out + b2_ref[...]                           # b2 padded with zeros


def prepare_params(w1, b1, w2, b2):
    """One-time parameter conversion: bf16 weights, lane-dense padded fc2 (128 cols)."""
    w1b = w1.astype(jnp.bfloat16)                                             # [1024, 512]
    b1f = b1.reshape(1, HID_DIM).astype(jnp.float32)                          # [1, 512]
    w2p = jnp.pad(w2.astype(jnp.bfloat16), ((0, 0), (0, OUT_PAD - OUT_DIM)))  # [512, 128]
    b2p = jnp.pad(b2.reshape(1, OUT_DIM).astype(jnp.float32),
                  ((0, 0), (0, OUT_PAD - OUT_DIM)))                           # [1, 128]
    return w1b, b1f, w2p, b2p


def discriminator_forward(x, w1b, b1f, w2p, b2p, *, bm=128):
    """x: [B, 1024] f32; params already converted by prepare_params()."""
    B = x.shape[0]
    bm, Bp = _choose_tiling(B, bm)
    if Bp != B:
        # Only hit when no 8-aligned tile divides B (rare); pads the minimum rows needed.
        x = jnp.pad(x, ((0, Bp - B), (0, 0)))

    resident = pl.Buffered(1)   # grid-invariant operands: no point double-buffering

    out = pl.pallas_call(
        discriminator_kernel,
        out_shape=jax.ShapeDtypeStruct((Bp, OUT_PAD), jnp.float32),
        grid_spec=pltpu.PrefetchScalarGridSpec(
            num_scalar_prefetch=0,
            grid=(Bp // bm,),
            in_specs=[
                pl.BlockSpec((bm, IN_DIM), lambda i: (i, 0)),          # x tile (f32)
                pl.BlockSpec((IN_DIM, HID_DIM), lambda i: (0, 0),
                             pipeline_mode=resident),                  # W1 (resident)
                pl.BlockSpec((1, HID_DIM), lambda i: (0, 0),
                             pipeline_mode=resident),                  # b1
                pl.BlockSpec((HID_DIM, OUT_PAD), lambda i: (0, 0),
                             pipeline_mode=resident),                  # W2 padded (resident)
                pl.BlockSpec((1, OUT_PAD), lambda i: (0, 0),
                             pipeline_mode=resident),                  # b2 padded
            ],
            out_specs=pl.BlockSpec((bm, OUT_PAD), lambda i: (i, 0)),   # lane-dense store
        ),
        compiler_params=pltpu.CompilerParams(
            dimension_semantics=("parallel",),   # batch axis shards across TCs
        ),
    )(x, w1b, b1f, w2p, b2p)

    return out[:B, :OUT_DIM]


def init_params(key):
    k1, k2 = jax.random.split(key)
    # fc1.weight.data.normal_(0, 0.01)  -> stored transposed [1024, 512]
    w1 = (0.01 * jax.random.normal(k1, (IN_DIM, HID_DIM))).astype(jnp.float32)
    b1 = jnp.zeros((1, HID_DIM), jnp.float32)   # fc1.bias.data.fill_(0.0)
    # fc2.weight.data.normal_(0, 0.3)   -> stored transposed [512, 2]
    w2 = (0.3 * jax.random.normal(k2, (HID_DIM, OUT_DIM))).astype(jnp.float32)
    b2 = jnp.zeros((1, OUT_DIM), jnp.float32)   # fc2.bias.data.fill_(0.0)
    return w1, b1, w2, b2


if __name__ == "__main__":
    key = jax.random.PRNGKey(0)
    kx, kp = jax.random.split(key)

    B = 512
    x = jax.random.normal(kx, (B, IN_DIM), dtype=jnp.float32)
    w1, b1, w2, b2 = init_params(kp)

    # One-time param prep (hoisted out of the per-call path).
    w1b, b1f, w2p, b2p = prepare_params(w1, b1, w2, b2)
    w1b, b1f, w2p, b2p = jax.block_until_ready((w1b, b1f, w2p, b2p))

    # bm=128 -> grid=(4,): two steps per v7x TensorCore, pipelined DMA on v5e/v6e.
    out = discriminator_forward(x, w1b, b1f, w2p, b2p, bm=128)
    out = jax.block_until_ready(out)

    # Pure-JAX reference mirroring the bf16-input / f32-accumulate path
    # (eval-mode dropout == identity, GRL forward == identity).
    xb = x.astype(jnp.bfloat16)
    h = jnp.maximum(
        jnp.dot(xb, w1.astype(jnp.bfloat16), preferred_element_type=jnp.float32) + b1,
        0.0)
    ref = jnp.dot(h.astype(jnp.bfloat16), w2.astype(jnp.bfloat16),
                  preferred_element_type=jnp.float32) + b2

    assert out.shape == (B, OUT_DIM)
    assert jnp.allclose(out, ref, atol=1e-2, rtol=1e-2)

    # Tiny-batch path: bm shrinks to a single 8-row tile, no padding copy.
    out_small = discriminator_forward(x[:8], w1b, b1f, w2p, b2p, bm=128)
    out_small = jax.block_until_ready(out_small)
    assert out_small.shape == (8, OUT_DIM)
    assert jnp.allclose(out_small, ref[:8], atol=1e-2, rtol=1e-2)

    # Ragged batch that is not 128-aligned: tile chooser picks an 8-aligned divisor (40).
    out_rag = discriminator_forward(x[:200], w1b, b1f, w2p, b2p, bm=128)
    out_rag = jax.block_until_ready(out_rag)
    assert out_rag.shape == (200, OUT_DIM)
    assert jnp.allclose(out_rag, ref[:200], atol=1e-2, rtol=1e-2)

    print("KERNEL_OK")
</pallas_src>

<mosaic_0001>
module attributes {stable_mosaic.version = 11 : i64} {
  func.func @discriminator_kernel(%arg0: i32, %arg1: memref<128x1024xf32, #tpu.memory_space<vmem>>, %arg2: memref<1024x512xbf16, #tpu.memory_space<vmem>>, %arg3: memref<1x512xf32, #tpu.memory_space<vmem>>, %arg4: memref<512x128xbf16, #tpu.memory_space<vmem>>, %arg5: memref<1x128xf32, #tpu.memory_space<vmem>>, %arg6: memref<128x128xf32, #tpu.memory_space<vmem>>) attributes {dimension_semantics = [#tpu.dimension_semantics<parallel>], iteration_bounds = array<i64: 4>, scalar_prefetch = 0 : i64, scratch_operands = 0 : i64, tpu.core_type = #tpu.core_type<tc>, window_params = [{transform_indices = @transform_0, window_bounds = array<i64: 128, 1024>}, {pipeline_mode = #tpu.pipeline_mode<synchronous>, transform_indices = @transform_1, window_bounds = array<i64: 1024, 512>}, {pipeline_mode = #tpu.pipeline_mode<synchronous>, transform_indices = @transform_2, window_bounds = array<i64: 1, 512>}, {pipeline_mode = #tpu.pipeline_mode<synchronous>, transform_indices = @transform_3, window_bounds = array<i64: 512, 128>}, {pipeline_mode = #tpu.pipeline_mode<synchronous>, transform_indices = @transform_4, window_bounds = array<i64: 1, 128>}, {transform_indices = @transform_5, window_bounds = array<i64: 128, 128>}]} {
    %c0 = arith.constant 0 : index
    %c0_0 = arith.constant 0 : index
    %0 = vector.load %arg1[%c0, %c0_0] : memref<128x1024xf32, #tpu.memory_space<vmem>>, vector<128x1024xf32>
    %1 = arith.truncf %0 : vector<128x1024xf32> to vector<128x1024xbf16>
    %c0_1 = arith.constant 0 : index
    %c0_2 = arith.constant 0 : index
    %2 = vector.load %arg2[%c0_1, %c0_2] : memref<1024x512xbf16, #tpu.memory_space<vmem>>, vector<1024x512xbf16>
    %cst = arith.constant dense<0.000000e+00> : vector<128x512xf32>
    %3 = tpu.matmul %1, %2, %cst {dimension_numbers = #tpu.dot_dimension_numbers<[1], [0], [0], [1], [0, 0, 1, 1], [], []>} : vector<128x1024xbf16>, vector<1024x512xbf16>, vector<128x512xf32> -> vector<128x512xf32>
    %c0_3 = arith.constant 0 : index
    %c0_4 = arith.constant 0 : index
    %4 = vector.load %arg3[%c0_3, %c0_4] : memref<1x512xf32, #tpu.memory_space<vmem>>, vector<1x512xf32>
    %5 = vector.broadcast %4 : vector<1x512xf32> to vector<128x512xf32>
    %6 = arith.addf %3, %5 : vector<128x512xf32>
    %cst_5 = arith.constant 0.000000e+00 : f32
    %7 = vector.broadcast %cst_5 : f32 to vector<128x512xf32>
    %8 = arith.maximumf %6, %7 : vector<128x512xf32>
    %9 = arith.truncf %8 : vector<128x512xf32> to vector<128x512xbf16>
    %c0_6 = arith.constant 0 : index
    %c0_7 = arith.constant 0 : index
    %10 = vector.load %arg4[%c0_6, %c0_7] : memref<512x128xbf16, #tpu.memory_space<vmem>>, vector<512x128xbf16>
    %cst_8 = arith.constant dense<0.000000e+00> : vector<128x128xf32>
    %11 = tpu.matmul %9, %10, %cst_8 {dimension_numbers = #tpu.dot_dimension_numbers<[1], [0], [0], [1], [0, 0, 1, 1], [], []>} : vector<128x512xbf16>, vector<512x128xbf16>, vector<128x128xf32> -> vector<128x128xf32>
    %c0_9 = arith.constant 0 : index
    %c0_10 = arith.constant 0 : index
    %12 = vector.load %arg5[%c0_9, %c0_10] : memref<1x128xf32, #tpu.memory_space<vmem>>, vector<1x128xf32>
    %13 = vector.broadcast %12 : vector<1x128xf32> to vector<128x128xf32>
    %14 = arith.addf %11, %13 : vector<128x128xf32>
    %c0_11 = arith.constant 0 : index
    %c0_12 = arith.constant 0 : index
    %15 = vector.load %arg6[%c0_11, %c0_12] : memref<128x128xf32, #tpu.memory_space<vmem>>, vector<128x128xf32>
    tpu.vector_store %arg6[%c0_11, %c0_12], %14 {strides = array<i32>} : memref<128x128xf32, #tpu.memory_space<vmem>>, vector<128x128xf32>,
    return
  }
  func.func @transform_0(%arg0: i32) -> (i32, i32) {
    %c0_i32 = arith.constant 0 : i32
    %c0_i32_0 = arith.constant 0 : i32
    return %arg0, %c0_i32 : i32, i32
  }
  func.func @transform_1(%arg0: i32) -> (i32, i32) {
    %c0_i32 = arith.constant 0 : i32
    %c0_i32_0 = arith.constant 0 : i32
    %c0_i32_1 = arith.constant 0 : i32
    return %c0_i32, %c0_i32_0 : i32, i32
  }
  func.func @transform_2(%arg0: i32) -> (i32, i32) {
    %c0_i32 = arith.constant 0 : i32
    %c0_i32_0 = arith.constant 0 : i32
    %c0_i32_1 = arith.constant 0 : i32
    return %c0_i32, %c0_i32_0 : i32, i32
  }
  func.func @transform_3(%arg0: i32) -> (i32, i32) {
    %c0_i32 = arith.constant 0 : i32
    %c0_i32_0 = arith.constant 0 : i32
    %c0_i32_1 = arith.constant 0 : i32
    return %c0_i32, %c0_i32_0 : i32, i32
  }
  func.func @transform_4(%arg0: i32) -> (i32, i32) {
    %c0_i32 = arith.constant 0 : i32
    %c0_i32_0 = arith.constant 0 : i32
    %c0_i32_1 = arith.constant 0 : i32
    return %c0_i32, %c0_i32_0 : i32, i32
  }
  func.func @transform_5(%arg0: i32) -> (i32, i32) {
    %c0_i32 = arith.constant 0 : i32
    %c0_i32_0 = arith.constant 0 : i32
    return %arg0, %c0_i32 : i32, i32
  }
}

</mosaic_0001>

<bundles_post_ra>
// kernel: tpu_custom_call.1
= control target key start
LH: loop header
LB: loop body
LE: loop exit
PB: predicated region body
PF: predicated region fallthrough
CT: control target
= control target key end

     0   :  { %10 = vsyncpa [#allocation3], 0  ;;  %s5859_s0 = inlined_call_operand.hbm [shape: f32[512,1024], index: 0, kind: input, shape index: {}]   ;;  %s5860_s1 = inlined_call_operand.hbm [shape: bf16[1024,512], index: 1, kind: input, shape index: {}]   ;;  %s5861_s2 = inlined_call_operand.hbm [shape: f32[1,512], index: 2, kind: input, shape index: {}]   ;;  %s5862_s3 = inlined_call_operand.hbm [shape: bf16[512,128], index: 3, kind: input, shape index: {}]   ;;  %s5863_s4 = inlined_call_operand.hbm [shape: f32[1,128], index: 4, kind: input, shape index: {}]   ;;  %s5864_s5 = inlined_call_operand.hbm [shape: f32[512,128], index: 5, kind: output, shape index: {}]  }
   0x1   :  { %12 = vsyncpa [#allocation3 + $0x1], 0 }
   0x2   :  { %13 = vsyncpa [#allocation6], 0 }
   0x3   :  { %14 = vsyncpa [#allocation9], 0 }
   0x4   :  { %15 = vsyncpa [#allocation4], 0 }
   0x5   :  { %17 = vsyncpa [#allocation4 + $0x1], 0  ;;  %s4851_s18 = smov 0   ;;  %s4853_s19 = smov 0  }
   0x6   :  { %s4855_s20 = smov 0   ;;  %s4857_s21 = smov 0  }
   0x7 LB: > { %s4872_s22 = sadd.s32 4294967295, %s4806_s21   ;;  %s3649_s23 = sadd.s32 4294967294, %s4806_s21   ;;  %s4806_s21 = sphi %s4857_s21, %s5963_s21   ;;  %s4802_s20 = sphi %s4855_s20, %s5962_s20   ;;  %s4798_s19 = sphi %s4853_s19, %s5961_s19   ;;  %s4794_s18 = sphi %s4851_s18, %s5960_s18  }
   0x8   : > { %p43_p0 = scmp.ne.s32.totalorder %s4798_s19, %s4794_s18  ;;  %p5865_p1 = scmp.eq.s32.totalorder %s4872_s22, 0 }
   0x9   : > { %p157_p3 = scmp.eq.s32.totalorder %s3649_s23, 3  ;;  %p3650_p5 = scmp.ge.s32.totalorder %s4806_s21, 1 }
   0xa   : > { %p4881_p4 = por %p5865_p1, %p43_p0  ;;  %p164_p7 = scmp.lt.s32.totalorder %s4806_s21, 5 }
   0xb   : > { %p4886_p6 = por %p157_p3, %p43_p0  ;;  %s4808_s27 = smov [#allocation5]  }
   0xc   : > { %s5889_s24 = scalar_select %p4881_p4, 1, 0 }
   0xd   : > { %s5890_s25 = scalar_select %p4886_p6, 1, 0 }
   0xe   : > { %p4891_p8 = pnand %p3650_p5, %p164_p7  ;;  %s176_s28 = sshll.u32 %s4808_s27, 4  ;;  %s177_s28 = int_to_ptr.vmem [resolvable:$true] %s176_s28 }
   0xf   : > { %s4809_s30 = smov [#allocation8]   ;;  %s4613_s7 = scalar_lea.vmem %s177_s28, 32768 }
  0x10   : > { %s5891_s26 = scalar_select %p4891_p8, 1, 0 }
  0x11   : > { %p4112_p9 = pneg %p4891_p8  ;;  %s200_s6 = sshll.u32 %s4809_s30, 4  ;;  %s201_s6 = int_to_ptr.vmem [resolvable:$true] %s200_s6 }
  0x12   : > { %p4614_p12 = scmp.ne.s32.totalorder %s177_s28, %s4613_s7  ;;  %p4621_p3 = scmp.lt.s32.totalorder %s177_s28, %s177_s28 }
  0x13   : > { %p4899_p10 = pnand %p4112_p9, %p5865_p1  ;;  %p4622_p5 = scmp.lt.s32.totalorder %s4613_s7, %s4613_s7 }
  0x15   : > { %p4604_p11 = pneg %p4899_p10  ;;  %p4623_p7 = por %p4622_p5, %p4621_p3 }
  0x17   : > { %p4616_p13 = pnand %p4614_p12, %p4604_p11 }
  0x19   : > { %p4617_p0 = pneg %p4616_p13 }
  0x1b   : > { %p4624_p9 = pnand %p4623_p7, %p4617_p0 }
  0x1d   : > { %4627 = shalt.err (!%p4624_p9)
}
  0x1e   : > { %s4810_s8 = smov 256   ;;  %s4811_s9 = smov 16  }
  0x1f   : > { %4115 = dma.hbm_to_vmem [thread:$0]  (!%p4899_p10), %s5860_s1, 32768, %s177_s28, [#allocation6], %s4810_s8, %s4810_s8, %s4811_s9  }
  0x20   : > { %s4639_s12 = scalar_lea.vmem %s201_s6, 4096  ;;  %p4647_p2 = scmp.lt.s32.totalorder %s201_s6, %s201_s6 }
  0x21   : > { %p4640_p1 = scmp.ne.s32.totalorder %s201_s6, %s4639_s12  ;;  %p4648_p6 = scmp.lt.s32.totalorder %s4639_s12, %s4639_s12 }
  0x23   : > { %p4642_p12 = pnand %p4640_p1, %p4604_p11  ;;  %p4649_p3 = por %p4648_p6, %p4647_p2 }
  0x25   : > { %p4643_p13 = pneg %p4642_p12 }
  0x27   : > { %p4650_p0 = pnand %p4649_p3, %p4643_p13 }
  0x29   : > { %4653 = shalt.err (!%p4650_p0)
}
  0x2a   : > { %s4812_s13 = smov 64   ;;  %s4813_s14 = smov 4  }
  0x2b   : > { %4121 = dma.hbm_to_vmem [thread:$0]  (!%p4899_p10), %s5862_s3, 4096, %s201_s6, [#allocation9], %s4812_s13, %s4812_s13, %s4813_s14  }
  0x2c   : > { %s4814_s17 = smov [#allocation7]   ;;  %s4815_s27 = smov [#allocation10]  }
  0x2d   : > { %s190_s23 = sshll.u32 %s4814_s17, 4  ;;  %s214_s28 = sshll.u32 %s4815_s27, 4  ;;  %s191_s23 = int_to_ptr.vmem [resolvable:$true] %s190_s23  ;;  %s215_s28 = int_to_ptr.vmem [resolvable:$true] %s214_s28 }
  0x2e   : > { %s4665_s30 = scalar_lea.vmem %s191_s23, 64  ;;  %p4673_p5 = scmp.lt.s32.totalorder %s191_s23, %s191_s23 }
  0x2f   : > { %p4666_p1 = scmp.ne.s32.totalorder %s191_s23, %s4665_s30  ;;  %p4674_p7 = scmp.lt.s32.totalorder %s4665_s30, %s4665_s30 }
  0x31   : > { %p4668_p2 = pnand %p4666_p1, %p4604_p11  ;;  %p4675_p9 = por %p4674_p7, %p4673_p5 }
  0x33   : > { %p4669_p6 = pneg %p4668_p2 }
  0x35   : > { %p4676_p12 = pnand %p4675_p9, %p4669_p6 }
  0x37   : > { %4679 = shalt.err (!%p4676_p12)
}
  0x38   : > { %4118 = dma.hbm_to_vmem [thread:$0]  (!%p4899_p10), %s5861_s2, 64, %s191_s23, [#allocation6]  }
  0x39   : > { %s4691_s8 = scalar_lea.vmem %s215_s28, 16  ;;  %s4698_s9 = scalar_lea.vmem %s215_s28, 32 }
  0x3a   : > { %p4692_p13 = scmp.ne.s32.totalorder %s215_s28, %s4691_s8  ;;  %p4699_p1 = scmp.lt.s32.totalorder %s215_s28, %s215_s28 }
  0x3b   : > { %p4700_p2 = scmp.lt.s32.totalorder %s4698_s9, %s4691_s8 }
  0x3c   : > { %p4694_p3 = pnand %p4692_p13, %p4604_p11 }
  0x3d   : > { %p4701_p4 = por %p4700_p2, %p4699_p1 }
  0x3e   : > { %p4695_p0 = pneg %p4694_p3 }
  0x40   : > { %p4702_p5 = pnand %p4701_p4, %p4695_p0 }
  0x42   : > { %4705 = shalt.err (!%p4702_p5)
}
  0x43   : > { %4124 = dma.hbm_to_vmem [thread:$0]  (!%p4899_p10), %s5863_s4, 16, %s215_s28, [#allocation9]  }
  0x44   : > { %s4940_s12 = sadd.s32 1, %s4806_s21   ;;  %s30_s29 = sadd.s32 1, %s4802_s20 }
  0x45   : > { %s27_s14 = ssub.s32 %s4806_s21, %s4940_s12  ;;  %p37_p11 = scmp.ne.s32.totalorder %s4802_s20, %s4798_s19 }
  0x46   : > { %p28_p4 = scmp.eq.s32.totalorder %s27_s14, 0  ;;  %p38_p6 = scmp.eq.s32.totalorder %s4806_s21, 0 }
  0x47   : > { %p5893_p9 = scmp.eq.s32.totalorder %s4872_s22, 3  ;;  %p4137_p13 = scmp.lt.s32.totalorder %s4806_s21, 4 }
  0x48   : > { %s4949_s15 = scalar_select %p28_p4, %s4802_s20, %s30_s29  }
  0x49   : > { %p39_p7 = por %p38_p6, %p37_p11  ;;  %p4953_p12 = por %p5893_p9, %p37_p11 }
  0x4a   : > { %s225_s17 = sand.u32 1, %s4802_s20   ;;  %s3962_s27 = sshll.u32 %s4806_s21, 14 }
  0x4b   : > { %s5894_s16 = scalar_select %p4953_p12, 1, 0 }
  0x4c   : > { %s3656_s23 = sshll.u32 %s225_s17, 10  ;;  %s4963_s6 = scalar_lea.hbm %s5859_s0, %s3962_s27 }
  0x4d   : > { %s229_s7 = scalar_lea.vmem [#allocation2], %s3656_s23  ;;  %p4967_p10 = pnand %p4137_p13, %p39_p7 }
  0x4e   : > { %s237_s8 = sshll.u32 %s229_s7, 4  ;;  %s4971_s10 = scalar_lea.sflag [#allocation3], %s225_s17  ;;  %s4965_s8 = int_to_ptr.vmem [resolvable:$true] %s237_s8 }
  0x4f   : > { %s4706_s11 = scalar_lea.hbm %s4963_s6, 16384  ;;  %p4708_p0 = pneg %p4967_p10 }
  0x50   : > { %p4707_p3 = scmp.ne.s32.totalorder %s4963_s6, %s4706_s11  ;;  %s4711_s23 = scalar_lea.hbm %s5859_s0, 65536 }
  0x51   : > { %p4712_p5 = scmp.lt.s32.totalorder %s4963_s6, %s5859_s0  ;;  %p4713_p4 = scmp.lt.s32.totalorder %s4711_s23, %s4706_s11 }
  0x52   : > { %p4709_p1 = pnand %p4708_p0, %p4707_p3 }
  0x53   : > { %p4714_p11 = por %p4713_p4, %p4712_p5 }
  0x54   : > { %p4710_p2 = pneg %p4709_p1 }
  0x56   : > { %p4715_p6 = pnand %p4714_p11, %p4710_p2 }
  0x58   : > { %4718 = shalt.err (!%p4715_p6)
}
  0x59   : > { %s4719_s17 = scalar_lea.vmem %s4965_s8, 16384  ;;  %s4816_s30 = smov [#allocation2]  }
  0x5a   : > { %p4720_p7 = scmp.ne.s32.totalorder %s4965_s8, %s4719_s17  ;;  %s4724_s7 = sshll.u32 %s4816_s30, 4  ;;  %s4725_s7 = int_to_ptr.vmem [resolvable:$false] %s4724_s7 }
  0x5b   : > { %s4726_s14 = scalar_lea.vmem %s4725_s7, 32768  ;;  %p4727_p3 = scmp.lt.s32.totalorder %s4965_s8, %s4725_s7 }
  0x5c   : > { %p4722_p9 = pnand %p4720_p7, %p4708_p0  ;;  %p4728_p1 = scmp.lt.s32.totalorder %s4726_s14, %s4719_s17 }
  0x5e   : > { %p4723_p13 = pneg %p4722_p9  ;;  %p4729_p12 = por %p4728_p1, %p4727_p3 }
  0x60   : > { %p4730_p8 = pnand %p4729_p12, %p4723_p13 }
  0x62   : > { %4733 = shalt.err (!%p4730_p8)
}
  0x63   : > { %s4817_s11 = smov 1024   ;;  %p5896_p0 = scmp.ne.s32.totalorder %s5891_s26, 0 }
  0x64   : > { %4128 = dma.hbm_to_vmem [thread:$0]  (!%p4967_p10), %s4963_s6, 16384, %s4965_s8, %s4971_s10, %s4817_s11, %s4817_s11, %s4812_s13  }
  0x65   : > { %249 = sbr.rel (%p5896_p0) target bundleno = 855 (0x357), region = 40 }
  0x6a   : > { %s4996_s29 = sand.u32 1, %s4798_s19   ;;  %p5897_p8 = scmp.ne.s32.totalorder %s5889_s24, 0 }
  0x6b   : > { %s3661_s23 = sshll.u32 %s4996_s29, 10  ;;  %s252_s27 = scalar_lea.sflag [#allocation3], %s4996_s29 }
  0x6c   : > { %s5000_s28 = scalar_lea.vmem [#allocation2], %s3661_s23 }
  0x6d   : > { %4777 = dma.done.wait (%p5897_p8), %s252_s27, 16384  }
  0x6e   : > { %4779 = vsyncadd (%p5897_p8), %s252_s27, 4294950912  ;;  %p5898_p12 = scmp.eq.s32.totalorder %s4872_s22, 0 }
  0x70   : > { %4781 = dma.done.wait (%p5898_p12), [#allocation6], 32832   ;;  %p5899_p10 = pmov %p5898_p12 }
  0x72   : > { %4783 = vsyncadd (%p5899_p10), [#allocation6], 4294934464  ;;  %p5900_p2 = pmov %p5899_p10 }
  0x74   : > { %4785 = dma.done.wait (%p5900_p2), [#allocation9], 4112   ;;  %p5901_p5 = pmov %p5900_p2 }
  0x75   : > { %v4186_v0 = vld [vmem:[#allocation5 + $0xe4] ss:$16 sps:$4 sm:$0xff]   ;;  %v4190_v2 = vld [vmem:[#allocation5 + $0xe0] ss:$16 sps:$4 sm:$0xff]   ;;  %v302_v46 = vld [vmem:[%s5000_s28 + $0x8] sm:$0xff]  ;;  %s3666_s24 = sshll.u32 %s4996_s29, 7 }
  0x76   : > { %4787 = vsyncadd (%p5901_p5), [#allocation9], 4294963184  ;;  %v4188_v1 = vld [vmem:[#allocation5 + $0x2e4] ss:$16 sps:$4 sm:$0xff]   ;;  %2051 = vmatprep.subr.bf16.mxu0 %v4186_v0  ;;  %v4191_v3 = vld [vmem:[#allocation5 + $0x2e0] ss:$16 sps:$4 sm:$0xff]  }
  0x77   : > { %2164 = vmatprep.subr.bf16.mxu1 %v4188_v1  ;;  %v4192_v4 = vld [vmem:[#allocation5 + $0xc4] ss:$16 sps:$4 sm:$0xff]   ;;  %2052 = vmatpush1.bf16.msra.mxu0 %v4190_v2  ;;  %v4196_v6 = vld [vmem:[#allocation5 + $0xc0] ss:$16 sps:$4 sm:$0xff]   ;;  %v310_v47 = vld [vmem:[%s5000_s28 + $0x48] sm:$0xff]  ;;  %s5777_s26 = scalar_lea.vmem [#allocation11], %s3666_s24 }
  0x78   : > { %2165 = vmatpush1.bf16.msra.mxu1 %v4191_v3  ;;  %v4194_v5 = vld [vmem:[#allocation5 + $0x2c4] ss:$16 sps:$4 sm:$0xff]   ;;  %2053 = vmatprep.subr.bf16.mxu0 %v4192_v4  ;;  %v4197_v7 = vld [vmem:[#allocation5 + $0x2c0] ss:$16 sps:$4 sm:$0xff]   ;;  %v304_v48 = vld [vmem:[%s5000_s28 + $0x18] sm:$0xff]  ;;  %v5018_v53 = vpack.c.bf16 %v310_v47, %v302_v46  ;;  %s3963_s13 = sshll.u32 %s4872_s22, 11 }
  0x79   : > { %2166 = vmatprep.subr.bf16.mxu1 %v4194_v5  ;;  %v4198_v8 = vld [vmem:[#allocation5 + $0xa4] ss:$16 sps:$4 sm:$0xff]   ;;  %v4202_v10 = vld [vmem:[#allocation5 + $0xa0] ss:$16 sps:$4 sm:$0xff]   ;;  %v312_v49 = vld [vmem:[%s5000_s28 + $0x58] sm:$0xff]  ;;  %s3538_s6 = sshll.u32 %s5777_s26, 4  ;;  %s5814_s10 = scalar_lea.hbm %s5864_s5, %s3963_s13  ;;  %s5816_s6 = int_to_ptr.vmem [resolvable:$true] %s3538_s6 }
  0x7a   : > { %v4200_v9 = vld [vmem:[#allocation5 + $0x2a4] ss:$16 sps:$4 sm:$0xff]   ;;  %v4203_v11 = vld [vmem:[#allocation5 + $0x2a0] ss:$16 sps:$4 sm:$0xff]   ;;  %v5020_v54 = vpack.c.bf16 %v312_v49, %v304_v48  ;;  %2083 = vmatprep.mubr.bf16.mxu0 %v5018_v53  ;;  %s3525_s17 = scalar_lea.sflag [#allocation4], %s4996_s29  ;;  %s4734_s22 = scalar_lea.vmem %s5816_s6, 2048 }
  0x7b   : > { %2054 = vmatpush1.bf16.msra.mxu0 %v4196_v6  ;;  %v4204_v12 = vld [vmem:[#allocation5 + $0x84] ss:$16 sps:$4 sm:$0xff]   ;;  %v4208_v14 = vld [vmem:[#allocation5 + $0x80] ss:$16 sps:$4 sm:$0xff]   ;;  %p4735_p4 = scmp.ne.s32.totalorder %s5816_s6, %s4734_s22  ;;  %p5958_p11 = scmp.ne.s32.totalorder %s5894_s16, 0 }
  0x7c   : > { %2167 = vmatpush1.bf16.msra.mxu1 %v4197_v7  ;;  %2055 = vmatprep.subr.bf16.mxu0 %v4198_v8  ;;  %v4206_v13 = vld [vmem:[#allocation5 + $0x284] ss:$16 sps:$4 sm:$0xff]   ;;  %v4209_v15 = vld [vmem:[#allocation5 + $0x280] ss:$16 sps:$4 sm:$0xff]   ;;  %s4818_s30 = smov [#allocation11]  }
  0x7d   : > { %2168 = vmatprep.subr.bf16.mxu1 %v4200_v9  ;;  %v4210_v16 = vld [vmem:[#allocation5 + $0x64] ss:$16 sps:$4 sm:$0xff]   ;;  %v4214_v18 = vld [vmem:[#allocation5 + $0x60] ss:$16 sps:$4 sm:$0xff]   ;;  %2196 = vmatprep.mubr.bf16.mxu1 %v5020_v54  ;;  %p4736_p6 = pnand %p4735_p4, %p5958_p11  ;;  %s4738_s7 = sshll.u32 %s4818_s30, 4  ;;  %s4739_s7 = int_to_ptr.vmem [resolvable:$false] %s4738_s7 }
  0x7e   : > { %v4212_v17 = vld [vmem:[#allocation5 + $0x264] ss:$16 sps:$4 sm:$0xff]   ;;  %v4215_v19 = vld [vmem:[#allocation5 + $0x260] ss:$16 sps:$4 sm:$0xff]   ;;  %s4740_s14 = scalar_lea.vmem %s4739_s7, 4096  ;;  %p4741_p9 = scmp.lt.s32.totalorder %s5816_s6, %s4739_s7 }
  0x7f   : > { %2056 = vmatpush1.bf16.msra.mxu0 %v4202_v10  ;;  %v4216_v20 = vld [vmem:[#allocation5 + $0x44] ss:$16 sps:$4 sm:$0xff]   ;;  %v4220_v22 = vld [vmem:[#allocation5 + $0x40] ss:$16 sps:$4 sm:$0xff]   ;;  %p4737_p7 = pneg %p4736_p6  ;;  %p4742_p13 = scmp.lt.s32.totalorder %s4740_s14, %s4734_s22 }
  0x80   : > { %2169 = vmatpush1.bf16.msra.mxu1 %v4203_v11  ;;  %2057 = vmatprep.subr.bf16.mxu0 %v4204_v12  ;;  %v4218_v21 = vld [vmem:[#allocation5 + $0x244] ss:$16 sps:$4 sm:$0xff]   ;;  %v4221_v23 = vld [vmem:[#allocation5 + $0x240] ss:$16 sps:$4 sm:$0xff]  }
  0x81   : > { %2170 = vmatprep.subr.bf16.mxu1 %v4206_v13  ;;  %v4222_v24 = vld [vmem:[#allocation5 + $0x24] ss:$16 sps:$4 sm:$0xff]   ;;  %v4226_v26 = vld [vmem:[#allocation5 + $0x20] ss:$16 sps:$4 sm:$0xff]   ;;  %p4743_p3 = por %p4742_p13, %p4741_p9 }
  0x82   : > { %v4224_v25 = vld [vmem:[#allocation5 + $0x224] ss:$16 sps:$4 sm:$0xff]   ;;  %v4227_v27 = vld [vmem:[#allocation5 + $0x220] ss:$16 sps:$4 sm:$0xff]  }
  0x83   : > { %2058 = vmatpush1.bf16.msra.mxu0 %v4208_v14  ;;  %v4228_v28 = vld [vmem:[#allocation5 + $0x4] ss:$16 sps:$4 sm:$0xff]   ;;  %v4232_v30 = vld [vmem:[#allocation5] ss:$16 sps:$4 sm:$0xff]   ;;  %v318_v14 = vld [vmem:[%s5000_s28 + $0x88] sm:$0xff]  ;;  %p4744_p1 = pnand %p4743_p3, %p4737_p7 }
  0x84   : > { %2171 = vmatpush1.bf16.msra.mxu1 %v4209_v15  ;;  %2059 = vmatprep.subr.bf16.mxu0 %v4210_v16  ;;  %v4230_v29 = vld [vmem:[#allocation5 + $0x204] ss:$16 sps:$4 sm:$0xff]   ;;  %v4233_v31 = vld [vmem:[#allocation5 + $0x200] ss:$16 sps:$4 sm:$0xff]   ;;  %v326_v15 = vld [vmem:[%s5000_s28 + $0xc8] sm:$0xff] }
  0x85   : > { %2172 = vmatprep.subr.bf16.mxu1 %v4212_v17  ;;  %v4234_v32 = vld [vmem:[#allocation5 + $0x1e4] ss:$16 sps:$4 sm:$0xff]   ;;  %v4238_v34 = vld [vmem:[#allocation5 + $0x1e0] ss:$16 sps:$4 sm:$0xff]  }
  0x86   : > { %v4236_v33 = vld [vmem:[#allocation5 + $0x3e4] ss:$16 sps:$4 sm:$0xff]   ;;  %v4239_v35 = vld [vmem:[#allocation5 + $0x3e0] ss:$16 sps:$4 sm:$0xff]  }
  0x87   : > { %2060 = vmatpush1.bf16.msra.mxu0 %v4214_v18  ;;  %v4240_v36 = vld [vmem:[#allocation5 + $0x1c4] ss:$16 sps:$4 sm:$0xff]   ;;  %v4244_v38 = vld [vmem:[#allocation5 + $0x1c0] ss:$16 sps:$4 sm:$0xff]   ;;  %v320_v18 = vld [vmem:[%s5000_s28 + $0x98] sm:$0xff] }
  0x88   : > { %2173 = vmatpush1.bf16.msra.mxu1 %v4215_v19  ;;  %2061 = vmatprep.subr.bf16.mxu0 %v4216_v20  ;;  %v4242_v37 = vld [vmem:[#allocation5 + $0x3c4] ss:$16 sps:$4 sm:$0xff]   ;;  %v4245_v39 = vld [vmem:[#allocation5 + $0x3c0] ss:$16 sps:$4 sm:$0xff]   ;;  %v328_v19 = vld [vmem:[%s5000_s28 + $0xd8] sm:$0xff] }
  0x89   : > { %2174 = vmatprep.subr.bf16.mxu1 %v4218_v21  ;;  %v4246_v40 = vld [vmem:[#allocation5 + $0x1a4] ss:$16 sps:$4 sm:$0xff]   ;;  %v4250_v42 = vld [vmem:[#allocation5 + $0x1a0] ss:$16 sps:$4 sm:$0xff]  }
  0x8a   : > { %v4248_v41 = vld [vmem:[#allocation5 + $0x3a4] ss:$16 sps:$4 sm:$0xff]   ;;  %v4251_v43 = vld [vmem:[#allocation5 + $0x3a0] ss:$16 sps:$4 sm:$0xff]  }
  0x8b   : > { %2062 = vmatpush1.bf16.msra.mxu0 %v4220_v22  ;;  %v4252_v44 = vld [vmem:[#allocation5 + $0x184] ss:$16 sps:$4 sm:$0xff]   ;;  %v4256_v50 = vld [vmem:[#allocation5 + $0x180] ss:$16 sps:$4 sm:$0xff]  }
  0x8c   : > { %2175 = vmatpush1.bf16.msra.mxu1 %v4221_v23  ;;  %2063 = vmatprep.subr.bf16.mxu0 %v4222_v24  ;;  %v4254_v45 = vld [vmem:[#allocation5 + $0x384] ss:$16 sps:$4 sm:$0xff]   ;;  %v4257_v51 = vld [vmem:[#allocation5 + $0x380] ss:$16 sps:$4 sm:$0xff]   ;;  %v5036_v23 = vpack.c.bf16 %v326_v15, %v318_v14  ;;  %v5038_v24 = vpack.c.bf16 %v328_v19, %v320_v18  ;;  %v368_v18 = vld [vmem:[%s5000_s28 + $0x218] sm:$0xff] }
  0x8d   : > { %2176 = vmatprep.subr.bf16.mxu1 %v4224_v25  ;;  %v4258_v52 = vld [vmem:[#allocation5 + $0x164] ss:$16 sps:$4 sm:$0xff]   ;;  %v4262_v56 = vld [vmem:[#allocation5 + $0x160] ss:$16 sps:$4 sm:$0xff]   ;;  %v376_v19 = vld [vmem:[%s5000_s28 + $0x258] sm:$0xff] }
  0x8e   : > { %v4260_v55 = vld [vmem:[#allocation5 + $0x364] ss:$16 sps:$4 sm:$0xff]   ;;  %v4263_v57 = vld [vmem:[#allocation5 + $0x360] ss:$16 sps:$4 sm:$0xff]  }
  0x8f   : > { %2064 = vmatpush1.bf16.msra.mxu0 %v4226_v26  ;;  %v4264_v58 = vld [vmem:[#allocation5 + $0x144] ss:$16 sps:$4 sm:$0xff]   ;;  %v4268_v60 = vld [vmem:[#allocation5 + $0x140] ss:$16 sps:$4 sm:$0xff]  }
  0x90   : > { %2177 = vmatpush1.bf16.msra.mxu1 %v4227_v27  ;;  %2065 = vmatprep.subr.bf16.mxu0 %v4228_v28  ;;  %v4266_v59 = vld [vmem:[#allocation5 + $0x344] ss:$16 sps:$4 sm:$0xff]   ;;  %v4269_v61 = vld [vmem:[#allocation5 + $0x340] ss:$16 sps:$4 sm:$0xff]  }
  0x91   : > { %2178 = vmatprep.subr.bf16.mxu1 %v4230_v29  ;;  %v4270_v62 = vld [vmem:[#allocation5 + $0x124] ss:$16 sps:$4 sm:$0xff]   ;;  %v4274_v0 = vld [vmem:[#allocation5 + $0x120] ss:$16 sps:$4 sm:$0xff]  }
  0x92   : > { %v4272_v63 = vld [vmem:[#allocation5 + $0x324] ss:$16 sps:$4 sm:$0xff]   ;;  %v4275_v1 = vld [vmem:[#allocation5 + $0x320] ss:$16 sps:$4 sm:$0xff]  }
  0x93   : > { %2066 = vmatpush1.bf16.msra.mxu0 %v4232_v30  ;;  %v4276_v2 = vld [vmem:[#allocation5 + $0x104] ss:$16 sps:$4 sm:$0xff]   ;;  %v4280_v4 = vld [vmem:[#allocation5 + $0x100] ss:$16 sps:$4 sm:$0xff]  }
  0x94   : > { %2179 = vmatpush1.bf16.msra.mxu1 %v4233_v31  ;;  %2067 = vmatprep.subr.bf16.mxu0 %v4234_v32  ;;  %v4278_v3 = vld [vmem:[#allocation5 + $0x304] ss:$16 sps:$4 sm:$0xff]   ;;  %v4281_v5 = vld [vmem:[#allocation5 + $0x300] ss:$16 sps:$4 sm:$0xff]  }
  0x95   : > { %2180 = vmatprep.subr.bf16.mxu1 %v4236_v33  ;;  %v301_v6 = vld [vmem:[%s5000_s28] sm:$0xff]  ;;  %v303_v8 = vld [vmem:[%s5000_s28 + $0x10] sm:$0xff] }
  0x96   : > { %v309_v7 = vld [vmem:[%s5000_s28 + $0x40] sm:$0xff]  ;;  %v311_v9 = vld [vmem:[%s5000_s28 + $0x50] sm:$0xff] }
  0x97   : > { %2068 = vmatpush2.bf16.msra.mxu0 %v4238_v34  ;;  %v4284_v10 = vld [vmem:[#allocation5 + $0x4e4] ss:$16 sps:$4 sm:$0xff]   ;;  %v4282_v12 = vld [vmem:[#allocation5 + $0x4e0] ss:$16 sps:$4 sm:$0xff]   ;;  %v5030_v16 = vpack.c.bf16 %v309_v7, %v301_v6  ;;  %v5032_v17 = vpack.c.bf16 %v311_v9, %v303_v8  ;;  %v334_v34 = vld [vmem:[%s5000_s28 + $0x108] sm:$0xff] }
  0x98   : > { %2181 = vmatpush2.bf16.msra.mxu1 %v4239_v35  ;;  %2069 = vmatprep.subr.bf16.mxu0 %v4240_v36  ;;  %v4287_v11 = vld [vmem:[#allocation5 + $0x6e4] ss:$16 sps:$4 sm:$0xff]   ;;  %v4285_v13 = vld [vmem:[#allocation5 + $0x6e0] ss:$16 sps:$4 sm:$0xff]   ;;  %v342_v35 = vld [vmem:[%s5000_s28 + $0x148] sm:$0xff] }
  0x99   : > { %2182 = vmatprep.subr.bf16.mxu1 %v4242_v37  ;;  %v4290_v20 = vld [vmem:[#allocation5 + $0x4c4] ss:$16 sps:$4 sm:$0xff]   ;;  %v4288_v22 = vld [vmem:[#allocation5 + $0x4c0] ss:$16 sps:$4 sm:$0xff]  }
  0x9a   : > { %v4293_v21 = vld [vmem:[#allocation5 + $0x6c4] ss:$16 sps:$4 sm:$0xff]   ;;  %v4291_v25 = vld [vmem:[#allocation5 + $0x6c0] ss:$16 sps:$4 sm:$0xff]  }
  0x9b   : > { %2070 = vmatpush2.bf16.msra.mxu0 %v4244_v38  ;;  %v317_v26 = vld [vmem:[%s5000_s28 + $0x80] sm:$0xff]  ;;  %v319_v28 = vld [vmem:[%s5000_s28 + $0x90] sm:$0xff]  ;;  %v336_v38 = vld [vmem:[%s5000_s28 + $0x118] sm:$0xff] }
  0x9c   : > { %2183 = vmatpush2.bf16.msra.mxu1 %v4245_v39  ;;  %2071 = vmatprep.subr.bf16.mxu0 %v4246_v40  ;;  %v325_v27 = vld [vmem:[%s5000_s28 + $0xc0] sm:$0xff]  ;;  %v327_v29 = vld [vmem:[%s5000_s28 + $0xd0] sm:$0xff]  ;;  %v344_v39 = vld [vmem:[%s5000_s28 + $0x158] sm:$0xff] }
  0x9d   : > { %2184 = vmatprep.subr.bf16.mxu1 %v4248_v41  ;;  %v4296_v30 = vld [vmem:[#allocation5 + $0x4a4] ss:$16 sps:$4 sm:$0xff]   ;;  %v4294_v32 = vld [vmem:[#allocation5 + $0x4a0] ss:$16 sps:$4 sm:$0xff]   ;;  %v5050_v36 = vpack.c.bf16 %v325_v27, %v317_v26  ;;  %v5052_v37 = vpack.c.bf16 %v327_v29, %v319_v28  ;;  %v5098_v26 = vpack.c.bf16 %v376_v19, %v368_v18 }
  0x9e   : > { %v4299_v31 = vld [vmem:[#allocation5 + $0x6a4] ss:$16 sps:$4 sm:$0xff]   ;;  %v4297_v33 = vld [vmem:[#allocation5 + $0x6a0] ss:$16 sps:$4 sm:$0xff]  }
  0x9f   : > { %2072 = vmatpush2.bf16.msra.mxu0 %v4250_v42  ;;  %v4302_v40 = vld [vmem:[#allocation5 + $0x484] ss:$16 sps:$4 sm:$0xff]   ;;  %v4300_v42 = vld [vmem:[#allocation5 + $0x480] ss:$16 sps:$4 sm:$0xff]  }
  0xa0   : > { %2185 = vmatpush2.bf16.msra.mxu1 %v4251_v43  ;;  %2073 = vmatprep.subr.bf16.mxu0 %v4252_v44  ;;  %v4305_v41 = vld [vmem:[#allocation5 + $0x684] ss:$16 sps:$4 sm:$0xff]   ;;  %v5056_v43 = vpack.c.bf16 %v342_v35, %v334_v34  ;;  %v5058_v44 = vpack.c.bf16 %v344_v39, %v336_v38  ;;  %v4327_v27 = vld [vmem:[#allocation5 + $0x600] ss:$16 sps:$4 sm:$0xff]   ;;  %v382_v38 = vld [vmem:[%s5000_s28 + $0x288] sm:$0xff] }
  0xa1   : > { %2186 = vmatprep.subr.bf16.mxu1 %v4254_v45  ;;  %v4303_v45 = vld [vmem:[#allocation5 + $0x680] ss:$16 sps:$4 sm:$0xff]   ;;  %v4320_v8 = vld [vmem:[#allocation5 + $0x424] ss:$16 sps:$4 sm:$0xff]   ;;  %v390_v39 = vld [vmem:[%s5000_s28 + $0x2c8] sm:$0xff] }
  0xa2   : > { %v333_v46 = vld [vmem:[%s5000_s28 + $0x100] sm:$0xff]  ;;  %v335_v48 = vld [vmem:[%s5000_s28 + $0x110] sm:$0xff] }
  0xa3   : > { %2074 = vmatpush2.bf16.msra.mxu0 %v4256_v50  ;;  %v341_v47 = vld [vmem:[%s5000_s28 + $0x140] sm:$0xff]  ;;  %v343_v49 = vld [vmem:[%s5000_s28 + $0x150] sm:$0xff] }
  0xa4   : > { %2187 = vmatpush2.bf16.msra.mxu1 %v4257_v51  ;;  %2075 = vmatprep.subr.bf16.mxu0 %v4258_v52  ;;  %v4308_v50 = vld [vmem:[#allocation5 + $0x464] ss:$16 sps:$4 sm:$0xff]   ;;  %v4306_v52 = vld [vmem:[#allocation5 + $0x460] ss:$16 sps:$4 sm:$0xff]  }
  0xa5   : > { %2188 = vmatprep.subr.bf16.mxu1 %v4260_v55  ;;  %v4311_v51 = vld [vmem:[#allocation5 + $0x664] ss:$16 sps:$4 sm:$0xff]   ;;  %v4309_v55 = vld [vmem:[#allocation5 + $0x660] ss:$16 sps:$4 sm:$0xff]  }
  0xa6   : > { %v351_v6 = vld [vmem:[%s5000_s28 + $0x190] sm:$0xff]  ;;  %v365_v28 = vld [vmem:[%s5000_s28 + $0x200] sm:$0xff] }
  0xa7   : > { %2076 = vmatpush2.bf16.msra.mxu0 %v4262_v56  ;;  %v350_v56 = vld [vmem:[%s5000_s28 + $0x188] sm:$0xff]  ;;  %v359_v7 = vld [vmem:[%s5000_s28 + $0x1d0] sm:$0xff]  ;;  %v373_v29 = vld [vmem:[%s5000_s28 + $0x240] sm:$0xff] }
  0xa8   : > { %2189 = vmatpush2.bf16.msra.mxu1 %v4263_v57  ;;  %2077 = vmatprep.subr.bf16.mxu0 %v4264_v58  ;;  %v358_v57 = vld [vmem:[%s5000_s28 + $0x1c8] sm:$0xff]  ;;  %v5070_v58 = vpack.c.bf16 %v341_v47, %v333_v46  ;;  %v4323_v9 = vld [vmem:[#allocation5 + $0x624] ss:$16 sps:$4 sm:$0xff]   ;;  %v5092_v15 = vpack.c.bf16 %v359_v7, %v351_v6  ;;  %v4330_v34 = vld [vmem:[#allocation5 + $0x5e0] ss:$16 sps:$4 sm:$0xff]  }
  0xa9   : > { %2190 = vmatprep.subr.bf16.mxu1 %v4266_v59  ;;  %v5072_v59 = vpack.c.bf16 %v343_v49, %v335_v48  ;;  %v4333_v35 = vld [vmem:[#allocation5 + $0x7e0] ss:$16 sps:$4 sm:$0xff]   ;;  %v4338_v46 = vld [vmem:[#allocation5 + $0x5c4] ss:$16 sps:$4 sm:$0xff]   ;;  %v5116_v49 = vpack.c.bf16 %v390_v39, %v382_v38  ;;  %v400_v6 = vld [vmem:[%s5000_s28 + $0x318] sm:$0xff] }
  0xaa   : > { %v4341_v47 = vld [vmem:[#allocation5 + $0x7c4] ss:$16 sps:$4 sm:$0xff]   ;;  %v4336_v48 = vld [vmem:[#allocation5 + $0x5c0] ss:$16 sps:$4 sm:$0xff]   ;;  %v408_v7 = vld [vmem:[%s5000_s28 + $0x358] sm:$0xff] }
  0xab   : > { %2078 = vmatpush2.bf16.msra.mxu0 %v4268_v60  ;;  %v352_v60 = vld [vmem:[%s5000_s28 + $0x198] sm:$0xff]  ;;  %v397_v18 = vld [vmem:[%s5000_s28 + $0x300] sm:$0xff] }
  0xac   : > { %2191 = vmatpush2.bf16.msra.mxu1 %v4269_v61  ;;  %2079 = vmatprep.subr.bf16.mxu0 %v4270_v62  ;;  %v360_v61 = vld [vmem:[%s5000_s28 + $0x1d8] sm:$0xff]  ;;  %v4314_v62 = vld [vmem:[#allocation5 + $0x444] ss:$16 sps:$4 sm:$0xff]  }
  0xad   : > { %2192 = vmatprep.subr.bf16.mxu1 %v4272_v63  ;;  %v4317_v63 = vld [vmem:[#allocation5 + $0x644] ss:$16 sps:$4 sm:$0xff]  }
  0xae   : > { %v405_v19 = vld [vmem:[%s5000_s28 + $0x340] sm:$0xff] }
  0xaf   : > { %2080 = vmatpush2.bf16.msra.mxu0 %v4274_v0  ;;  %v4312_v0 = vld [vmem:[#allocation5 + $0x440] ss:$16 sps:$4 sm:$0xff]   ;;  %v4362_v38 = vld [vmem:[#allocation5 + $0x544] ss:$16 sps:$4 sm:$0xff]  }
  0xb0   : > { %2193 = vmatpush2.bf16.msra.mxu1 %v4275_v1  ;;  %2081 = vmatprep.subr.bf16.mxu0 %v4276_v2  ;;  %v5076_v1 = vpack.c.bf16 %v358_v57, %v350_v56  ;;  %v5078_v2 = vpack.c.bf16 %v360_v61, %v352_v60  ;;  %v383_v56 = vld [vmem:[%s5000_s28 + $0x290] sm:$0xff] }
  0xb1   : > { %2194 = vmatprep.subr.bf16.mxu1 %v4278_v3  ;;  %v4315_v3 = vld [vmem:[#allocation5 + $0x640] ss:$16 sps:$4 sm:$0xff]   ;;  %v4344_v60 = vld [vmem:[#allocation5 + $0x5a4] ss:$16 sps:$4 sm:$0xff]  }
  0xb2   : > { %v391_v57 = vld [vmem:[%s5000_s28 + $0x2d0] sm:$0xff] }
  0xb3   : > { %2082 = vmatpush2.bf16.msra.mxu0 %v4280_v4  ;;  %v349_v4 = vld [vmem:[%s5000_s28 + $0x180] sm:$0xff] }
  0xb4   : > { %2195 = vmatpush2.bf16.msra.mxu1 %v4281_v5  ;;  %2277 = vmatprep.subr.bf16.mxu0 %v4284_v10  ;;  %v357_v5 = vld [vmem:[%s5000_s28 + $0x1c0] sm:$0xff] }
  0xb5   : > { %2390 = vmatprep.subr.bf16.mxu1 %v4287_v11  ;;  %v4318_v10 = vld [vmem:[#allocation5 + $0x420] ss:$16 sps:$4 sm:$0xff]   ;;  %v5090_v14 = vpack.c.bf16 %v357_v5, %v349_v4  ;;  %v4347_v61 = vld [vmem:[#allocation5 + $0x7a4] ss:$16 sps:$4 sm:$0xff]   ;;  %v5132_v5 = vpack.c.bf16 %v391_v57, %v383_v56 }
  0xb6   : > { %2084 = vmatmul.mubr.bf16.vlgmr.msra.gmra.mxu0 %v5030_v16  ;;  %v4321_v11 = vld [vmem:[#allocation5 + $0x620] ss:$16 sps:$4 sm:$0xff]   ;;  %v4365_v39 = vld [vmem:[#allocation5 + $0x744] ss:$16 sps:$4 sm:$0xff]  }
  0xb7   : > { %2197 = vmatmul.mubr.bf16.vlgmr.msra.gmra.mxu1 %v5032_v17  ;;  %2278 = vmatpush1.bf16.msra.mxu0 %v4282_v12  ;;  %v366_v12 = vld [vmem:[%s5000_s28 + $0x208] sm:$0xff]  ;;  %v4368_v56 = vld [vmem:[#allocation5 + $0x524] ss:$16 sps:$4 sm:$0xff]  }
  0xb8   : > { %2391 = vmatpush1.bf16.msra.mxu1 %v4285_v13  ;;  %2279 = vmatprep.subr.bf16.mxu0 %v4290_v20  ;;  %v374_v13 = vld [vmem:[%s5000_s28 + $0x248] sm:$0xff]  ;;  %v4326_v20 = vld [vmem:[#allocation5 + $0x404] ss:$16 sps:$4 sm:$0xff]  }
  0xb9   : > { %2392 = vmatprep.subr.bf16.mxu1 %v4293_v21  ;;  %2093 = vmatprep.mubr.bf16.mxu0 %v5036_v23  ;;  %v4329_v21 = vld [vmem:[#allocation5 + $0x604] ss:$16 sps:$4 sm:$0xff]  }
  0xba   : > { %2206 = vmatprep.mubr.bf16.mxu1 %v5038_v24  ;;  %v4371_v57 = vld [vmem:[#allocation5 + $0x724] ss:$16 sps:$4 sm:$0xff]  }
  0xbb   : > { %2280 = vmatpush1.bf16.msra.mxu0 %v4288_v22  ;;  %v4324_v22 = vld [vmem:[#allocation5 + $0x400] ss:$16 sps:$4 sm:$0xff]  }
  0xbc   : > { %2393 = vmatpush1.bf16.msra.mxu1 %v4291_v25  ;;  %2281 = vmatprep.subr.bf16.mxu0 %v4296_v30  ;;  %v5096_v25 = vpack.c.bf16 %v374_v13, %v366_v12  ;;  %v367_v30 = vld [vmem:[%s5000_s28 + $0x210] sm:$0xff]  ;;  %v5138_v12 = vpack.c.bf16 %v408_v7, %v400_v6  ;;  %v308_v6 = vld [vmem:[%s5000_s28 + $0x38] sm:$0xff] }
  0xbd   : > { %2394 = vmatprep.subr.bf16.mxu1 %v4299_v31  ;;  %v375_v31 = vld [vmem:[%s5000_s28 + $0x250] sm:$0xff]  ;;  %v316_v7 = vld [vmem:[%s5000_s28 + $0x78] sm:$0xff] }
  0xbe   : > { %2094 = vmatmul.mubr.bf16.gmra.mxu0 %v5050_v36  ;;  %v4351_v13 = vld [vmem:[#allocation5 + $0x780] ss:$16 sps:$4 sm:$0xff]  }
  0xbf   : > { %2207 = vmatmul.mubr.bf16.gmra.mxu1 %v5052_v37  ;;  %2282 = vmatpush1.bf16.msra.mxu0 %v4294_v32  ;;  %v4332_v32 = vld [vmem:[#allocation5 + $0x5e4] ss:$16 sps:$4 sm:$0xff]  }
  0xc0   : > { %2395 = vmatpush1.bf16.msra.mxu1 %v4297_v33  ;;  %2283 = vmatprep.subr.bf16.mxu0 %v4302_v40  ;;  %v4335_v33 = vld [vmem:[#allocation5 + $0x7e4] ss:$16 sps:$4 sm:$0xff]   ;;  %v5110_v40 = vpack.c.bf16 %v373_v29, %v365_v28  ;;  %v4354_v28 = vld [vmem:[#allocation5 + $0x560] ss:$16 sps:$4 sm:$0xff]  }
  0xc1   : > { %2396 = vmatprep.subr.bf16.mxu1 %v4305_v41  ;;  %2103 = vmatprep.mubr.bf16.mxu0 %v5056_v43  ;;  %v5112_v41 = vpack.c.bf16 %v375_v31, %v367_v30  ;;  %v4357_v29 = vld [vmem:[#allocation5 + $0x760] ss:$16 sps:$4 sm:$0xff]   ;;  %v414_v30 = vld [vmem:[%s5000_s28 + $0x388] sm:$0xff] }
  0xc2   : > { %2216 = vmatprep.mubr.bf16.mxu1 %v5058_v44  ;;  %v422_v31 = vld [vmem:[%s5000_s28 + $0x3c8] sm:$0xff] }
  0xc3   : > { %2284 = vmatpush1.bf16.msra.mxu0 %v4300_v42  ;;  %v384_v42 = vld [vmem:[%s5000_s28 + $0x298] sm:$0xff] }
  0xc4   : > { %2397 = vmatpush1.bf16.msra.mxu1 %v4303_v45  ;;  %2285 = vmatprep.subr.bf16.mxu0 %v4308_v50  ;;  %v392_v45 = vld [vmem:[%s5000_s28 + $0x2d8] sm:$0xff] }
  0xc5   : > { %2398 = vmatprep.subr.bf16.mxu1 %v4311_v51  ;;  %v5118_v50 = vpack.c.bf16 %v392_v45, %v384_v42  ;;  %v4339_v51 = vld [vmem:[#allocation5 + $0x7c0] ss:$16 sps:$4 sm:$0xff]   ;;  %v5156_v45 = vpack.c.bf16 %v422_v31, %v414_v30  ;;  %v4378_v30 = vld [vmem:[#allocation5 + $0xe8] ss:$16 sps:$4 sm:$0xff]  }
  0xc6   : > { %2104 = vmatmul.mubr.bf16.gmra.mxu0 %v5070_v58  ;;  %v4360_v42 = vld [vmem:[#allocation5 + $0x540] ss:$16 sps:$4 sm:$0xff]   ;;  %v4381_v31 = vld [vmem:[#allocation5 + $0x2e8] ss:$16 sps:$4 sm:$0xff]  }
  0xc7   : > { %2217 = vmatmul.mubr.bf16.gmra.mxu1 %v5072_v59  ;;  %2286 = vmatpush1.bf16.msra.mxu0 %v4306_v52  ;;  %v381_v52 = vld [vmem:[%s5000_s28 + $0x280] sm:$0xff] }
  0xc8   : > { %2399 = vmatpush1.bf16.msra.mxu1 %v4309_v55  ;;  %2287 = vmatprep.subr.bf16.mxu0 %v4314_v62  ;;  %v389_v55 = vld [vmem:[%s5000_s28 + $0x2c0] sm:$0xff] }
  0xc9   : > { %2400 = vmatprep.subr.bf16.mxu1 %v4317_v63  ;;  %2113 = vmatprep.mubr.bf16.mxu0 %v5076_v1  ;;  %v4342_v62 = vld [vmem:[#allocation5 + $0x5a0] ss:$16 sps:$4 sm:$0xff]   ;;  %v5130_v4 = vpack.c.bf16 %v389_v55, %v381_v52 }
  0xca   : > { %2226 = vmatprep.mubr.bf16.mxu1 %v5078_v2  ;;  %v4345_v63 = vld [vmem:[#allocation5 + $0x7a0] ss:$16 sps:$4 sm:$0xff]  }
  0xcb   : > { %2288 = vmatpush1.bf16.msra.mxu0 %v4312_v0  ;;  %v398_v0 = vld [vmem:[%s5000_s28 + $0x308] sm:$0xff]  ;;  %v415_v52 = vld [vmem:[%s5000_s28 + $0x390] sm:$0xff] }
  0xcc   : > { %2401 = vmatpush1.bf16.msra.mxu1 %v4315_v3  ;;  %2289 = vmatprep.subr.bf16.mxu0 %v4320_v8  ;;  %v406_v3 = vld [vmem:[%s5000_s28 + $0x348] sm:$0xff]  ;;  %v4350_v8 = vld [vmem:[#allocation5 + $0x584] ss:$16 sps:$4 sm:$0xff]  }
  0xcd   : > { %2402 = vmatprep.subr.bf16.mxu1 %v4323_v9  ;;  %v4353_v9 = vld [vmem:[#allocation5 + $0x784] ss:$16 sps:$4 sm:$0xff]  }
  0xce   : > { %2114 = vmatmul.mubr.bf16.gmra.mxu0 %v5090_v14  ;;  %v423_v55 = vld [vmem:[%s5000_s28 + $0x3d0] sm:$0xff] }
  0xcf   : > { %2227 = vmatmul.mubr.bf16.gmra.mxu1 %v5092_v15  ;;  %2290 = vmatpush1.bf16.msra.mxu0 %v4318_v10  ;;  %v4348_v10 = vld [vmem:[#allocation5 + $0x580] ss:$16 sps:$4 sm:$0xff]  }
  0xd0   : > { %2403 = vmatpush1.bf16.msra.mxu1 %v4321_v11  ;;  %2291 = vmatprep.subr.bf16.mxu0 %v4326_v20  ;;  %v5136_v11 = vpack.c.bf16 %v406_v3, %v398_v0  ;;  %v399_v20 = vld [vmem:[%s5000_s28 + $0x310] sm:$0xff]  ;;  %v5172_v3 = vpack.c.bf16 %v423_v55, %v415_v52  ;;  %v4384_v52 = vld [vmem:[#allocation5 + $0xc8] ss:$16 sps:$4 sm:$0xff]  }
  0xd1   : > { %2404 = vmatprep.subr.bf16.mxu1 %v4329_v21  ;;  %2123 = vmatprep.mubr.bf16.mxu0 %v5096_v25  ;;  %v407_v21 = vld [vmem:[%s5000_s28 + $0x350] sm:$0xff] }
  0xd2   : > { %2236 = vmatprep.mubr.bf16.mxu1 %v5098_v26 }
  0xd3   : > { %2292 = vmatpush1.bf16.msra.mxu0 %v4324_v22  ;;  %v4356_v22 = vld [vmem:[#allocation5 + $0x564] ss:$16 sps:$4 sm:$0xff]  }
  0xd4   : > { %2405 = vmatpush1.bf16.msra.mxu1 %v4327_v27  ;;  %2293 = vmatprep.subr.bf16.mxu0 %v4332_v32  ;;  %v4359_v27 = vld [vmem:[#allocation5 + $0x764] ss:$16 sps:$4 sm:$0xff]   ;;  %v5150_v32 = vpack.c.bf16 %v405_v19, %v397_v18  ;;  %v5178_v18 = vpack.c.bf16 %v316_v7, %v308_v6  ;;  %v4375_v19 = vld [vmem:[#allocation5 + $0x700] ss:$16 sps:$4 sm:$0xff]   ;;  %v4392_v6 = vld [vmem:[#allocation5 + $0xac] ss:$16 sps:$4 sm:$0xff]  }
  0xd5   : > { %2406 = vmatprep.subr.bf16.mxu1 %v4335_v33  ;;  %v5152_v33 = vpack.c.bf16 %v407_v21, %v399_v20  ;;  %v305_v20 = vld [vmem:[%s5000_s28 + $0x20] sm:$0xff]  ;;  %v4395_v7 = vld [vmem:[#allocation5 + $0x2ac] ss:$16 sps:$4 sm:$0xff]  }
  0xd6   : > { %2124 = vmatmul.mubr.bf16.gmra.mxu0 %v5110_v40  ;;  %v313_v21 = vld [vmem:[%s5000_s28 + $0x60] sm:$0xff] }
  0xd7   : > { %2237 = vmatmul.mubr.bf16.gmra.mxu1 %v5112_v41  ;;  %2294 = vmatpush2.bf16.msra.mxu0 %v4330_v34  ;;  %v416_v34 = vld [vmem:[%s5000_s28 + $0x398] sm:$0xff] }
  0xd8   : > { %2407 = vmatpush2.bf16.msra.mxu1 %v4333_v35  ;;  %2295 = vmatprep.subr.bf16.mxu0 %v4338_v46  ;;  %v424_v35 = vld [vmem:[%s5000_s28 + $0x3d8] sm:$0xff] }
  0xd9   : > { %2408 = vmatprep.subr.bf16.mxu1 %v4341_v47  ;;  %2133 = vmatprep.mubr.bf16.mxu0 %v5116_v49  ;;  %v5158_v46 = vpack.c.bf16 %v424_v35, %v416_v34  ;;  %v4363_v47 = vld [vmem:[#allocation5 + $0x740] ss:$16 sps:$4 sm:$0xff]   ;;  %v322_v34 = vld [vmem:[%s5000_s28 + $0xa8] sm:$0xff] }
  0xda   : > { %2246 = vmatprep.mubr.bf16.mxu1 %v5118_v50  ;;  %v330_v35 = vld [vmem:[%s5000_s28 + $0xe8] sm:$0xff] }
  0xdb   : > { %2296 = vmatpush2.bf16.msra.mxu0 %v4336_v48  ;;  %v413_v48 = vld [vmem:[%s5000_s28 + $0x380] sm:$0xff]  ;;  %v5196_v55 = vpack.c.bf16 %v330_v35, %v322_v34  ;;  %v4399_v35 = vld [vmem:[#allocation5 + $0x288] ss:$16 sps:$4 sm:$0xff]  }
  0xdc   : > { %2409 = vmatpush2.bf16.msra.mxu1 %v4339_v51  ;;  %2297 = vmatprep.subr.bf16.mxu0 %v4344_v60  ;;  %v421_v51 = vld [vmem:[%s5000_s28 + $0x3c0] sm:$0xff] }
  0xdd   : > { %2410 = vmatprep.subr.bf16.mxu1 %v4347_v61  ;;  %v4366_v60 = vld [vmem:[#allocation5 + $0x520] ss:$16 sps:$4 sm:$0xff]   ;;  %v5170_v0 = vpack.c.bf16 %v421_v51, %v413_v48  ;;  %v4386_v48 = vld [vmem:[#allocation5 + $0xcc] ss:$16 sps:$4 sm:$0xff]  }
  0xde   : > { %2134 = vmatmul.mubr.bf16.gmra.mxu0 %v5130_v4  ;;  %v4369_v61 = vld [vmem:[#allocation5 + $0x720] ss:$16 sps:$4 sm:$0xff]   ;;  %v4389_v51 = vld [vmem:[#allocation5 + $0x2cc] ss:$16 sps:$4 sm:$0xff]  }
  0xdf   : > { %2247 = vmatmul.mubr.bf16.gmra.mxu1 %v5132_v5  ;;  %2298 = vmatpush2.bf16.msra.mxu0 %v4342_v62  ;;  %v306_v62 = vld [vmem:[%s5000_s28 + $0x28] sm:$0xff] }
  0xe0   : > { %2411 = vmatpush2.bf16.msra.mxu1 %v4345_v63  ;;  %2299 = vmatprep.subr.bf16.mxu0 %v4350_v8  ;;  %v314_v63 = vld [vmem:[%s5000_s28 + $0x68] sm:$0xff]  ;;  %v4374_v8 = vld [vmem:[#allocation5 + $0x504] ss:$16 sps:$4 sm:$0xff]  }
  0xe1   : > { %2412 = vmatprep.subr.bf16.mxu1 %v4353_v9  ;;  %2143 = vmatprep.mubr.bf16.mxu0 %v5136_v11  ;;  %v4377_v9 = vld [vmem:[#allocation5 + $0x704] ss:$16 sps:$4 sm:$0xff]  }
  0xe2   : > { %2256 = vmatprep.mubr.bf16.mxu1 %v5138_v12 }
  0xe3   : > { %2300 = vmatpush2.bf16.msra.mxu0 %v4348_v10  ;;  %v4372_v10 = vld [vmem:[#allocation5 + $0x500] ss:$16 sps:$4 sm:$0xff]  }
  0xe4   : > { %2413 = vmatpush2.bf16.msra.mxu1 %v4351_v13  ;;  %2301 = vmatprep.subr.bf16.mxu0 %v4356_v22  ;;  %v5176_v13 = vpack.c.bf16 %v314_v63, %v306_v62  ;;  %v307_v22 = vld [vmem:[%s5000_s28 + $0x30] sm:$0xff] }
  0xe5   : > { %2414 = vmatprep.subr.bf16.mxu1 %v4359_v27  ;;  %v315_v27 = vld [vmem:[%s5000_s28 + $0x70] sm:$0xff] }
  0xe6   : > { %2144 = vmatmul.mubr.bf16.gmra.mxu0 %v5150_v32  ;;  %v323_v62 = vld [vmem:[%s5000_s28 + $0xb0] sm:$0xff] }
  0xe7   : > { %2257 = vmatmul.mubr.bf16.gmra.mxu1 %v5152_v33  ;;  %2302 = vmatpush2.bf16.msra.mxu0 %v4354_v28  ;;  %v4380_v28 = vld [vmem:[#allocation5 + $0xec] ss:$16 sps:$4 sm:$0xff]   ;;  %v331_v63 = vld [vmem:[%s5000_s28 + $0xf0] sm:$0xff] }
  0xe8   : > { %2415 = vmatpush2.bf16.msra.mxu1 %v4357_v29  ;;  %2303 = vmatprep.subr.bf16.mxu0 %v4362_v38  ;;  %v4383_v29 = vld [vmem:[#allocation5 + $0x2ec] ss:$16 sps:$4 sm:$0xff]   ;;  %v5190_v38 = vpack.c.bf16 %v313_v21, %v305_v20  ;;  %v5212_v21 = vpack.c.bf16 %v331_v63, %v323_v62 }
  0xe9   : > { %2416 = vmatprep.subr.bf16.mxu1 %v4365_v39  ;;  %2153 = vmatprep.mubr.bf16.mxu0 %v5156_v45  ;;  %v5192_v39 = vpack.c.bf16 %v315_v27, %v307_v22  ;;  %v340_v22 = vld [vmem:[%s5000_s28 + $0x138] sm:$0xff]  ;;  %v354_v62 = vld [vmem:[%s5000_s28 + $0x1a8] sm:$0xff] }
  0xea   : > { %2266 = vmatprep.mubr.bf16.mxu1 %v5158_v46  ;;  %v348_v27 = vld [vmem:[%s5000_s28 + $0x178] sm:$0xff]  ;;  %v362_v63 = vld [vmem:[%s5000_s28 + $0x1e8] sm:$0xff] }
  0xeb   : > { %2304 = vmatpush2.bf16.msra.mxu0 %v4360_v42  ;;  %v324_v42 = vld [vmem:[%s5000_s28 + $0xb8] sm:$0xff]  ;;  %v5218_v34 = vpack.c.bf16 %v348_v27, %v340_v22  ;;  %v5236_v27 = vpack.c.bf16 %v362_v63, %v354_v62  ;;  %v370_v62 = vld [vmem:[%s5000_s28 + $0x228] sm:$0xff] }
  0xec   : > { %2417 = vmatpush2.bf16.msra.mxu1 %v4363_v47  ;;  %2305 = vmatprep.subr.bf16.mxu0 %v4368_v56  ;;  %v332_v47 = vld [vmem:[%s5000_s28 + $0xf8] sm:$0xff]  ;;  %v378_v63 = vld [vmem:[%s5000_s28 + $0x268] sm:$0xff] }
  0xed   : > { %2418 = vmatprep.subr.bf16.mxu1 %v4371_v57  ;;  %v5198_v56 = vpack.c.bf16 %v332_v47, %v324_v42  ;;  %v4387_v57 = vld [vmem:[#allocation5 + $0x2c8] ss:$16 sps:$4 sm:$0xff]   ;;  %v337_v42 = vld [vmem:[%s5000_s28 + $0x120] sm:$0xff]  ;;  %5904 = vst [vmem:[#allocation18_spill] sm:$0xff] %v5236_v27 }
  0xee   : > { %2154 = vmatmul.mubr.bf16.gmra.mxu0 %v5170_v0  ;;  %v345_v47 = vld [vmem:[%s5000_s28 + $0x160] sm:$0xff]  ;;  %v4408_v22 = vld [vmem:[#allocation5 + $0x48] ss:$16 sps:$4 sm:$0xff]  }
  0xef   : > { %2267 = vmatmul.mubr.bf16.gmra.mxu1 %v5172_v3  ;;  %2306 = vmatpush2.bf16.msra.mxu0 %v4366_v60  ;;  %v321_v60 = vld [vmem:[%s5000_s28 + $0xa0] sm:$0xff] }
  0xf0   : > { %2419 = vmatpush2.bf16.msra.mxu1 %v4369_v61  ;;  %2307 = vmatprep.subr.bf16.mxu0 %v4374_v8  ;;  %v329_v61 = vld [vmem:[%s5000_s28 + $0xe0] sm:$0xff]  ;;  %v4390_v8 = vld [vmem:[#allocation5 + $0xa8] ss:$16 sps:$4 sm:$0xff]  }
  0xf1   : > { %2420 = vmatprep.subr.bf16.mxu1 %v4377_v9  ;;  %2309 = vmatprep.mubr.bf16.mxu0 %v5176_v13  ;;  %v4393_v9 = vld [vmem:[#allocation5 + $0x2a8] ss:$16 sps:$4 sm:$0xff]   ;;  %v5210_v20 = vpack.c.bf16 %v329_v61, %v321_v60 }
  0xf2   : > { %2422 = vmatprep.mubr.bf16.mxu1 %v5178_v18  ;;  %v4402_v60 = vld [vmem:[#allocation5 + $0x68] ss:$16 sps:$4 sm:$0xff]  }
  0xf3   : > { %2308 = vmatpush2.bf16.msra.mxu0 %v4372_v10  ;;  %v338_v10 = vld [vmem:[%s5000_s28 + $0x128] sm:$0xff] }
  0xf4   : > { %2421 = vmatpush2.bf16.msra.mxu1 %v4375_v19  ;;  %2503 = vmatprep.subr.bf16.mxu0 %v4380_v28  ;;  %v346_v19 = vld [vmem:[%s5000_s28 + $0x168] sm:$0xff] }
  0xf5   : > { %2616 = vmatprep.subr.bf16.mxu1 %v4383_v29  ;;  %v4398_v28 = vld [vmem:[#allocation5 + $0x8c] ss:$16 sps:$4 sm:$0xff]   ;;  %v4405_v61 = vld [vmem:[#allocation5 + $0x268] ss:$16 sps:$4 sm:$0xff]  }
  0xf6   : > { %2310 = vmatmul.mubr.bf16.vlgmr.msra.gmra.mxu0 %v5190_v38  ;;  %v4401_v29 = vld [vmem:[#allocation5 + $0x28c] ss:$16 sps:$4 sm:$0xff]  }
  0xf7   : > { %2423 = vmatmul.mubr.bf16.vlgmr.msra.gmra.mxu1 %v5192_v39  ;;  %2504 = vmatpush1.bf16.msra.mxu0 %v4378_v30  ;;  %v4396_v30 = vld [vmem:[#allocation5 + $0x88] ss:$16 sps:$4 sm:$0xff]  }
  0xf8   : > { %2617 = vmatpush1.bf16.msra.mxu1 %v4381_v31  ;;  %2505 = vmatprep.subr.bf16.mxu0 %v4386_v48  ;;  %v5216_v31 = vpack.c.bf16 %v346_v19, %v338_v10  ;;  %v339_v48 = vld [vmem:[%s5000_s28 + $0x130] sm:$0xff]  ;;  %v4410_v10 = vld [vmem:[#allocation5 + $0x4c] ss:$16 sps:$4 sm:$0xff]  }
  0xf9   : > { %2618 = vmatprep.subr.bf16.mxu1 %v4389_v51  ;;  %2319 = vmatprep.mubr.bf16.mxu0 %v5196_v55  ;;  %v347_v51 = vld [vmem:[%s5000_s28 + $0x170] sm:$0xff]  ;;  %v4413_v19 = vld [vmem:[#allocation5 + $0x24c] ss:$16 sps:$4 sm:$0xff]  }
  0xfa   : > { %2432 = vmatprep.mubr.bf16.mxu1 %v5198_v56 }
  0xfb   : > { %2506 = vmatpush1.bf16.msra.mxu0 %v4384_v52  ;;  %v4404_v52 = vld [vmem:[#allocation5 + $0x6c] ss:$16 sps:$4 sm:$0xff]  }
  0xfc   : > { %2619 = vmatpush1.bf16.msra.mxu1 %v4387_v57  ;;  %2507 = vmatprep.subr.bf16.mxu0 %v4392_v6  ;;  %v4407_v57 = vld [vmem:[#allocation5 + $0x26c] ss:$16 sps:$4 sm:$0xff]   ;;  %v5230_v6 = vpack.c.bf16 %v345_v47, %v337_v42  ;;  %v361_v42 = vld [vmem:[%s5000_s28 + $0x1e0] sm:$0xff]  ;;  %v363_v47 = vld [vmem:[%s5000_s28 + $0x1f0] sm:$0xff] }
  0xfd   : > { %2620 = vmatprep.subr.bf16.mxu1 %v4395_v7  ;;  %v5232_v7 = vpack.c.bf16 %v347_v51, %v339_v48  ;;  %v4416_v48 = vld [vmem:[#allocation5 + $0x2c] ss:$16 sps:$4 sm:$0xff]  }
  0xfe   : > { %2320 = vmatmul.mubr.bf16.gmra.mxu0 %v5210_v20  ;;  %5902 = vst [vmem:[#allocation16_spill] sm:$0xff] %v5230_v6  ;;  %v4419_v51 = vld [vmem:[#allocation5 + $0x22c] ss:$16 sps:$4 sm:$0xff]  }
  0xff   : > { %2433 = vmatmul.mubr.bf16.gmra.mxu1 %v5212_v21  ;;  %2508 = vmatpush1.bf16.msra.mxu0 %v4390_v8  ;;  %5903 = vst [vmem:[#allocation17_spill] sm:$0xff] %v5232_v7  ;;  %v356_v8 = vld [vmem:[%s5000_s28 + $0x1b8] sm:$0xff] }
 0x100   : > { %2621 = vmatpush1.bf16.msra.mxu1 %v4393_v9  ;;  %2509 = vmatprep.subr.bf16.mxu0 %v4398_v28  ;;  %v364_v9 = vld [vmem:[%s5000_s28 + $0x1f8] sm:$0xff] }
 0x101   : > { %2622 = vmatprep.subr.bf16.mxu1 %v4401_v29  ;;  %2329 = vmatprep.mubr.bf16.mxu0 %v5216_v31  ;;  %v5238_v28 = vpack.c.bf16 %v364_v9, %v356_v8  ;;  %v4411_v29 = vld [vmem:[#allocation5 + $0x248] ss:$16 sps:$4 sm:$0xff]  }
 0x102   : > { %2442 = vmatprep.mubr.bf16.mxu1 %v5218_v34  ;;  %v380_v9 = vld [vmem:[%s5000_s28 + $0x278] sm:$0xff] }
 0x103   : > { %2510 = vmatpush1.bf16.msra.mxu0 %v4396_v30  ;;  %5905 = vst [vmem:[#allocation19_spill] sm:$0xff] %v5238_v28  ;;  %v353_v30 = vld [vmem:[%s5000_s28 + $0x1a0] sm:$0xff] }
 0x104   : > { %2623 = vmatpush1.bf16.msra.mxu1 %v4399_v35  ;;  %2511 = vmatprep.subr.bf16.mxu0 %v4404_v52  ;;  %v355_v35 = vld [vmem:[%s5000_s28 + $0x1b0] sm:$0xff]  ;;  %v4414_v52 = vld [vmem:[#allocation5 + $0x28] ss:$16 sps:$4 sm:$0xff]   ;;  %v5250_v8 = vpack.c.bf16 %v361_v42, %v353_v30  ;;  %v377_v42 = vld [vmem:[%s5000_s28 + $0x260] sm:$0xff] }
 0x105   : > { %2624 = vmatprep.subr.bf16.mxu1 %v4407_v57  ;;  %v4417_v57 = vld [vmem:[#allocation5 + $0x228] ss:$16 sps:$4 sm:$0xff]  }
 0x106   : > { %2330 = vmatmul.mubr.bf16.gmra.mxu0 %v5230_v6  ;;  %5906 = vst [vmem:[#allocation20_spill] sm:$0xff] %v5250_v8  ;;  %v4423_v30 = vld [vmem:[#allocation5 + $0x208] ss:$16 sps:$4 sm:$0xff]  }
 0x107   : > { %2443 = vmatmul.mubr.bf16.gmra.mxu1 %v5232_v7  ;;  %2512 = vmatpush1.bf16.msra.mxu0 %v4402_v60  ;;  %v5252_v60 = vpack.c.bf16 %v363_v47, %v355_v35  ;;  %v379_v35 = vld [vmem:[%s5000_s28 + $0x270] sm:$0xff]  ;;  %v4428_v47 = vld [vmem:[#allocation5 + $0x1ec] ss:$16 sps:$4 sm:$0xff]  }
 0x108   : > { %2625 = vmatpush1.bf16.msra.mxu1 %v4405_v61  ;;  %2513 = vmatprep.subr.bf16.mxu0 %v4410_v10  ;;  %v372_v61 = vld [vmem:[%s5000_s28 + $0x238] sm:$0xff] }
 0x109   : > { %2626 = vmatprep.subr.bf16.mxu1 %v4413_v19  ;;  %2339 = vmatprep.mubr.bf16.mxu0 %v5236_v27  ;;  %5907 = vst [vmem:[#allocation21_spill] sm:$0xff] %v5252_v60  ;;  %v4422_v10 = vld [vmem:[#allocation5 + $0xc] ss:$16 sps:$4 sm:$0xff]   ;;  %v5256_v27 = vpack.c.bf16 %v378_v63, %v370_v62  ;;  %v5258_v7 = vpack.c.bf16 %v380_v9, %v372_v61  ;;  %v4429_v62 = vld [vmem:[#allocation5 + $0x3e8] ss:$16 sps:$4 sm:$0xff]  }
 0x10a   : > { %2452 = vmatprep.mubr.bf16.mxu1 %v5238_v28  ;;  %v4425_v19 = vld [vmem:[#allocation5 + $0x20c] ss:$16 sps:$4 sm:$0xff]   ;;  %v4420_v28 = vld [vmem:[#allocation5 + $0x8] ss:$16 sps:$4 sm:$0xff]  }
 0x10b   : > { %2514 = vmatpush1.bf16.msra.mxu0 %v4408_v22  ;;  %5908 = vst [vmem:[#allocation22_spill] sm:$0xff] %v5256_v27  ;;  %5909 = vst [vmem:[#allocation23_spill] sm:$0xff] %v5258_v7  ;;  %v369_v22 = vld [vmem:[%s5000_s28 + $0x220] sm:$0xff]  ;;  %v386_v63 = vld [vmem:[%s5000_s28 + $0x2a8] sm:$0xff] }
 0x10c   : > { %2627 = vmatpush1.bf16.msra.mxu1 %v4411_v29  ;;  %2515 = vmatprep.subr.bf16.mxu0 %v4416_v48  ;;  %v371_v29 = vld [vmem:[%s5000_s28 + $0x230] sm:$0xff]  ;;  %v4431_v48 = vld [vmem:[#allocation5 + $0x3ec] ss:$16 sps:$4 sm:$0xff]   ;;  %v5270_v9 = vpack.c.bf16 %v377_v42, %v369_v22  ;;  %v4435_v22 = vld [vmem:[#allocation5 + $0x3c8] ss:$16 sps:$4 sm:$0xff]  }
 0x10d   : > { %2628 = vmatprep.subr.bf16.mxu1 %v4419_v51  ;;  %v4426_v51 = vld [vmem:[#allocation5 + $0x1e8] ss:$16 sps:$4 sm:$0xff]   ;;  %v393_v42 = vld [vmem:[%s5000_s28 + $0x2e0] sm:$0xff] }
 0x10e   : > { %2340 = vmatmul.mubr.bf16.gmra.mxu0 %v5250_v8  ;;  %v394_v61 = vld [vmem:[%s5000_s28 + $0x2e8] sm:$0xff]  ;;  %5910 = vst [vmem:[#allocation24_spill] sm:$0xff] %v5270_v9 }
 0x10f   : > { %2453 = vmatmul.mubr.bf16.gmra.mxu1 %v5252_v60  ;;  %2516 = vmatpush1.bf16.msra.mxu0 %v4414_v52  ;;  %v5272_v52 = vpack.c.bf16 %v379_v35, %v371_v29  ;;  %v396_v60 = vld [vmem:[%s5000_s28 + $0x2f8] sm:$0xff]  ;;  %v395_v29 = vld [vmem:[%s5000_s28 + $0x2f0] sm:$0xff] }
 0x110   : > { %2629 = vmatpush1.bf16.msra.mxu1 %v4417_v57  ;;  %2517 = vmatprep.subr.bf16.mxu0 %v4422_v10  ;;  %v388_v57 = vld [vmem:[%s5000_s28 + $0x2b8] sm:$0xff] }
 0x111   : > { %2630 = vmatprep.subr.bf16.mxu1 %v4425_v19  ;;  %2349 = vmatprep.mubr.bf16.mxu0 %v5256_v27  ;;  %5911 = vst [vmem:[#allocation25_spill] sm:$0xff] %v5272_v52  ;;  %v4434_v10 = vld [vmem:[#allocation5 + $0x1cc] ss:$16 sps:$4 sm:$0xff]   ;;  %v5276_v27 = vpack.c.bf16 %v394_v61, %v386_v63  ;;  %v5278_v8 = vpack.c.bf16 %v396_v60, %v388_v57 }
 0x112   : > { %2462 = vmatprep.mubr.bf16.mxu1 %v5258_v7  ;;  %v4437_v19 = vld [vmem:[#allocation5 + $0x3cc] ss:$16 sps:$4 sm:$0xff]   ;;  %v4432_v7 = vld [vmem:[#allocation5 + $0x1c8] ss:$16 sps:$4 sm:$0xff]  }
 0x113   : > { %2518 = vmatpush1.bf16.msra.mxu0 %v4420_v28  ;;  %5912 = vst [vmem:[#allocation26_spill] sm:$0xff] %v5276_v27  ;;  %5913 = vst [vmem:[#allocation27_spill] sm:$0xff] %v5278_v8  ;;  %v385_v28 = vld [vmem:[%s5000_s28 + $0x2a0] sm:$0xff]  ;;  %v4440_v35 = vld [vmem:[#allocation5 + $0x1ac] ss:$16 sps:$4 sm:$0xff]  }
 0x114   : > { %2631 = vmatpush1.bf16.msra.mxu1 %v4423_v30  ;;  %2519 = vmatprep.subr.bf16.mxu0 %v4428_v47  ;;  %v387_v30 = vld [vmem:[%s5000_s28 + $0x2b0] sm:$0xff]  ;;  %v4443_v60 = vld [vmem:[#allocation5 + $0x3ac] ss:$16 sps:$4 sm:$0xff]   ;;  %v4438_v47 = vld [vmem:[#allocation5 + $0x1a8] ss:$16 sps:$4 sm:$0xff]  }
 0x115   : > { %2632 = vmatprep.subr.bf16.mxu1 %v4431_v48  ;;  %v4441_v48 = vld [vmem:[#allocation5 + $0x3a8] ss:$16 sps:$4 sm:$0xff]  }
 0x116   : > { %2350 = vmatmul.mubr.bf16.gmra.mxu0 %v5270_v9  ;;  %v402_v63 = vld [vmem:[%s5000_s28 + $0x328] sm:$0xff]  ;;  %v404_v57 = vld [vmem:[%s5000_s28 + $0x338] sm:$0xff] }
 0x117   : > { %2463 = vmatmul.mubr.bf16.gmra.mxu1 %v5272_v52  ;;  %2520 = vmatpush2.bf16.msra.mxu0 %v4426_v51  ;;  %v410_v61 = vld [vmem:[%s5000_s28 + $0x368] sm:$0xff]  ;;  %v5290_v51 = vpack.c.bf16 %v393_v42, %v385_v28  ;;  %v412_v52 = vld [vmem:[%s5000_s28 + $0x378] sm:$0xff]  ;;  %v401_v28 = vld [vmem:[%s5000_s28 + $0x320] sm:$0xff] }
 0x118   : > { %2633 = vmatpush2.bf16.msra.mxu1 %v4429_v62  ;;  %2521 = vmatprep.subr.bf16.mxu0 %v4434_v10  ;;  %v5292_v62 = vpack.c.bf16 %v395_v29, %v387_v30  ;;  %v4446_v10 = vld [vmem:[#allocation5 + $0x18c] ss:$16 sps:$4 sm:$0xff]   ;;  %v5296_v9 = vpack.c.bf16 %v410_v61, %v402_v63  ;;  %v5298_v6 = vpack.c.bf16 %v412_v52, %v404_v57  ;;  %v409_v42 = vld [vmem:[%s5000_s28 + $0x360] sm:$0xff]  ;;  %v4450_v52 = vld [vmem:[#allocation5 + $0x168] ss:$16 sps:$4 sm:$0xff]  }
 0x119   : > { %2634 = vmatprep.subr.bf16.mxu1 %v4437_v19  ;;  %2359 = vmatprep.mubr.bf16.mxu0 %v5276_v27  ;;  %5914 = vst [vmem:[#allocation28_spill] sm:$0xff] %v5290_v51  ;;  %v4449_v19 = vld [vmem:[#allocation5 + $0x38c] ss:$16 sps:$4 sm:$0xff]   ;;  %v4447_v27 = vld [vmem:[#allocation5 + $0x388] ss:$16 sps:$4 sm:$0xff]   ;;  %v5310_v61 = vpack.c.bf16 %v409_v42, %v401_v28  ;;  %v417_v28 = vld [vmem:[%s5000_s28 + $0x3a0] sm:$0xff] }
 0x11a   : > { %2472 = vmatprep.mubr.bf16.mxu1 %v5278_v8  ;;  %5915 = vst [vmem:[#allocation29_spill] sm:$0xff] %v5292_v62  ;;  %v4444_v8 = vld [vmem:[#allocation5 + $0x188] ss:$16 sps:$4 sm:$0xff]   ;;  %5916 = vst [vmem:[#allocation30_spill] sm:$0xff] %v5296_v9  ;;  %v4452_v30 = vld [vmem:[#allocation5 + $0x16c] ss:$16 sps:$4 sm:$0xff]  }
 0x11b   : > { %2522 = vmatpush2.bf16.msra.mxu0 %v4432_v7  ;;  %5917 = vst [vmem:[#allocation31_spill] sm:$0xff] %v5298_v6  ;;  %v403_v7 = vld [vmem:[%s5000_s28 + $0x330] sm:$0xff]  ;;  %v4455_v29 = vld [vmem:[#allocation5 + $0x36c] ss:$16 sps:$4 sm:$0xff]   ;;  %v425_v42 = vld [vmem:[%s5000_s28 + $0x3e0] sm:$0xff] }
 0x11c   : > { %2635 = vmatpush2.bf16.msra.mxu1 %v4435_v22  ;;  %2523 = vmatprep.subr.bf16.mxu0 %v4440_v35  ;;  %v411_v22 = vld [vmem:[%s5000_s28 + $0x370] sm:$0xff]  ;;  %v4453_v35 = vld [vmem:[#allocation5 + $0x368] ss:$16 sps:$4 sm:$0xff]  }
 0x11d   : > { %2636 = vmatprep.subr.bf16.mxu1 %v4443_v60  ;;  %v418_v60 = vld [vmem:[%s5000_s28 + $0x3a8] sm:$0xff]  ;;  %v5312_v57 = vpack.c.bf16 %v411_v22, %v403_v7  ;;  %v419_v7 = vld [vmem:[%s5000_s28 + $0x3b0] sm:$0xff] }
 0x11e   : > { %2360 = vmatmul.mubr.bf16.gmra.mxu0 %v5290_v51  ;;  %v426_v63 = vld [vmem:[%s5000_s28 + $0x3e8] sm:$0xff]  ;;  %v427_v22 = vld [vmem:[%s5000_s28 + $0x3f0] sm:$0xff] }
 0x11f   : > { %2473 = vmatmul.mubr.bf16.gmra.mxu1 %v5292_v62  ;;  %2524 = vmatpush2.bf16.msra.mxu0 %v4438_v47  ;;  %v420_v47 = vld [vmem:[%s5000_s28 + $0x3b8] sm:$0xff]  ;;  %v5316_v62 = vpack.c.bf16 %v426_v63, %v418_v60 }
 0x120   : > { %2637 = vmatpush2.bf16.msra.mxu1 %v4441_v48  ;;  %2525 = vmatprep.subr.bf16.mxu0 %v4446_v10  ;;  %v428_v48 = vld [vmem:[%s5000_s28 + $0x3f8] sm:$0xff] }
 0x121   : > { %2638 = vmatprep.subr.bf16.mxu1 %v4449_v19  ;;  %2369 = vmatprep.mubr.bf16.mxu0 %v5296_v9  ;;  %v4458_v10 = vld [vmem:[#allocation5 + $0x14c] ss:$16 sps:$4 sm:$0xff]   ;;  %v4459_v9 = vld [vmem:[#allocation5 + $0x348] ss:$16 sps:$4 sm:$0xff]   ;;  %v5318_v51 = vpack.c.bf16 %v428_v48, %v420_v47 }
 0x122   : > { %2482 = vmatprep.mubr.bf16.mxu1 %v5298_v6  ;;  %v4461_v19 = vld [vmem:[#allocation5 + $0x34c] ss:$16 sps:$4 sm:$0xff]   ;;  %v4456_v6 = vld [vmem:[#allocation5 + $0x148] ss:$16 sps:$4 sm:$0xff]  }
 0x123   : > { %2526 = vmatpush2.bf16.msra.mxu0 %v4444_v8  ;;  %v4467_v8 = vld [vmem:[#allocation5 + $0x32c] ss:$16 sps:$4 sm:$0xff]   ;;  %v4462_v60 = vld [vmem:[#allocation5 + $0x128] ss:$16 sps:$4 sm:$0xff]  }
 0x124   : > { %2639 = vmatpush2.bf16.msra.mxu1 %v4447_v27  ;;  %2527 = vmatprep.subr.bf16.mxu0 %v4452_v30  ;;  %v4464_v27 = vld [vmem:[#allocation5 + $0x12c] ss:$16 sps:$4 sm:$0xff]   ;;  %v5328_v30 = vpack.c.bf16 %v425_v42, %v417_v28  ;;  %v4465_v63 = vld [vmem:[#allocation5 + $0x328] ss:$16 sps:$4 sm:$0xff]  }
 0x125   : > { %2640 = vmatprep.subr.bf16.mxu1 %v4455_v29  ;;  %v5330_v29 = vpack.c.bf16 %v427_v22, %v419_v7  ;;  %v4470_v47 = vld [vmem:[#allocation5 + $0x10c] ss:$16 sps:$4 sm:$0xff]   ;;  %v4471_v48 = vld [vmem:[#allocation5 + $0x308] ss:$16 sps:$4 sm:$0xff]  }
 0x126   : > { %2370 = vmatmul.mubr.bf16.gmra.mxu0 %v5310_v61  ;;  %v4482_v28 = vld [vmem:[#allocation5 + $0x4cc] ss:$16 sps:$4 sm:$0xff]   ;;  %v4480_v7 = vld [vmem:[#allocation5 + $0x4c8] ss:$16 sps:$4 sm:$0xff]  }
 0x127   : > { %2483 = vmatmul.mubr.bf16.gmra.mxu1 %v5312_v57  ;;  %2528 = vmatpush2.bf16.msra.mxu0 %v4450_v52  ;;  %v4473_v52 = vld [vmem:[#allocation5 + $0x30c] ss:$16 sps:$4 sm:$0xff]   ;;  %v4483_v22 = vld [vmem:[#allocation5 + $0x6c8] ss:$16 sps:$4 sm:$0xff]  }
 0x128   : > { %2641 = vmatpush2.bf16.msra.mxu1 %v4453_v35  ;;  %2529 = vmatprep.subr.bf16.mxu0 %v4458_v10  ;;  %v4468_v35 = vld [vmem:[#allocation5 + $0x108] ss:$16 sps:$4 sm:$0xff]   ;;  %v4476_v10 = vld [vmem:[#allocation5 + $0x4ec] ss:$16 sps:$4 sm:$0xff]  }
 0x129   : > { %2642 = vmatprep.subr.bf16.mxu1 %v4461_v19  ;;  %2379 = vmatprep.mubr.bf16.mxu0 %v5316_v62  ;;  %v4479_v19 = vld [vmem:[#allocation5 + $0x6ec] ss:$16 sps:$4 sm:$0xff]  }
 0x12a   : > { %2492 = vmatprep.mubr.bf16.mxu1 %v5318_v51  ;;  %v4485_v42 = vld [vmem:[#allocation5 + $0x6cc] ss:$16 sps:$4 sm:$0xff]  }
 0x12b   : > { %2530 = vmatpush2.bf16.msra.mxu0 %v4456_v6  ;;  %v4474_v6 = vld [vmem:[#allocation5 + $0x4e8] ss:$16 sps:$4 sm:$0xff]  }
 0x12c   : > { %2643 = vmatpush2.bf16.msra.mxu1 %v4459_v9  ;;  %2531 = vmatprep.subr.bf16.mxu0 %v4464_v27  ;;  %v4477_v9 = vld [vmem:[#allocation5 + $0x6e8] ss:$16 sps:$4 sm:$0xff]   ;;  %v4488_v27 = vld [vmem:[#allocation5 + $0x4ac] ss:$16 sps:$4 sm:$0xff]  }
 0x12d   : > { %2644 = vmatprep.subr.bf16.mxu1 %v4467_v8  ;;  %v4489_v8 = vld [vmem:[#allocation5 + $0x6a8] ss:$16 sps:$4 sm:$0xff]  }
 0x12e   : > { %2380 = vmatmul.mubr.bf16.gmra.mxu0 %v5328_v30 }
 0x12f   : > { %2493 = vmatmul.mubr.bf16.gmra.mxu1 %v5330_v29  ;;  %2532 = vmatpush2.bf16.msra.mxu0 %v4462_v60  ;;  %v4494_v60 = vld [vmem:[#allocation5 + $0x48c] ss:$16 sps:$4 sm:$0xff]  }
 0x130   : > { %2645 = vmatpush2.bf16.msra.mxu1 %v4465_v63  ;;  %2533 = vmatprep.subr.bf16.mxu0 %v4470_v47  ;;  %v4495_v63 = vld [vmem:[#allocation5 + $0x688] ss:$16 sps:$4 sm:$0xff]   ;;  %v4500_v47 = vld [vmem:[#allocation5 + $0x46c] ss:$16 sps:$4 sm:$0xff]  }
 0x131   : > { %2646 = vmatprep.subr.bf16.mxu1 %v4473_v52  ;;  %2535 = vmatprep.mubr.bf16.mxu0 %v5018_v53  ;;  %v4491_v53 = vld [vmem:[#allocation5 + $0x6ac] ss:$16 sps:$4 sm:$0xff]   ;;  %v4501_v52 = vld [vmem:[#allocation5 + $0x668] ss:$16 sps:$4 sm:$0xff]  }
 0x132   : > { %2648 = vmatprep.mubr.bf16.mxu1 %v5020_v54  ;;  %v4486_v54 = vld [vmem:[#allocation5 + $0x4a8] ss:$16 sps:$4 sm:$0xff]  }
 0x133   : > { %2534 = vmatpush2.bf16.msra.mxu0 %v4468_v35  ;;  %v4506_v35 = vld [vmem:[#allocation5 + $0x44c] ss:$16 sps:$4 sm:$0xff]  }
 0x134   : > { %2647 = vmatpush2.bf16.msra.mxu1 %v4471_v48  ;;  %2729 = vmatprep.subr.bf16.mxu0 %v4476_v10  ;;  %v4507_v48 = vld [vmem:[#allocation5 + $0x648] ss:$16 sps:$4 sm:$0xff]  }
 0x135   : > { %2842 = vmatprep.subr.bf16.mxu1 %v4479_v19  ;;  %v4510_v10 = vld [vmem:[#allocation5 + $0x428] ss:$16 sps:$4 sm:$0xff]  }
 0x136   : > { %2536 = vmatmul.mubr.bf16.vlgmr.msra.gmra.mxu0 %v5030_v16  ;;  %v4497_v16 = vld [vmem:[#allocation5 + $0x68c] ss:$16 sps:$4 sm:$0xff]   ;;  %v4513_v19 = vld [vmem:[#allocation5 + $0x628] ss:$16 sps:$4 sm:$0xff]  }
 0x137   : > { %2649 = vmatmul.mubr.bf16.vlgmr.msra.gmra.mxu1 %v5032_v17  ;;  %2730 = vmatpush1.bf16.msra.mxu0 %v4474_v6  ;;  %v4492_v17 = vld [vmem:[#allocation5 + $0x488] ss:$16 sps:$4 sm:$0xff]   ;;  %v4518_v6 = vld [vmem:[#allocation5 + $0x40c] ss:$16 sps:$4 sm:$0xff]  }
 0x138   : > { %2843 = vmatpush1.bf16.msra.mxu1 %v4477_v9  ;;  %2731 = vmatprep.subr.bf16.mxu0 %v4482_v28  ;;  %v4519_v9 = vld [vmem:[#allocation5 + $0x608] ss:$16 sps:$4 sm:$0xff]   ;;  %v4524_v28 = vld [vmem:[#allocation5 + $0x5ec] ss:$16 sps:$4 sm:$0xff]  }
 0x139   : > { %2844 = vmatprep.subr.bf16.mxu1 %v4485_v42  ;;  %2545 = vmatprep.mubr.bf16.mxu0 %v5036_v23  ;;  %v4503_v23 = vld [vmem:[#allocation5 + $0x66c] ss:$16 sps:$4 sm:$0xff]   ;;  %v4525_v42 = vld [vmem:[#allocation5 + $0x7e8] ss:$16 sps:$4 sm:$0xff]  }
 0x13a   : > { %2658 = vmatprep.mubr.bf16.mxu1 %v5038_v24  ;;  %v4498_v24 = vld [vmem:[#allocation5 + $0x468] ss:$16 sps:$4 sm:$0xff]  }
 0x13b   : > { %2732 = vmatpush1.bf16.msra.mxu0 %v4480_v7  ;;  %v4530_v7 = vld [vmem:[#allocation5 + $0x5cc] ss:$16 sps:$4 sm:$0xff]  }
 0x13c   : > { %2845 = vmatpush1.bf16.msra.mxu1 %v4483_v22  ;;  %2733 = vmatprep.subr.bf16.mxu0 %v4488_v27  ;;  %v4531_v22 = vld [vmem:[#allocation5 + $0x7c8] ss:$16 sps:$4 sm:$0xff]   ;;  %v4536_v27 = vld [vmem:[#allocation5 + $0x5ac] ss:$16 sps:$4 sm:$0xff]  }
 0x13d   : > { %2846 = vmatprep.subr.bf16.mxu1 %v4491_v53  ;;  %v4537_v53 = vld [vmem:[#allocation5 + $0x7a8] ss:$16 sps:$4 sm:$0xff]  }
 0x13e   : > { %2546 = vmatmul.mubr.bf16.gmra.mxu0 %v5050_v36  ;;  %v4509_v36 = vld [vmem:[#allocation5 + $0x64c] ss:$16 sps:$4 sm:$0xff]  }
 0x13f   : > { %2659 = vmatmul.mubr.bf16.gmra.mxu1 %v5052_v37  ;;  %2734 = vmatpush1.bf16.msra.mxu0 %v4486_v54  ;;  %v4504_v37 = vld [vmem:[#allocation5 + $0x448] ss:$16 sps:$4 sm:$0xff]   ;;  %v4542_v54 = vld [vmem:[#allocation5 + $0x58c] ss:$16 sps:$4 sm:$0xff]  }
 0x140   : > { %2847 = vmatpush1.bf16.msra.mxu1 %v4489_v8  ;;  %2735 = vmatprep.subr.bf16.mxu0 %v4494_v60  ;;  %v4545_v8 = vld [vmem:[#allocation5 + $0x78c] ss:$16 sps:$4 sm:$0xff]  }
 0x141   : > { %2848 = vmatprep.subr.bf16.mxu1 %v4497_v16  ;;  %2555 = vmatprep.mubr.bf16.mxu0 %v5056_v43  ;;  %v4512_v43 = vld [vmem:[#allocation5 + $0x42c] ss:$16 sps:$4 sm:$0xff]  }
 0x142   : > { %2668 = vmatprep.mubr.bf16.mxu1 %v5058_v44  ;;  %v4515_v44 = vld [vmem:[#allocation5 + $0x62c] ss:$16 sps:$4 sm:$0xff]  }
 0x143   : > { %2736 = vmatpush1.bf16.msra.mxu0 %v4492_v17  ;;  %v4548_v60 = vld [vmem:[#allocation5 + $0x56c] ss:$16 sps:$4 sm:$0xff]  }
 0x144   : > { %2849 = vmatpush1.bf16.msra.mxu1 %v4495_v63  ;;  %2737 = vmatprep.subr.bf16.mxu0 %v4500_v47  ;;  %v4551_v16 = vld [vmem:[#allocation5 + $0x76c] ss:$16 sps:$4 sm:$0xff]   ;;  %v4555_v63 = vld [vmem:[#allocation5 + $0x748] ss:$16 sps:$4 sm:$0xff]   ;;  %v751_v47 = vlaneseq }
 0x145   : > { %2850 = vmatprep.subr.bf16.mxu1 %v4503_v23  ;;  %v4554_v17 = vld [vmem:[#allocation5 + $0x54c] ss:$16 sps:$4 sm:$0xff]   ;;  %v4558_v23 = vld [vmem:[#allocation5 + $0x528] ss:$16 sps:$4 sm:$0xff]  }
 0x146   : > { %2556 = vmatmul.mubr.bf16.gmra.mxu0 %v5070_v58  ;;  %v4521_v58 = vld [vmem:[#allocation5 + $0x60c] ss:$16 sps:$4 sm:$0xff]  }
 0x147   : > { %2669 = vmatmul.mubr.bf16.gmra.mxu1 %v5072_v59  ;;  %2738 = vmatpush1.bf16.msra.mxu0 %v4498_v24  ;;  %v4516_v59 = vld [vmem:[#allocation5 + $0x408] ss:$16 sps:$4 sm:$0xff]  }
 0x148   : > { %2851 = vmatpush1.bf16.msra.mxu1 %v4501_v52  ;;  %2739 = vmatprep.subr.bf16.mxu0 %v4506_v35  ;;  %v4561_v24 = vld [vmem:[#allocation5 + $0x728] ss:$16 sps:$4 sm:$0xff]   ;;  %v4569_v52 = vld [vmem:[#allocation5 + $0x70c] ss:$16 sps:$4 sm:$0xff]  }
 0x149   : > { %2852 = vmatprep.subr.bf16.mxu1 %v4509_v36  ;;  %2565 = vmatprep.mubr.bf16.mxu0 %v5076_v1  ;;  %v4527_v1 = vld [vmem:[#allocation5 + $0x7ec] ss:$16 sps:$4 sm:$0xff]   ;;  %v4564_v35 = vld [vmem:[#allocation5 + $0x508] ss:$16 sps:$4 sm:$0xff]   ;;  %v5369_v36 = vld [vmem:[#allocation7] sm:$0xf] }
 0x14a   : > { %2678 = vmatprep.mubr.bf16.mxu1 %v5078_v2  ;;  %v4522_v2 = vld [vmem:[#allocation5 + $0x5e8] ss:$16 sps:$4 sm:$0xff]   ;;  %5919 = vst [vmem:[#allocation33_spill] sm:$0xff] %v5369_v36 }
 0x14b   : > { %2740 = vmatpush1.bf16.msra.mxu0 %v4504_v37  ;;  %v4570_v37 = vld [vmem:[#allocation8 + $0x78] sm:$0xff]  }
 0x14c   : > { %2853 = vmatpush1.bf16.msra.mxu1 %v4507_v48  ;;  %2741 = vmatprep.subr.bf16.mxu0 %v4512_v43 }
 0x14d   : > { %2854 = vmatprep.subr.bf16.mxu1 %v4515_v44  ;;  %v4572_v44 = vld [vmem:[#allocation8 + $0x70] sm:$0xff]  }
 0x14e   : > { %2566 = vmatmul.mubr.bf16.gmra.mxu0 %v5090_v14  ;;  %v4533_v14 = vld [vmem:[#allocation5 + $0x7cc] ss:$16 sps:$4 sm:$0xff]  }
 0x14f   : > { %2679 = vmatmul.mubr.bf16.gmra.mxu1 %v5092_v15  ;;  %2742 = vmatpush1.bf16.msra.mxu0 %v4510_v10  ;;  %v4528_v15 = vld [vmem:[#allocation5 + $0x5c8] ss:$16 sps:$4 sm:$0xff]  }
 0x150   : > { %2855 = vmatpush1.bf16.msra.mxu1 %v4513_v19  ;;  %2743 = vmatprep.subr.bf16.mxu0 %v4518_v6 }
 0x151   : > { %2856 = vmatprep.subr.bf16.mxu1 %v4521_v58  ;;  %2575 = vmatprep.mubr.bf16.mxu0 %v5096_v25  ;;  %v4539_v25 = vld [vmem:[#allocation5 + $0x7ac] ss:$16 sps:$4 sm:$0xff]   ;;  %v4573_v58 = vld [vmem:[#allocation8 + $0x30] sm:$0xff]  }
 0x152   : > { %2688 = vmatprep.mubr.bf16.mxu1 %v5098_v26  ;;  %v4534_v26 = vld [vmem:[#allocation5 + $0x5a8] ss:$16 sps:$4 sm:$0xff]  }
 0x153   : > { %2744 = vmatpush1.bf16.msra.mxu0 %v4516_v59 }
 0x154   : > { %2857 = vmatpush1.bf16.msra.mxu1 %v4519_v9  ;;  %2745 = vmatprep.subr.bf16.mxu0 %v4524_v28  ;;  %v4574_v28 = vld [vmem:[#allocation8 + $0x68] sm:$0xff]  }
 0x155   : > { %2858 = vmatprep.subr.bf16.mxu1 %v4527_v1 }
 0x156   : > { %2576 = vmatmul.mubr.bf16.gmra.mxu0 %v5110_v40  ;;  %v4540_v40 = vld [vmem:[#allocation5 + $0x588] ss:$16 sps:$4 sm:$0xff]  }
 0x157   : > { %2689 = vmatmul.mubr.bf16.gmra.mxu1 %v5112_v41  ;;  %2746 = vmatpush2.bf16.msra.mxu0 %v4522_v2  ;;  %v4543_v41 = vld [vmem:[#allocation5 + $0x788] ss:$16 sps:$4 sm:$0xff]  }
 0x158   : > { %2859 = vmatpush2.bf16.msra.mxu1 %v4525_v42  ;;  %2747 = vmatprep.subr.bf16.mxu0 %v4530_v7  ;;  %v4576_v42 = vld [vmem:[#allocation8 + $0x60] sm:$0xff]  }
 0x159   : > { %2860 = vmatprep.subr.bf16.mxu1 %v4533_v14  ;;  %2585 = vmatprep.mubr.bf16.mxu0 %v5116_v49  ;;  %v4546_v49 = vld [vmem:[#allocation5 + $0x568] ss:$16 sps:$4 sm:$0xff]  }
 0x15a   : > { %2698 = vmatprep.mubr.bf16.mxu1 %v5118_v50  ;;  %v4549_v50 = vld [vmem:[#allocation5 + $0x768] ss:$16 sps:$4 sm:$0xff]  }
 0x15b   : > { %2748 = vmatpush2.bf16.msra.mxu0 %v4528_v15 }
 0x15c   : > { %2861 = vmatpush2.bf16.msra.mxu1 %v4531_v22  ;;  %2749 = vmatprep.subr.bf16.mxu0 %v4536_v27 }
 0x15d   : > { %2862 = vmatprep.subr.bf16.mxu1 %v4539_v25  ;;  %v4577_v25 = vld [vmem:[#allocation8 + $0x20] sm:$0xff]  }
 0x15e   : > { %2586 = vmatmul.mubr.bf16.gmra.mxu0 %v5130_v4  ;;  %v4557_v4 = vld [vmem:[#allocation5 + $0x74c] ss:$16 sps:$4 sm:$0xff]  }
 0x15f   : > { %2699 = vmatmul.mubr.bf16.gmra.mxu1 %v5132_v5  ;;  %2750 = vmatpush2.bf16.msra.mxu0 %v4534_v26  ;;  %v4552_v5 = vld [vmem:[#allocation5 + $0x548] ss:$16 sps:$4 sm:$0xff]  }
 0x160   : > { %2863 = vmatpush2.bf16.msra.mxu1 %v4537_v53  ;;  %2751 = vmatprep.subr.bf16.mxu0 %v4542_v54  ;;  %v4578_v54 = vld [vmem:[#allocation8 + $0x58] sm:$0xff]  }
 0x161   : > { %2864 = vmatprep.subr.bf16.mxu1 %v4545_v8  ;;  %2595 = vmatprep.mubr.bf16.mxu0 %v5136_v11  ;;  %v4560_v11 = vld [vmem:[#allocation5 + $0x52c] ss:$16 sps:$4 sm:$0xff]  }
 0x162   : > { %2708 = vmatprep.mubr.bf16.mxu1 %v5138_v12  ;;  %v4563_v12 = vld [vmem:[#allocation5 + $0x72c] ss:$16 sps:$4 sm:$0xff]  }
 0x163   : > { %2752 = vmatpush2.bf16.msra.mxu0 %v4540_v40 }
 0x164   : > { %2865 = vmatpush2.bf16.msra.mxu1 %v4543_v41  ;;  %2753 = vmatprep.subr.bf16.mxu0 %v4548_v60  ;;  %v4580_v41 = vld [vmem:[#allocation8 + $0x50] sm:$0xff]  }
 0x165   : > { %2866 = vmatprep.subr.bf16.mxu1 %v4551_v16 }
 0x166   : > { %2596 = vmatmul.mubr.bf16.gmra.mxu0 %v5150_v32  ;;  %v5364_v32 = vshrl.u32 %v751_v47, 7 }
 0x167   : > { %2709 = vmatmul.mubr.bf16.gmra.mxu1 %v5152_v33  ;;  %2754 = vmatpush2.bf16.msra.mxu0 %v4546_v49  ;;  %v4566_v33 = vld [vmem:[#allocation5 + $0x50c] ss:$16 sps:$4 sm:$0xff]  }
 0x168   : > { %2867 = vmatpush2.bf16.msra.mxu1 %v4549_v50  ;;  %2755 = vmatprep.subr.bf16.mxu0 %v4554_v17  ;;  %5918 = vst [vmem:[#allocation32_spill] sm:$0xff] %v5364_v32  ;;  %v757_v48 = vsub.s32 1, %v5364_v32  ;;  %v5920_v49 = vld [vmem:[#allocation16_spill] sm:$0xff]  ;;  %v5921_v50 = vld [vmem:[#allocation17_spill] sm:$0xff] }
 0x169   : > { %2868 = vmatprep.subr.bf16.mxu1 %v4557_v4  ;;  %2605 = vmatprep.mubr.bf16.mxu0 %v5156_v45  ;;  %v4567_v45 = vld [vmem:[#allocation5 + $0x708] ss:$16 sps:$4 sm:$0xff]  }
 0x16a   : > { %2718 = vmatprep.mubr.bf16.mxu1 %v5158_v46  ;;  %v753_v46 = vsub.s32 0, %v5364_v32  ;;  %v5378_v43 = vrot.slane %v5369_v36, %v757_v48  ;;  %v5922_v4 = vld [vmem:[#allocation18_spill] sm:$0xff] }
 0x16b   : > { %2756 = vmatpush2.bf16.msra.mxu0 %v4552_v5  ;;  %v5923_v5 = vld [vmem:[#allocation19_spill] sm:$0xff] }
 0x16c   : > { %2869 = vmatpush2.bf16.msra.mxu1 %v4555_v63  ;;  %2757 = vmatprep.subr.bf16.mxu0 %v4560_v11  ;;  %v4581_v11 = vld [vmem:[#allocation8 + $0x10] sm:$0xff]  }
 0x16d   : > { %2870 = vmatprep.subr.bf16.mxu1 %v4563_v12 }
 0x16e   : > { %2606 = vmatmul.mubr.bf16.gmra.mxu0 %v5170_v0  ;;  %v5375_v0 = vrot.slane %v5369_v36, %v753_v46 }
 0x16f   : > { %2719 = vmatmul.mubr.bf16.gmra.mxu1 %v5172_v3  ;;  %2758 = vmatpush2.bf16.msra.mxu0 %v4558_v23  ;;  %v4571_v3 = vld [vmem:[#allocation8 + $0x38] sm:$0xff]  }
 0x170   : > { %2871 = vmatpush2.bf16.msra.mxu1 %v4561_v24  ;;  %2759 = vmatprep.subr.bf16.mxu0 %v4566_v33  ;;  %v4582_v24 = vld [vmem:[#allocation8 + $0x48] sm:$0xff]   ;;  %v4586_v33 = vld [vmem:[#allocation8 + $0xf8] sm:$0xff]  }
 0x171   : > { %2872 = vmatprep.subr.bf16.mxu1 %v4569_v52  ;;  %2761 = vmatprep.mubr.bf16.mxu0 %v5176_v13  ;;  %v4587_v52 = vld [vmem:[#allocation8 + $0xb8] sm:$0xff]  }
 0x172   : > { %2874 = vmatprep.mubr.bf16.mxu1 %v5178_v18 }
 0x173   : > { %2760 = vmatpush2.bf16.msra.mxu0 %v4564_v35 }
 0x174   : > { %2873 = vmatpush2.bf16.msra.mxu1 %v4567_v45  ;;  %3964 = vmatprep.subr.bf16.mxu0 %v4570_v37 }
 0x175   : > { %4028 = vmatprep.subr.bf16.mxu1 %v4586_v33 }
 0x176   : > { %v2085_v10 = vpop.f32.mrf.mxu0  ;;  %2762 = vmatmul.mubr.bf16.vlgmr.msra.gmra.mxu0 %v5190_v38 }
 0x177   : > { %v2198_v19 = vpop.f32.mrf.mxu1  ;;  %2875 = vmatmul.mubr.bf16.vlgmr.msra.gmra.mxu1 %v5192_v39  ;;  %v2086_v13 = vadd.f32 %v2085_v10, %v5375_v0  ;;  %2771 = vmatprep.mubr.bf16.mxu0 %v5196_v55 }
 0x178   : > { %2884 = vmatprep.mubr.bf16.mxu1 %v5198_v56  ;;  %v2087_v18 = vpop.f32.mrf.mxu0  ;;  %3965 = vmatpush3.bf16.msra.mxu0 %v4571_v3  ;;  %v4575_v56 = vld [vmem:[#allocation8 + $0x28] sm:$0xff]  }
 0x179   : > { %v2200_v6 = vpop.f32.mrf.mxu1  ;;  %v5385_v59 = vadd.f32 %v2198_v19, %v2086_v13  ;;  %v2088_v9 = vadd.f32 %v2087_v18, %v5378_v43  ;;  %3966 = vmatprep.subr.bf16.mxu0 %v4572_v44  ;;  %v4583_v3 = vld [vmem:[#allocation8 + $0x8] sm:$0xff]   ;;  %4029 = vmatpush3.bf16.msra.mxu1 %v4587_v52  ;;  %v4584_v44 = vld [vmem:[#allocation8 + $0x40] sm:$0xff]  }
 0x17a   : > { %v5388_v1 = vpop.f32.mrf.mxu0  ;;  %v5924_v13 = vld [vmem:[#allocation20_spill] sm:$0xff]  ;;  %v5925_v18 = vld [vmem:[#allocation21_spill] sm:$0xff] }
 0x17b   : > { %v5390_v38 = vpop.f32.mrf.mxu1  ;;  %v5392_v39 = vadd.f32 %v2200_v6, %v2088_v9  ;;  %v5927_v9 = vld [vmem:[#allocation23_spill] sm:$0xff] }
 0x17c   : > { %v5394_v2 = vpop.f32.mrf.mxu0  ;;  %3967 = vmatpush3.bf16.msra.mxu0 %v4573_v58  ;;  %v5926_v58 = vld [vmem:[#allocation22_spill] sm:$0xff] }
 0x17d   : > { %v5396_v55 = vpop.f32.mrf.mxu1  ;;  %3968 = vmatprep.subr.bf16.mxu0 %v4574_v28 }
 0x17e   : > { %v2095_v7 = vpop.f32.mrf.mxu0  ;;  %2772 = vmatmul.mubr.bf16.gmra.mxu0 %v5210_v20 }
 0x17f   : > { %v2208_v14 = vpop.f32.mrf.mxu1  ;;  %2885 = vmatmul.mubr.bf16.gmra.mxu1 %v5212_v21  ;;  %v2096_v15 = vadd.f32 %v2095_v7, %v5375_v0  ;;  %2781 = vmatprep.mubr.bf16.mxu0 %v5216_v31 }
 0x180   : > { %2894 = vmatprep.mubr.bf16.mxu1 %v5218_v34  ;;  %v2097_v22 = vpop.f32.mrf.mxu0  ;;  %3969 = vmatpush3.bf16.msra.mxu0 %v4575_v56  ;;  %v4579_v34 = vld [vmem:[#allocation8 + $0x18] sm:$0xff]  }
 0x181   : > { %v2210_v27 = vpop.f32.mrf.mxu1  ;;  %v5403_v26 = vadd.f32 %v2208_v14, %v2096_v15  ;;  %v2098_v53 = vadd.f32 %v2097_v22, %v5378_v43  ;;  %3970 = vmatprep.subr.bf16.mxu0 %v4576_v42  ;;  %v4585_v42 = vld [vmem:[#allocation8] sm:$0xff]   ;;  %v4588_v15 = vld [vmem:[#allocation8 + $0xf0] sm:$0xff]  }
 0x182   : > { %v5406_v8 = vpop.f32.mrf.mxu0  ;;  %v4589_v22 = vld [vmem:[#allocation8 + $0xb0] sm:$0xff]   ;;  %4030 = vmatprep.subr.bf16.mxu1 %v4588_v15 }
 0x183   : > { %v5408_v20 = vpop.f32.mrf.mxu1  ;;  %v5410_v21 = vadd.f32 %v2210_v27, %v2098_v53  ;;  %4031 = vmatpush3.bf16.msra.mxu1 %v4589_v22  ;;  %v4592_v22 = vld [vmem:[#allocation8 + $0xe0] sm:$0xff]  }
 0x184   : > { %v5412_v40 = vpop.f32.mrf.mxu0  ;;  %3971 = vmatpush3.bf16.msra.mxu0 %v4577_v25 }
 0x185   : > { %v5414_v31 = vpop.f32.mrf.mxu1  ;;  %3972 = vmatprep.subr.bf16.mxu0 %v4578_v54 }
 0x186   : > { %v2105_v60 = vpop.f32.mrf.mxu0  ;;  %2782 = vmatmul.mubr.bf16.gmra.mxu0 %v5920_v49  ;;  %v5929_v49 = vld [vmem:[#allocation25_spill] sm:$0xff] }
 0x187   : > { %v2218_v16 = vpop.f32.mrf.mxu1  ;;  %2895 = vmatmul.mubr.bf16.gmra.mxu1 %v5921_v50  ;;  %v2106_v17 = vadd.f32 %v2105_v60, %v5375_v0  ;;  %2791 = vmatprep.mubr.bf16.mxu0 %v5922_v4  ;;  %v5931_v4 = vld [vmem:[#allocation27_spill] sm:$0xff] }
 0x188   : > { %2904 = vmatprep.mubr.bf16.mxu1 %v5923_v5  ;;  %v2107_v63 = vpop.f32.mrf.mxu0  ;;  %3973 = vmatpush3.bf16.msra.mxu0 %v4579_v34 }
 0x189   : > { %v2220_v47 = vpop.f32.mrf.mxu1  ;;  %v5421_v12 = vadd.f32 %v2218_v16, %v2106_v17  ;;  %v2108_v23 = vadd.f32 %v2107_v63, %v5378_v43  ;;  %3974 = vmatprep.subr.bf16.mxu0 %v4580_v41  ;;  %v5928_v16 = vld [vmem:[#allocation24_spill] sm:$0xff]  ;;  %v5930_v17 = vld [vmem:[#allocation26_spill] sm:$0xff] }
 0x18a   : > { %v5424_v35 = vpop.f32.mrf.mxu0 }
 0x18b   : > { %v5426_v45 = vpop.f32.mrf.mxu1  ;;  %v5428_v46 = vadd.f32 %v2220_v47, %v2108_v23  ;;  %v4590_v23 = vld [vmem:[#allocation8 + $0xe8] sm:$0xff]  }
 0x18c   : > { %v5430_v37 = vpop.f32.mrf.mxu0  ;;  %3975 = vmatpush3.bf16.msra.mxu0 %v4581_v11  ;;  %4032 = vmatprep.subr.bf16.mxu1 %v4590_v23 }
 0x18d   : > { %v5432_v48 = vpop.f32.mrf.mxu1  ;;  %3976 = vmatprep.subr.bf16.mxu0 %v4582_v24  ;;  %v4591_v24 = vld [vmem:[#allocation8 + $0xa8] sm:$0xff]  }
 0x18e   : > { %v2115_v10 = vpop.f32.mrf.mxu0  ;;  %2792 = vmatmul.mubr.bf16.gmra.mxu0 %v5924_v13  ;;  %4033 = vmatpush3.bf16.msra.mxu1 %v4591_v24 }
 0x18f   : > { %v2228_v19 = vpop.f32.mrf.mxu1  ;;  %2905 = vmatmul.mubr.bf16.gmra.mxu1 %v5925_v18  ;;  %v2116_v6 = vadd.f32 %v2115_v10, %v5375_v0  ;;  %2801 = vmatprep.mubr.bf16.mxu0 %v5926_v58  ;;  %v5932_v18 = vld [vmem:[#allocation28_spill] sm:$0xff] }
 0x190   : > { %2914 = vmatprep.mubr.bf16.mxu1 %v5927_v9  ;;  %v2117_v28 = vpop.f32.mrf.mxu0  ;;  %3977 = vmatpush3.bf16.msra.mxu0 %v4583_v3  ;;  %v5934_v9 = vld [vmem:[#allocation30_spill] sm:$0xff] }
 0x191   : > { %v2230_v56 = vpop.f32.mrf.mxu1  ;;  %v5439_v7 = vadd.f32 %v2228_v19, %v2116_v6  ;;  %v2118_v14 = vadd.f32 %v2117_v28, %v5378_v43  ;;  %3978 = vmatprep.subr.bf16.mxu0 %v4584_v44  ;;  %v5933_v6 = vld [vmem:[#allocation29_spill] sm:$0xff]  ;;  %v5935_v28 = vld [vmem:[#allocation31_spill] sm:$0xff]  ;;  %4034 = vmatprep.subr.bf16.mxu1 %v4592_v22 }
 0x192   : > { %v5442_v27 = vpop.f32.mrf.mxu0 }
 0x193   : > { %v5444_v25 = vpop.f32.mrf.mxu1  ;;  %v5446_v53 = vadd.f32 %v2230_v56, %v2118_v14 }
 0x194   : > { %v5448_v54 = vpop.f32.mrf.mxu0  ;;  %3979 = vmatpush3.bf16.msra.mxu0 %v4585_v42 }
 0x195   : > { %v5450_v34 = vpop.f32.mrf.mxu1 }
 0x196   : > { %v2125_v41 = vpop.f32.mrf.mxu0  ;;  %2802 = vmatmul.mubr.bf16.gmra.mxu0 %v5928_v16 }
 0x197   : > { %v2238_v60 = vpop.f32.mrf.mxu1  ;;  %2915 = vmatmul.mubr.bf16.gmra.mxu1 %v5929_v49  ;;  %v2126_v50 = vadd.f32 %v2125_v41, %v5375_v0  ;;  %2811 = vmatprep.mubr.bf16.mxu0 %v5930_v17  ;;  %v4593_v41 = vld [vmem:[#allocation8 + $0xa0] sm:$0xff]  }
 0x198   : > { %2924 = vmatprep.mubr.bf16.mxu1 %v5931_v4  ;;  %v2127_v5 = vpop.f32.mrf.mxu0  ;;  %4035 = vmatpush3.bf16.msra.mxu1 %v4593_v41  ;;  %v4596_v41 = vld [vmem:[#allocation8 + $0xd0] sm:$0xff]  }
 0x199   : > { %v2240_v63 = vpop.f32.mrf.mxu1  ;;  %v5457_v47 = vadd.f32 %v2238_v60, %v2126_v50  ;;  %v2128_v11 = vadd.f32 %v2127_v5, %v5378_v43 }
 0x19a   : > { %v5460_v33 = vpop.f32.mrf.mxu0 }
 0x19b   : > { %v5462_v52 = vpop.f32.mrf.mxu1  ;;  %v5464_v3 = vadd.f32 %v2240_v63, %v2128_v11 }
 0x19c   : > { %v5466_v44 = vpop.f32.mrf.mxu0 }
 0x19d   : > { %v5468_v10 = vpop.f32.mrf.mxu1 }
 0x19e   : > { %v2135_v19 = vpop.f32.mrf.mxu0  ;;  %2812 = vmatmul.mubr.bf16.gmra.mxu0 %v5932_v18  ;;  %v4595_v18 = vld [vmem:[#allocation8 + $0x98] sm:$0xff]  }
 0x19f   : > { %v2248_v13 = vpop.f32.mrf.mxu1  ;;  %2925 = vmatmul.mubr.bf16.gmra.mxu1 %v5933_v6  ;;  %v2136_v58 = vadd.f32 %v2135_v19, %v5375_v0  ;;  %2821 = vmatprep.mubr.bf16.mxu0 %v5934_v9 }
 0x1a0   : > { %2934 = vmatprep.mubr.bf16.mxu1 %v5935_v28  ;;  %v2137_v56 = vpop.f32.mrf.mxu0 }
 0x1a1   : > { %v2250_v42 = vpop.f32.mrf.mxu1  ;;  %v5475_v14 = vadd.f32 %v2248_v13, %v2136_v58  ;;  %v2138_v15 = vadd.f32 %v2137_v56, %v5378_v43  ;;  %v4594_v13 = vld [vmem:[#allocation8 + $0xd8] sm:$0xff]  }
 0x1a2   : > { %v5478_v60 = vpop.f32.mrf.mxu0  ;;  %4036 = vmatprep.subr.bf16.mxu1 %v4594_v13 }
 0x1a3   : > { %v5480_v16 = vpop.f32.mrf.mxu1  ;;  %v5482_v49 = vadd.f32 %v2250_v42, %v2138_v15  ;;  %4037 = vmatpush3.bf16.msra.mxu1 %v4595_v18  ;;  %v2092_v18 = vadd.f32 %v5394_v2, %v5378_v43  ;;  %v2100_v2 = vadd.f32 %v5406_v8, %v5375_v0 }
 0x1a4   : > { %v5484_v50 = vpop.f32.mrf.mxu0  ;;  %4038 = vmatprep.subr.bf16.mxu1 %v4596_v41 }
 0x1a5   : > { %v5486_v17 = vpop.f32.mrf.mxu1 }
 0x1a6   : > { %v2145_v4 = vpop.f32.mrf.mxu0  ;;  %2822 = vmatmul.mubr.bf16.gmra.mxu0 %v5310_v61 }
 0x1a7   : > { %v2258_v5 = vpop.f32.mrf.mxu1  ;;  %2935 = vmatmul.mubr.bf16.gmra.mxu1 %v5312_v57  ;;  %v2146_v63 = vadd.f32 %v2145_v4, %v5375_v0  ;;  %2831 = vmatprep.mubr.bf16.mxu0 %v5316_v62  ;;  %v4597_v4 = vld [vmem:[#allocation8 + $0x90] sm:$0xff]  }
 0x1a8   : > { %2944 = vmatprep.mubr.bf16.mxu1 %v5318_v51  ;;  %v2147_v11 = vpop.f32.mrf.mxu0  ;;  %4039 = vmatpush3.bf16.msra.mxu1 %v4597_v4  ;;  %v2205_v4 = vadd.f32 %v5396_v55, %v2092_v18 }
 0x1a9   : > { %v2260_v23 = vpop.f32.mrf.mxu1  ;;  %v5493_v24 = vadd.f32 %v2258_v5, %v2146_v63  ;;  %v2148_v19 = vadd.f32 %v2147_v11, %v5378_v43 }
 0x1aa   : > { %v5496_v6 = vpop.f32.mrf.mxu0 }
 0x1ab   : > { %v5498_v58 = vpop.f32.mrf.mxu1  ;;  %v5500_v61 = vadd.f32 %v2260_v23, %v2148_v19  ;;  %v2090_v23 = vadd.f32 %v5388_v1, %v5375_v0  ;;  %v4599_v1 = vld [vmem:[#allocation8 + $0x88] sm:$0xff]  }
 0x1ac   : > { %v5502_v57 = vpop.f32.mrf.mxu0 }
 0x1ad   : > { %v5504_v62 = vpop.f32.mrf.mxu1 }
 0x1ae   : > { %v2155_v51 = vpop.f32.mrf.mxu0  ;;  %2832 = vmatmul.mubr.bf16.gmra.mxu0 %v5328_v30 }
 0x1af   : > { %v2268_v9 = vpop.f32.mrf.mxu1  ;;  %2945 = vmatmul.mubr.bf16.gmra.mxu1 %v5330_v29  ;;  %v2156_v28 = vadd.f32 %v2155_v51, %v5375_v0 }
 0x1b0   : > { %v2157_v56 = vpop.f32.mrf.mxu0 }
 0x1b1   : > { %v2270_v42 = vpop.f32.mrf.mxu1  ;;  %v5509_v15 = vadd.f32 %v2268_v9, %v2156_v28  ;;  %v2158_v22 = vadd.f32 %v2157_v56, %v5378_v43  ;;  %v2203_v28 = vadd.f32 %v5390_v38, %v2090_v23 }
 0x1b2   : > { %v5512_v5 = vpop.f32.mrf.mxu0 }
 0x1b3   : > { %5936 = vst [vmem:[#allocation16_spill] sm:$0xff] %v5509_v15  ;;  %5937 = vst [vmem:[#allocation17_spill] sm:$0xff] %v5512_v5  ;;  %v5514_v63 = vpop.f32.mrf.mxu1  ;;  %v5516_v11 = vadd.f32 %v2270_v42, %v2158_v22 }
 0x1b4   : > { %5938 = vst [vmem:[#allocation18_spill] sm:$0xff] %v5514_v63  ;;  %v5518_v30 = vpop.f32.mrf.mxu0 }
 0x1b5   : > { %5939 = vst [vmem:[#allocation19_spill] sm:$0xff] %v5516_v11  ;;  %5940 = vst [vmem:[#allocation20_spill] sm:$0xff] %v5518_v30  ;;  %v5520_v29 = vpop.f32.mrf.mxu1 }
 0x1b6   : > { %5941 = vst [vmem:[#allocation21_spill] sm:$0xff] %v5520_v29  ;;  %v2311_v19 = vpop.f32.mrf.mxu0  ;;  %v4598_v29 = vld [vmem:[#allocation8 + $0xc8] sm:$0xff]  }
 0x1b7   : > { %v2424_v13 = vpop.f32.mrf.mxu1  ;;  %v2312_v42 = vadd.f32 %v2311_v19, %v5385_v59  ;;  %4040 = vmatprep.subr.bf16.mxu1 %v4598_v29  ;;  %v2102_v59 = vadd.f32 %v5412_v40, %v5378_v43 }
 0x1b8   : > { %v2313_v51 = vpop.f32.mrf.mxu0  ;;  %4041 = vmatpush3.bf16.msra.mxu1 %v4599_v1 }
 0x1b9   : > { %v2426_v9 = vpop.f32.mrf.mxu1  ;;  %v2314_v56 = vadd.f32 %v2313_v51, %v5392_v39  ;;  %v2425_v38 = vadd.f32 %v2424_v13, %v2312_v42  ;;  %v2215_v40 = vadd.f32 %v5414_v31, %v2102_v59  ;;  %v2112_v31 = vadd.f32 %v5430_v37, %v5378_v43 }
 0x1ba   : > { %v2315_v22 = vpop.f32.mrf.mxu0 }
 0x1bb   : > { %v2428_v41 = vpop.f32.mrf.mxu1  ;;  %v2316_v36 = vadd.f32 %v2315_v22, %v2203_v28  ;;  %v2427_v63 = vadd.f32 %v2426_v9, %v2314_v56  ;;  %v4600_v28 = vld [vmem:[#allocation8 + $0xc0] sm:$0xff]   ;;  %v2213_v22 = vadd.f32 %v5408_v20, %v2100_v2  ;;  %v2955_v29 = vmax.f32 %v2425_v38, 0.0 }
 0x1bc   : > { %v2317_v15 = vpop.f32.mrf.mxu0  ;;  %4042 = vmatprep.subr.bf16.mxu1 %v4600_v28  ;;  %v2110_v20 = vadd.f32 %v5424_v35, %v5375_v0 }
 0x1bd   : > { %v2430_v11 = vpop.f32.mrf.mxu1  ;;  %v2429_v32 = vadd.f32 %v2428_v41, %v2316_v36  ;;  %v2318_v30 = vadd.f32 %v2317_v15, %v2205_v4  ;;  %v2956_v5 = vmax.f32 %v2427_v63, 0.0  ;;  %v4601_v15 = vld [vmem:[#allocation8 + $0x80] sm:$0xff]  }
 0x1be   : > { %v2321_v39 = vpop.f32.mrf.mxu0  ;;  %4043 = vmatpush3.bf16.msra.mxu1 %v4601_v15 }
 0x1bf   : > { %v2434_v23 = vpop.f32.mrf.mxu1  ;;  %v2431_v55 = vadd.f32 %v2430_v11, %v2318_v30  ;;  %v2959_v19 = vmax.f32 %v2429_v32, 0.0  ;;  %v2322_v13 = vadd.f32 %v2321_v39, %v5403_v26 }
 0x1c0   : > { %v2323_v18 = vpop.f32.mrf.mxu0 }
 0x1c1   : > { %v2436_v51 = vpop.f32.mrf.mxu1  ;;  %v2960_v8 = vmax.f32 %v2431_v55, 0.0  ;;  %v2324_v36 = vadd.f32 %v2323_v18, %v5410_v21  ;;  %v3019_v30 = vpack.c.bf16 %v2959_v19, %v2955_v29  ;;  %v2435_v1 = vadd.f32 %v2434_v23, %v2322_v13 }
 0x1c2   : > { %v2325_v9 = vpop.f32.mrf.mxu0  ;;  %v2223_v55 = vadd.f32 %v5426_v45, %v2110_v20 }
 0x1c3   : > { %v2438_v56 = vpop.f32.mrf.mxu1  ;;  %v2326_v11 = vadd.f32 %v2325_v9, %v2213_v22  ;;  %v3020_v32 = vpack.c.bf16 %v2960_v8, %v2956_v5  ;;  %v2437_v63 = vadd.f32 %v2436_v51, %v2324_v36  ;;  %v2963_v51 = vmax.f32 %v2435_v1, 0.0 }
 0x1c4   : > { %v2327_v42 = vpop.f32.mrf.mxu0  ;;  %v2225_v8 = vadd.f32 %v5432_v48, %v2112_v31  ;;  %v2120_v9 = vadd.f32 %v5442_v27, %v5375_v0 }
 0x1c5   : > { %v2440_v41 = vpop.f32.mrf.mxu1  ;;  %v2439_v21 = vadd.f32 %v2438_v56, %v2326_v11  ;;  %v2328_v4 = vadd.f32 %v2327_v42, %v2215_v40  ;;  %3346 = vmatprep.mubr.bf16.mxu0 %v3020_v32  ;;  %v2964_v19 = vmax.f32 %v2437_v63, 0.0 }
 0x1c6   : > { %v2331_v26 = vpop.f32.mrf.mxu0  ;;  %3347 = vmatmul.mubr.bf16.vlgmr.msra.gmra.mxu0 %v3019_v30  ;;  %v2233_v20 = vadd.f32 %v5444_v25, %v2120_v9 }
 0x1c7   : > { %v2444_v2 = vpop.f32.mrf.mxu1  ;;  %v2441_v38 = vadd.f32 %v2440_v41, %v2328_v4  ;;  %v2967_v5 = vmax.f32 %v2439_v21, 0.0  ;;  %v2332_v28 = vadd.f32 %v2331_v26, %v5421_v12  ;;  %v2122_v12 = vadd.f32 %v5448_v54, %v5378_v43 }
 0x1c8   : > { %v2333_v39 = vpop.f32.mrf.mxu0 }
 0x1c9   : > { %v2446_v59 = vpop.f32.mrf.mxu1  ;;  %v2968_v18 = vmax.f32 %v2441_v38, 0.0  ;;  %v2334_v35 = vadd.f32 %v2333_v39, %v5428_v46  ;;  %v3023_v37 = vpack.c.bf16 %v2967_v5, %v2963_v51  ;;  %v2445_v46 = vadd.f32 %v2444_v2, %v2332_v28 }
 0x1ca   : > { %v2335_v23 = vpop.f32.mrf.mxu0  ;;  %v2235_v31 = vadd.f32 %v5450_v34, %v2122_v12 }
 0x1cb   : > { %v2448_v22 = vpop.f32.mrf.mxu1  ;;  %v2336_v36 = vadd.f32 %v2335_v23, %v2223_v55  ;;  %v3024_v15 = vpack.c.bf16 %v2968_v18, %v2964_v19  ;;  %v2447_v45 = vadd.f32 %v2446_v59, %v2334_v35  ;;  %v2971_v4 = vmax.f32 %v2445_v46, 0.0 }
 0x1cc   : > { %v2337_v29 = vpop.f32.mrf.mxu0  ;;  %v2130_v55 = vadd.f32 %v5460_v33, %v5375_v0 }
 0x1cd   : > { %v2450_v13 = vpop.f32.mrf.mxu1  ;;  %v2449_v56 = vadd.f32 %v2448_v22, %v2336_v36  ;;  %v2338_v40 = vadd.f32 %v2337_v29, %v2225_v8  ;;  %3354 = vmatprep.mubr.bf16.mxu0 %v3024_v15  ;;  %v2972_v63 = vmax.f32 %v2447_v45, 0.0 }
 0x1ce   : > { %v2341_v11 = vpop.f32.mrf.mxu0  ;;  %3355 = vmatmul.mubr.bf16.gmra.mxu0 %v3023_v37  ;;  %v2243_v8 = vadd.f32 %v5462_v52, %v2130_v55  ;;  %v2150_v55 = vadd.f32 %v5496_v6, %v5375_v0 }
 0x1cf   : > { %v2454_v32 = vpop.f32.mrf.mxu1  ;;  %v2451_v48 = vadd.f32 %v2450_v13, %v2338_v40  ;;  %v2975_v30 = vmax.f32 %v2449_v56, 0.0  ;;  %v2342_v1 = vadd.f32 %v2341_v11, %v5439_v7  ;;  %v2132_v7 = vadd.f32 %v5466_v44, %v5378_v43 }
 0x1d0   : > { %v2343_v42 = vpop.f32.mrf.mxu0 }
 0x1d1   : > { %v2456_v41 = vpop.f32.mrf.mxu1  ;;  %v2976_v21 = vmax.f32 %v2451_v48, 0.0  ;;  %v2344_v27 = vadd.f32 %v2343_v42, %v5446_v53  ;;  %v3027_v54 = vpack.c.bf16 %v2975_v30, %v2971_v4  ;;  %v2455_v53 = vadd.f32 %v2454_v32, %v2342_v1 }
 0x1d2   : > { %v2345_v26 = vpop.f32.mrf.mxu0  ;;  %v2245_v45 = vadd.f32 %v5468_v10, %v2132_v7  ;;  %v2140_v32 = vadd.f32 %v5478_v60, %v5375_v0 }
 0x1d3   : > { %v2458_v2 = vpop.f32.mrf.mxu1  ;;  %v2346_v38 = vadd.f32 %v2345_v26, %v2233_v20  ;;  %v3028_v5 = vpack.c.bf16 %v2976_v21, %v2972_v63  ;;  %v2457_v25 = vadd.f32 %v2456_v41, %v2344_v27  ;;  %v2979_v37 = vmax.f32 %v2455_v53, 0.0 }
 0x1d4   : > { %v2347_v39 = vpop.f32.mrf.mxu0  ;;  %v2253_v21 = vadd.f32 %v5480_v16, %v2140_v32 }
 0x1d5   : > { %v2460_v59 = vpop.f32.mrf.mxu1  ;;  %v2459_v19 = vadd.f32 %v2458_v2, %v2346_v38  ;;  %v2348_v18 = vadd.f32 %v2347_v39, %v2235_v31  ;;  %3362 = vmatprep.mubr.bf16.mxu0 %v3028_v5  ;;  %v2980_v36 = vmax.f32 %v2457_v25, 0.0 }
 0x1d6   : > { %v2351_v35 = vpop.f32.mrf.mxu0  ;;  %3363 = vmatmul.mubr.bf16.gmra.mxu0 %v3027_v54 }
 0x1d7   : > { %v2464_v51 = vpop.f32.mrf.mxu1  ;;  %v2461_v34 = vadd.f32 %v2460_v59, %v2348_v18  ;;  %v2983_v28 = vmax.f32 %v2459_v19, 0.0  ;;  %v2352_v29 = vadd.f32 %v2351_v35, %v5457_v47  ;;  %v2142_v47 = vadd.f32 %v5484_v50, %v5378_v43 }
 0x1d8   : > { %v2353_v23 = vpop.f32.mrf.mxu0 }
 0x1d9   : > { %v2466_v22 = vpop.f32.mrf.mxu1  ;;  %v2984_v15 = vmax.f32 %v2461_v34, 0.0  ;;  %v2354_v33 = vadd.f32 %v2353_v23, %v5464_v3  ;;  %v3031_v44 = vpack.c.bf16 %v2983_v28, %v2979_v37  ;;  %v2465_v3 = vadd.f32 %v2464_v51, %v2352_v29 }
 0x1da   : > { %v2355_v13 = vpop.f32.mrf.mxu0  ;;  %v2255_v38 = vadd.f32 %v5486_v17, %v2142_v47  ;;  %v2263_v34 = vadd.f32 %v5498_v58, %v2150_v55 }
 0x1db   : > { %v2468_v9 = vpop.f32.mrf.mxu1  ;;  %v2356_v56 = vadd.f32 %v2355_v13, %v2243_v8  ;;  %v3032_v40 = vpack.c.bf16 %v2984_v15, %v2980_v36  ;;  %v2467_v52 = vadd.f32 %v2466_v22, %v2354_v33  ;;  %v2987_v1 = vmax.f32 %v2465_v3, 0.0 }
 0x1dc   : > { %v2357_v46 = vpop.f32.mrf.mxu0 }
 0x1dd   : > { %v2470_v11 = vpop.f32.mrf.mxu1  ;;  %v2469_v12 = vadd.f32 %v2468_v9, %v2356_v56  ;;  %v2358_v48 = vadd.f32 %v2357_v46, %v2245_v45  ;;  %3370 = vmatprep.mubr.bf16.mxu0 %v3032_v40  ;;  %v2988_v27 = vmax.f32 %v2467_v52, 0.0  ;;  %v5942_v45 = vld [vmem:[#allocation17_spill] sm:$0xff]  ;;  %v5944_v52 = vld [vmem:[#allocation32_spill] sm:$0xff] }
 0x1de   : > { %v2361_v30 = vpop.f32.mrf.mxu0  ;;  %3371 = vmatmul.mubr.bf16.gmra.mxu0 %v3031_v44  ;;  %v2160_v56 = vadd.f32 %v5942_v45, %v5375_v0  ;;  %v5945_v0 = vld [vmem:[#allocation18_spill] sm:$0xff] }
 0x1df   : > { %v2474_v42 = vpop.f32.mrf.mxu1  ;;  %v2471_v10 = vadd.f32 %v2470_v11, %v2358_v48  ;;  %v2991_v41 = vmax.f32 %v2469_v12, 0.0  ;;  %v2362_v26 = vadd.f32 %v2361_v30, %v5475_v14  ;;  %v2152_v14 = vadd.f32 %v5502_v57, %v5378_v43 }
 0x1e0   : > { %v2363_v20 = vpop.f32.mrf.mxu0  ;;  %v761_v12 = vsub.s32 2, %v5944_v52  ;;  %v2273_v47 = vadd.f32 %v5945_v0, %v2160_v56 }
 0x1e1   : > { %v2476_v63 = vpop.f32.mrf.mxu1  ;;  %v2992_v4 = vmax.f32 %v2471_v10, 0.0  ;;  %v2364_v60 = vadd.f32 %v2363_v20, %v5482_v49  ;;  %v3035_v50 = vpack.c.bf16 %v2991_v41, %v2987_v1  ;;  %v2475_v49 = vadd.f32 %v2474_v42, %v2362_v26  ;;  %v5946_v20 = vld [vmem:[#allocation19_spill] sm:$0xff] }
 0x1e2   : > { %v2365_v2 = vpop.f32.mrf.mxu0  ;;  %v2265_v33 = vadd.f32 %v5504_v62, %v2152_v14  ;;  %v765_v42 = vsub.s32 3, %v5944_v52 }
 0x1e3   : > { %v2478_v31 = vpop.f32.mrf.mxu1  ;;  %v3036_v5 = vpack.c.bf16 %v2992_v4, %v2988_v27  ;;  %v2366_v54 = vadd.f32 %v2365_v2, %v2253_v21  ;;  %v2477_v16 = vadd.f32 %v2476_v63, %v2364_v60  ;;  %v2995_v22 = vmax.f32 %v2475_v49, 0.0  ;;  %v5947_v27 = vld [vmem:[#allocation16_spill] sm:$0xff] }
 0x1e4   : > { %v2367_v39 = vpop.f32.mrf.mxu0 }
 0x1e5   : > { %v2480_v59 = vpop.f32.mrf.mxu1  ;;  %v2479_v25 = vadd.f32 %v2478_v31, %v2366_v54  ;;  %v2368_v19 = vadd.f32 %v2367_v39, %v2255_v38  ;;  %3378 = vmatprep.mubr.bf16.mxu0 %v3036_v5  ;;  %v2996_v28 = vmax.f32 %v2477_v16, 0.0  ;;  %v5949_v38 = vld [vmem:[#allocation33_spill] sm:$0xff] }
 0x1e6   : > { %v2371_v18 = vpop.f32.mrf.mxu0  ;;  %3379 = vmatmul.mubr.bf16.gmra.mxu0 %v3035_v50  ;;  %v5589_v5 = vrot.slane %v5949_v38, %v761_v12 }
 0x1e7   : > { %v2484_v53 = vpop.f32.mrf.mxu1  ;;  %v2481_v17 = vadd.f32 %v2480_v59, %v2368_v19  ;;  %v2999_v35 = vmax.f32 %v2479_v25, 0.0  ;;  %v2372_v8 = vadd.f32 %v2371_v18, %v5493_v24  ;;  %v5943_v24 = vld [vmem:[#allocation20_spill] sm:$0xff]  ;;  %v5592_v25 = vrot.slane %v5949_v38, %v765_v42 }
 0x1e8   : > { %v2373_v51 = vpop.f32.mrf.mxu0  ;;  %v2162_v32 = vadd.f32 %v5943_v24, %v5378_v43  ;;  %v5948_v43 = vld [vmem:[#allocation21_spill] sm:$0xff] }
 0x1e9   : > { %v2486_v7 = vpop.f32.mrf.mxu1  ;;  %v3000_v23 = vmax.f32 %v2481_v17, 0.0  ;;  %v2374_v6 = vadd.f32 %v2373_v51, %v5500_v61  ;;  %v3039_v57 = vpack.c.bf16 %v2999_v35, %v2995_v22  ;;  %v2485_v61 = vadd.f32 %v2484_v53, %v2372_v8 }
 0x1ea   : > { %v2375_v36 = vpop.f32.mrf.mxu0  ;;  %v2275_v26 = vadd.f32 %v5948_v43, %v2162_v32 }
 0x1eb   : > { %v2488_v15 = vpop.f32.mrf.mxu1  ;;  %v3040_v37 = vpack.c.bf16 %v3000_v23, %v2996_v28  ;;  %v2376_v29 = vadd.f32 %v2375_v36, %v2263_v34  ;;  %v2487_v58 = vadd.f32 %v2486_v7, %v2374_v6  ;;  %v3003_v21 = vmax.f32 %v2485_v61, 0.0 }
 0x1ec   : > { %v2377_v13 = vpop.f32.mrf.mxu0 }
 0x1ed   : > { %v2490_v9 = vpop.f32.mrf.mxu1  ;;  %v2489_v40 = vadd.f32 %v2488_v15, %v2376_v29  ;;  %v2378_v44 = vadd.f32 %v2377_v13, %v2265_v33  ;;  %3386 = vmatprep.mubr.bf16.mxu0 %v3040_v37  ;;  %v3004_v10 = vmax.f32 %v2487_v58, 0.0 }
 0x1ee   : > { %v2381_v46 = vpop.f32.mrf.mxu0  ;;  %3387 = vmatmul.mubr.bf16.gmra.mxu0 %v3039_v57 }
 0x1ef   : > { %v2494_v11 = vpop.f32.mrf.mxu1  ;;  %v2491_v62 = vadd.f32 %v2490_v9, %v2378_v44  ;;  %v3007_v48 = vmax.f32 %v2489_v40, 0.0  ;;  %v2382_v4 = vadd.f32 %v2381_v46, %v5947_v27 }
 0x1f0   : > { %v2383_v3 = vpop.f32.mrf.mxu0 }
 0x1f1   : > { %v2496_v30 = vpop.f32.mrf.mxu1  ;;  %v3008_v41 = vmax.f32 %v2491_v62, 0.0  ;;  %v2384_v63 = vadd.f32 %v2383_v3, %v5946_v20  ;;  %v3043_v54 = vpack.c.bf16 %v3007_v48, %v3003_v21  ;;  %v2495_v19 = vadd.f32 %v2494_v11, %v2382_v4 }
 0x1f2   : > { %v2385_v60 = vpop.f32.mrf.mxu0 }
 0x1f3   : > { %v2498_v1 = vpop.f32.mrf.mxu1  ;;  %v3044_v2 = vpack.c.bf16 %v3008_v41, %v3004_v10  ;;  %v2386_v31 = vadd.f32 %v2385_v60, %v2273_v47  ;;  %v2497_v59 = vadd.f32 %v2496_v30, %v2384_v63  ;;  %v3011_v6 = vmax.f32 %v2495_v19, 0.0 }
 0x1f4   : > { %v2387_v50 = vpop.f32.mrf.mxu0 }
 0x1f5   : > { %v2500_v39 = vpop.f32.mrf.mxu1  ;;  %v2499_v55 = vadd.f32 %v2498_v1, %v2386_v31  ;;  %v2388_v16 = vadd.f32 %v2387_v50, %v2275_v26  ;;  %3394 = vmatprep.mubr.bf16.mxu0 %v3044_v2  ;;  %v3012_v7 = vmax.f32 %v2497_v59, 0.0 }
 0x1f6   : > { %v2537_v49 = vpop.f32.mrf.mxu0  ;;  %3395 = vmatmul.mubr.bf16.gmra.mxu0 %v3043_v54 }
 0x1f7   : > { %v2650_v18 = vpop.f32.mrf.mxu1  ;;  %v2501_v53 = vadd.f32 %v2500_v39, %v2388_v16  ;;  %v2538_v14 = vadd.f32 %v2537_v49, %v5589_v5  ;;  %v3015_v17 = vmax.f32 %v2499_v55, 0.0 }
 0x1f8   : > { %v2539_v35 = vpop.f32.mrf.mxu0 }
 0x1f9   : > { %v2652_v51 = vpop.f32.mrf.mxu1  ;;  %v3016_v34 = vmax.f32 %v2501_v53, 0.0  ;;  %v5595_v28 = vadd.f32 %v2650_v18, %v2538_v14  ;;  %v2540_v23 = vadd.f32 %v2539_v35, %v5592_v25  ;;  %v3047_v33 = vpack.c.bf16 %v3015_v17, %v3011_v6 }
 0x1fa   : > { %v5598_v22 = vpop.f32.mrf.mxu0 }
 0x1fb   : > { %v5600_v8 = vpop.f32.mrf.mxu1  ;;  %v3048_v36 = vpack.c.bf16 %v3016_v34, %v3012_v7  ;;  %v5602_v15 = vadd.f32 %v2652_v51, %v2540_v23 }
 0x1fc   : > { %v5604_v37 = vpop.f32.mrf.mxu0 }
 0x1fd   : > { %v5606_v29 = vpop.f32.mrf.mxu1  ;;  %3402 = vmatprep.mubr.bf16.mxu0 %v3048_v36 }
 0x1fe   : > { %v2547_v57 = vpop.f32.mrf.mxu0  ;;  %3403 = vmatmul.mubr.bf16.gmra.mxu0 %v3047_v33 }
 0x1ff   : > { %v2660_v13 = vpop.f32.mrf.mxu1  ;;  %v2548_v9 = vadd.f32 %v2547_v57, %v5589_v5 }
 0x200   : > { %v2549_v45 = vpop.f32.mrf.mxu0 }
 0x201   : > { %v2662_v56 = vpop.f32.mrf.mxu1  ;;  %v5609_v58 = vadd.f32 %v2660_v13, %v2548_v9  ;;  %v2550_v40 = vadd.f32 %v2549_v45, %v5592_v25 }
 0x202   : > { %v5612_v44 = vpop.f32.mrf.mxu0 }
 0x203   : > { %v5614_v61 = vpop.f32.mrf.mxu1  ;;  %v5616_v46 = vadd.f32 %v2662_v56, %v2550_v40 }
 0x204   : > { %v5618_v11 = vpop.f32.mrf.mxu0 }
 0x205   : > { %v5620_v24 = vpop.f32.mrf.mxu1 }
 0x206   : > { %v2557_v32 = vpop.f32.mrf.mxu0 }
 0x207   : > { %v2670_v62 = vpop.f32.mrf.mxu1  ;;  %v2558_v52 = vadd.f32 %v2557_v32, %v5589_v5 }
 0x208   : > { %v2559_v12 = vpop.f32.mrf.mxu0 }
 0x209   : > { %v2672_v48 = vpop.f32.mrf.mxu1  ;;  %v5623_v3 = vadd.f32 %v2670_v62, %v2558_v52  ;;  %v2560_v30 = vadd.f32 %v2559_v12, %v5592_v25 }
 0x20a   : > { %v5626_v42 = vpop.f32.mrf.mxu0 }
 0x20b   : > { %v5628_v0 = vpop.f32.mrf.mxu1  ;;  %v5630_v47 = vadd.f32 %v2672_v48, %v2560_v30 }
 0x20c   : > { %v5632_v10 = vpop.f32.mrf.mxu0 }
 0x20d   : > { %v5634_v41 = vpop.f32.mrf.mxu1 }
 0x20e   : > { %v2567_v20 = vpop.f32.mrf.mxu0 }
 0x20f   : > { %v2680_v63 = vpop.f32.mrf.mxu1  ;;  %v2568_v21 = vadd.f32 %v2567_v20, %v5589_v5 }
 0x210   : > { %v2569_v27 = vpop.f32.mrf.mxu0 }
 0x211   : > { %v2682_v4 = vpop.f32.mrf.mxu1  ;;  %v5637_v60 = vadd.f32 %v2680_v63, %v2568_v21  ;;  %v2570_v1 = vadd.f32 %v2569_v27, %v5592_v25 }
 0x212   : > { %v5640_v43 = vpop.f32.mrf.mxu0 }
 0x213   : > { %v5642_v26 = vpop.f32.mrf.mxu1  ;;  %v5644_v2 = vadd.f32 %v2682_v4, %v2570_v1 }
 0x214   : > { %v5646_v31 = vpop.f32.mrf.mxu0 }
 0x215   : > { %v5648_v38 = vpop.f32.mrf.mxu1 }
 0x216   : > { %v2577_v54 = vpop.f32.mrf.mxu0 }
 0x217   : > { %v2690_v50 = vpop.f32.mrf.mxu1  ;;  %v2578_v39 = vadd.f32 %v2577_v54, %v5589_v5 }
 0x218   : > { %v2579_v59 = vpop.f32.mrf.mxu0 }
 0x219   : > { %v2692_v55 = vpop.f32.mrf.mxu1  ;;  %v5651_v16 = vadd.f32 %v2690_v50, %v2578_v39  ;;  %v2580_v19 = vadd.f32 %v2579_v59, %v5592_v25 }
 0x21a   : > { %v5654_v49 = vpop.f32.mrf.mxu0 }
 0x21b   : > { %v5656_v18 = vpop.f32.mrf.mxu1  ;;  %v5658_v53 = vadd.f32 %v2692_v55, %v2580_v19 }
 0x21c   : > { %v5660_v14 = vpop.f32.mrf.mxu0 }
 0x21d   : > { %v5662_v17 = vpop.f32.mrf.mxu1 }
 0x21e   : > { %v2587_v35 = vpop.f32.mrf.mxu0 }
 0x21f   : > { %v2700_v51 = vpop.f32.mrf.mxu1  ;;  %v2588_v7 = vadd.f32 %v2587_v35, %v5589_v5 }
 0x220   : > { %v2589_v34 = vpop.f32.mrf.mxu0 }
 0x221   : > { %v2702_v23 = vpop.f32.mrf.mxu1  ;;  %v5665_v6 = vadd.f32 %v2700_v51, %v2588_v7  ;;  %v2590_v36 = vadd.f32 %v2589_v34, %v5592_v25 }
 0x222   : > { %v5668_v33 = vpop.f32.mrf.mxu0 }
 0x223   : > { %v5670_v57 = vpop.f32.mrf.mxu1  ;;  %v5672_v13 = vadd.f32 %v2702_v23, %v2590_v36  ;;  %v2542_v23 = vadd.f32 %v5598_v22, %v5589_v5  ;;  %v2552_v22 = vadd.f32 %v5612_v44, %v5589_v5 }
 0x224   : > { %v5674_v9 = vpop.f32.mrf.mxu0 }
 0x225   : > { %v5676_v45 = vpop.f32.mrf.mxu1 }
 0x226   : > { %v2597_v56 = vpop.f32.mrf.mxu0 }
 0x227   : > { %v2710_v40 = vpop.f32.mrf.mxu1  ;;  %v2598_v32 = vadd.f32 %v2597_v56, %v5589_v5 }
 0x228   : > { %v2599_v62 = vpop.f32.mrf.mxu0 }
 0x229   : > { %v2712_v52 = vpop.f32.mrf.mxu1  ;;  %v5679_v12 = vadd.f32 %v2710_v40, %v2598_v32  ;;  %v2600_v48 = vadd.f32 %v2599_v62, %v5592_v25  ;;  %v2544_v40 = vadd.f32 %v5604_v37, %v5592_v25 }
 0x22a   : > { %v5682_v30 = vpop.f32.mrf.mxu0 }
 0x22b   : > { %v5684_v20 = vpop.f32.mrf.mxu1  ;;  %v5686_v63 = vadd.f32 %v2712_v52, %v2600_v48  ;;  %v2655_v48 = vadd.f32 %v5600_v8, %v2542_v23 }
 0x22c   : > { %v5688_v21 = vpop.f32.mrf.mxu0 }
 0x22d   : > { %v5690_v27 = vpop.f32.mrf.mxu1 }
 0x22e   : > { %v2607_v4 = vpop.f32.mrf.mxu0 }
 0x22f   : > { %v2720_v1 = vpop.f32.mrf.mxu1  ;;  %v2608_v54 = vadd.f32 %v2607_v4, %v5589_v5 }
 0x230   : > { %v2609_v50 = vpop.f32.mrf.mxu0 }
 0x231   : > { %v2722_v39 = vpop.f32.mrf.mxu1  ;;  %v5693_v59 = vadd.f32 %v2720_v1, %v2608_v54  ;;  %v2610_v55 = vadd.f32 %v2609_v50, %v5592_v25  ;;  %v2657_v50 = vadd.f32 %v5606_v29, %v2544_v40 }
 0x232   : > { %v5696_v19 = vpop.f32.mrf.mxu0 }
 0x233   : > { %5950 = vst [vmem:[#allocation22_spill] sm:$0xff] %v5693_v59  ;;  %v5698_v35 = vpop.f32.mrf.mxu1  ;;  %v5700_v51 = vadd.f32 %v2722_v39, %v2610_v55 }
 0x234   : > { %5951 = vst [vmem:[#allocation23_spill] sm:$0xff] %v5698_v35  ;;  %v5702_v7 = vpop.f32.mrf.mxu0 }
 0x235   : > { %5952 = vst [vmem:[#allocation24_spill] sm:$0xff] %v5700_v51  ;;  %v5704_v34 = vpop.f32.mrf.mxu1 }
 0x236   : > { %5953 = vst [vmem:[#allocation25_spill] sm:$0xff] %v5704_v34  ;;  %v2763_v36 = vpop.f32.mrf.mxu0 }
 0x237   : > { %v2876_v56 = vpop.f32.mrf.mxu1  ;;  %v2764_v32 = vadd.f32 %v2763_v36, %v5595_v28  ;;  %v2554_v36 = vadd.f32 %v5618_v11, %v5592_v25 }
 0x238   : > { %v2765_v62 = vpop.f32.mrf.mxu0 }
 0x239   : > { %v2878_v52 = vpop.f32.mrf.mxu1  ;;  %v2766_v4 = vadd.f32 %v2765_v62, %v5602_v15  ;;  %v2877_v39 = vadd.f32 %v2876_v56, %v2764_v32  ;;  %v2665_v56 = vadd.f32 %v5614_v61, %v2552_v22  ;;  %v2667_v11 = vadd.f32 %v5620_v24, %v2554_v36 }
 0x23a   : > { %v2767_v1 = vpop.f32.mrf.mxu0 }
 0x23b   : > { %v2880_v54 = vpop.f32.mrf.mxu1  ;;  %v2768_v55 = vadd.f32 %v2767_v1, %v2655_v48  ;;  %v2879_v37 = vadd.f32 %v2878_v52, %v2766_v4  ;;  %v2957_v15 = vmax.f32 %v2877_v39, 0.0 }
 0x23c   : > { %v2769_v34 = vpop.f32.mrf.mxu0 }
 0x23d   : > { %v2882_v51 = vpop.f32.mrf.mxu1  ;;  %v2881_v35 = vadd.f32 %v2880_v54, %v2768_v55  ;;  %v2770_v28 = vadd.f32 %v2769_v34, %v2657_v50  ;;  %v2958_v44 = vmax.f32 %v2879_v37, 0.0 }
 0x23e   : > { %v2773_v8 = vpop.f32.mrf.mxu0 }
 0x23f   : > { %v2886_v23 = vpop.f32.mrf.mxu1  ;;  %v2961_v62 = vmax.f32 %v2881_v35, 0.0  ;;  %v2883_v59 = vadd.f32 %v2882_v51, %v2770_v28  ;;  %v2774_v29 = vadd.f32 %v2773_v8, %v5609_v58  ;;  %v2562_v35 = vadd.f32 %v5626_v42, %v5589_v5 }
 0x240   : > { %v2775_v40 = vpop.f32.mrf.mxu0 }
 0x241   : > { %v2888_v32 = vpop.f32.mrf.mxu1  ;;  %v3021_v48 = vpack.c.bf16 %v2961_v62, %v2957_v15  ;;  %v2962_v1 = vmax.f32 %v2883_v59, 0.0  ;;  %v2776_v52 = vadd.f32 %v2775_v40, %v5616_v46  ;;  %v2887_v50 = vadd.f32 %v2886_v23, %v2774_v29 }
 0x242   : > { %v2777_v34 = vpop.f32.mrf.mxu0  ;;  %v2564_v59 = vadd.f32 %v5632_v10, %v5592_v25  ;;  %v2675_v23 = vadd.f32 %v5628_v0, %v2562_v35 }
 0x243   : > { %v2890_v4 = vpop.f32.mrf.mxu1  ;;  %v3022_v54 = vpack.c.bf16 %v2962_v1, %v2958_v44  ;;  %v2778_v39 = vadd.f32 %v2777_v34, %v2665_v56  ;;  %v2889_v61 = vadd.f32 %v2888_v32, %v2776_v52  ;;  %v2965_v28 = vmax.f32 %v2887_v50, 0.0 }
 0x244   : > { %v2779_v58 = vpop.f32.mrf.mxu0  ;;  %v2677_v10 = vadd.f32 %v5634_v41, %v2564_v59  ;;  %v2572_v34 = vadd.f32 %v5640_v43, %v5589_v5  ;;  %v2574_v50 = vadd.f32 %v5646_v31, %v5592_v25 }
 0x245   : > { %v2892_v51 = vpop.f32.mrf.mxu1  ;;  %v2891_v55 = vadd.f32 %v2890_v4, %v2778_v39  ;;  %v2780_v22 = vadd.f32 %v2779_v58, %v2667_v11  ;;  %3443 = vmatprep.mubr.bf16.mxu1 %v3022_v54  ;;  %v2966_v62 = vmax.f32 %v2889_v61, 0.0 }
 0x246   : > { %v2783_v46 = vpop.f32.mrf.mxu0  ;;  %3444 = vmatmul.mubr.bf16.vlgmr.msra.gmra.mxu1 %v3021_v48  ;;  %v2685_v61 = vadd.f32 %v5642_v26, %v2572_v34  ;;  %v2687_v31 = vadd.f32 %v5648_v38, %v2574_v50 }
 0x247   : > { %v2896_v37 = vpop.f32.mrf.mxu1  ;;  %v2969_v24 = vmax.f32 %v2891_v55, 0.0  ;;  %v2893_v36 = vadd.f32 %v2892_v51, %v2780_v22  ;;  %v2784_v8 = vadd.f32 %v2783_v46, %v5623_v3 }
 0x248   : > { %v2785_v42 = vpop.f32.mrf.mxu0 }
 0x249   : > { %v2898_v15 = vpop.f32.mrf.mxu1  ;;  %v3025_v29 = vpack.c.bf16 %v2969_v24, %v2965_v28  ;;  %v2970_v56 = vmax.f32 %v2893_v36, 0.0  ;;  %v2786_v40 = vadd.f32 %v2785_v42, %v5630_v47  ;;  %v2897_v48 = vadd.f32 %v2896_v37, %v2784_v8 }
 0x24a   : > { %v2787_v32 = vpop.f32.mrf.mxu0  ;;  %v2582_v42 = vadd.f32 %v5654_v49, %v5589_v5 }
 0x24b   : > { %v2900_v44 = vpop.f32.mrf.mxu1  ;;  %v3026_v1 = vpack.c.bf16 %v2970_v56, %v2966_v62  ;;  %v2788_v52 = vadd.f32 %v2787_v32, %v2675_v23  ;;  %v2899_v0 = vadd.f32 %v2898_v15, %v2786_v40  ;;  %v2973_v35 = vmax.f32 %v2897_v48, 0.0 }
 0x24c   : > { %v2789_v3 = vpop.f32.mrf.mxu0  ;;  %v2584_v56 = vadd.f32 %v5660_v14, %v5592_v25 }
 0x24d   : > { %v2902_v4 = vpop.f32.mrf.mxu1  ;;  %v2901_v11 = vadd.f32 %v2900_v44, %v2788_v52  ;;  %v2790_v54 = vadd.f32 %v2789_v3, %v2677_v10  ;;  %3451 = vmatprep.mubr.bf16.mxu1 %v3026_v1  ;;  %v2974_v22 = vmax.f32 %v2899_v0, 0.0  ;;  %v2695_v1 = vadd.f32 %v5656_v18, %v2582_v42 }
 0x24e   : > { %v2793_v47 = vpop.f32.mrf.mxu0  ;;  %3452 = vmatmul.mubr.bf16.gmra.mxu1 %v3025_v29  ;;  %v2697_v14 = vadd.f32 %v5662_v17, %v2584_v56  ;;  %v2604_v56 = vadd.f32 %v5688_v21, %v5592_v25 }
 0x24f   : > { %v2906_v39 = vpop.f32.mrf.mxu1  ;;  %v2977_v41 = vmax.f32 %v2901_v11, 0.0  ;;  %v2903_v58 = vadd.f32 %v2902_v4, %v2790_v54  ;;  %v2794_v51 = vadd.f32 %v2793_v47, %v5637_v60 }
 0x250   : > { %v2795_v43 = vpop.f32.mrf.mxu0  ;;  %v2717_v21 = vadd.f32 %v5690_v27, %v2604_v56 }
 0x251   : > { %v2908_v55 = vpop.f32.mrf.mxu1  ;;  %v3029_v59 = vpack.c.bf16 %v2977_v41, %v2973_v35  ;;  %v2978_v46 = vmax.f32 %v2903_v58, 0.0  ;;  %v2796_v37 = vadd.f32 %v2795_v43, %v5644_v2  ;;  %v2907_v8 = vadd.f32 %v2906_v39, %v2794_v51 }
 0x252   : > { %v2797_v28 = vpop.f32.mrf.mxu0  ;;  %v2592_v39 = vadd.f32 %v5668_v33, %v5589_v5  ;;  %v2594_v51 = vadd.f32 %v5674_v9, %v5592_v25 }
 0x253   : > { %v2910_v24 = vpop.f32.mrf.mxu1  ;;  %v3030_v36 = vpack.c.bf16 %v2978_v46, %v2974_v22  ;;  %v2798_v23 = vadd.f32 %v2797_v28, %v2685_v61  ;;  %v2909_v26 = vadd.f32 %v2908_v55, %v2796_v37  ;;  %v2981_v32 = vmax.f32 %v2907_v8, 0.0 }
 0x254   : > { %v2799_v60 = vpop.f32.mrf.mxu0  ;;  %v2707_v9 = vadd.f32 %v5676_v45, %v2594_v51  ;;  %v5955_v51 = vld [vmem:[#allocation23_spill] sm:$0xff] }
 0x255   : > { %v2912_v15 = vpop.f32.mrf.mxu1  ;;  %v2911_v62 = vadd.f32 %v2910_v24, %v2798_v23  ;;  %v2800_v29 = vadd.f32 %v2799_v60, %v2687_v31  ;;  %3459 = vmatprep.mubr.bf16.mxu1 %v3030_v36  ;;  %v2982_v52 = vmax.f32 %v2909_v26, 0.0 }
 0x256   : > { %v2803_v2 = vpop.f32.mrf.mxu0  ;;  %3460 = vmatmul.mubr.bf16.gmra.mxu1 %v3029_v59  ;;  %v2705_v59 = vadd.f32 %v5670_v57, %v2592_v39  ;;  %v2614_v39 = vadd.f32 %v5702_v7, %v5592_v25  ;;  %v5957_v25 = vld [vmem:[#allocation25_spill] sm:$0xff] }
 0x257   : > { %v2916_v40 = vpop.f32.mrf.mxu1  ;;  %v2985_v38 = vmax.f32 %v2911_v62, 0.0  ;;  %v2913_v44 = vadd.f32 %v2912_v15, %v2800_v29  ;;  %v2804_v10 = vadd.f32 %v2803_v2, %v5651_v16  ;;  %v2602_v15 = vadd.f32 %v5682_v30, %v5589_v5 }
 0x258   : > { %v2805_v49 = vpop.f32.mrf.mxu0  ;;  %v2727_v7 = vadd.f32 %v5957_v25, %v2614_v39 }
 0x259   : > { %v2918_v48 = vpop.f32.mrf.mxu1  ;;  %v3033_v34 = vpack.c.bf16 %v2985_v38, %v2981_v32  ;;  %v2986_v3 = vmax.f32 %v2913_v44, 0.0  ;;  %v2806_v4 = vadd.f32 %v2805_v49, %v5658_v53  ;;  %v2917_v50 = vadd.f32 %v2916_v40, %v2804_v10 }
 0x25a   : > { %v2807_v0 = vpop.f32.mrf.mxu0  ;;  %v2715_v44 = vadd.f32 %v5684_v20, %v2602_v15 }
 0x25b   : > { %v2920_v11 = vpop.f32.mrf.mxu1  ;;  %v3034_v54 = vpack.c.bf16 %v2986_v3, %v2982_v52  ;;  %v2808_v47 = vadd.f32 %v2807_v0, %v2695_v1  ;;  %v2919_v18 = vadd.f32 %v2918_v48, %v2806_v4  ;;  %v2989_v43 = vmax.f32 %v2917_v50, 0.0 }
 0x25c   : > { %v2809_v16 = vpop.f32.mrf.mxu0 }
 0x25d   : > { %v2922_v35 = vpop.f32.mrf.mxu1  ;;  %v2921_v41 = vadd.f32 %v2920_v11, %v2808_v47  ;;  %v2810_v58 = vadd.f32 %v2809_v16, %v2697_v14  ;;  %3467 = vmatprep.mubr.bf16.mxu1 %v3034_v54  ;;  %v2990_v37 = vmax.f32 %v2919_v18, 0.0  ;;  %v2612_v14 = vadd.f32 %v5696_v19, %v5589_v5 }
 0x25e   : > { %v2813_v53 = vpop.f32.mrf.mxu0  ;;  %3468 = vmatmul.mubr.bf16.gmra.mxu1 %v3033_v34 }
 0x25f   : > { %v2926_v61 = vpop.f32.mrf.mxu1  ;;  %v2993_v17 = vmax.f32 %v2921_v41, 0.0  ;;  %v2923_v55 = vadd.f32 %v2922_v35, %v2810_v58  ;;  %v2814_v22 = vadd.f32 %v2813_v53, %v5665_v6  ;;  %v5954_v41 = vld [vmem:[#allocation22_spill] sm:$0xff]  ;;  %v2725_v53 = vadd.f32 %v5955_v51, %v2612_v14 }
 0x260   : > { %v2815_v33 = vpop.f32.mrf.mxu0 }
 0x261   : > { %v2928_v46 = vpop.f32.mrf.mxu1  ;;  %v3037_v28 = vpack.c.bf16 %v2993_v17, %v2989_v43  ;;  %v2994_v24 = vmax.f32 %v2923_v55, 0.0  ;;  %v2816_v31 = vadd.f32 %v2815_v33, %v5672_v13  ;;  %v2927_v42 = vadd.f32 %v2926_v61, %v2814_v22  ;;  %v5956_v55 = vld [vmem:[#allocation24_spill] sm:$0xff] }
 0x262   : > { %v2817_v36 = vpop.f32.mrf.mxu0 }
 0x263   : > { %v2930_v8 = vpop.f32.mrf.mxu1  ;;  %v3038_v23 = vpack.c.bf16 %v2994_v24, %v2990_v37  ;;  %v2818_v60 = vadd.f32 %v2817_v36, %v2705_v59  ;;  %v2929_v57 = vadd.f32 %v2928_v46, %v2816_v31  ;;  %v2997_v40 = vmax.f32 %v2927_v42, 0.0 }
 0x264   : > { %v2819_v6 = vpop.f32.mrf.mxu0 }
 0x265   : > { %v2932_v26 = vpop.f32.mrf.mxu1  ;;  %v2931_v62 = vadd.f32 %v2930_v8, %v2818_v60  ;;  %v2820_v29 = vadd.f32 %v2819_v6, %v2707_v9  ;;  %3475 = vmatprep.mubr.bf16.mxu1 %v3038_v23  ;;  %v2998_v1 = vmax.f32 %v2929_v57, 0.0 }
 0x266   : > { %v2823_v13 = vpop.f32.mrf.mxu0  ;;  %3476 = vmatmul.mubr.bf16.gmra.mxu1 %v3037_v28 }
 0x267   : > { %v2936_v2 = vpop.f32.mrf.mxu1  ;;  %v3001_v45 = vmax.f32 %v2931_v62, 0.0  ;;  %v2933_v32 = vadd.f32 %v2932_v26, %v2820_v29  ;;  %v2824_v38 = vadd.f32 %v2823_v13, %v5679_v12 }
 0x268   : > { %v2825_v30 = vpop.f32.mrf.mxu0 }
 0x269   : > { %v2938_v10 = vpop.f32.mrf.mxu1  ;;  %v3041_v49 = vpack.c.bf16 %v3001_v45, %v2997_v40  ;;  %v3002_v48 = vmax.f32 %v2933_v32, 0.0  ;;  %v2826_v52 = vadd.f32 %v2825_v30, %v5686_v63  ;;  %v2937_v0 = vadd.f32 %v2936_v2, %v2824_v38 }
 0x26a   : > { %v2827_v34 = vpop.f32.mrf.mxu0 }
 0x26b   : > { %v2940_v3 = vpop.f32.mrf.mxu1  ;;  %v3042_v4 = vpack.c.bf16 %v3002_v48, %v2998_v1  ;;  %v2828_v11 = vadd.f32 %v2827_v34, %v2715_v44  ;;  %v2939_v20 = vadd.f32 %v2938_v10, %v2826_v52  ;;  %v3005_v35 = vmax.f32 %v2937_v0, 0.0 }
 0x26c   : > { %v2829_v12 = vpop.f32.mrf.mxu0 }
 0x26d   : > { %v2942_v54 = vpop.f32.mrf.mxu1  ;;  %v2941_v50 = vadd.f32 %v2940_v3, %v2828_v11  ;;  %v2830_v47 = vadd.f32 %v2829_v12, %v2717_v21  ;;  %3483 = vmatprep.mubr.bf16.mxu1 %v3042_v4  ;;  %v3006_v61 = vmax.f32 %v2939_v20, 0.0  ;;  %v5772_v21 = vld [vmem:[#allocation10] ss:$0 sm:$0xff] }
 0x26e   : > { %v2833_v63 = vpop.f32.mrf.mxu0  ;;  %3484 = vmatmul.mubr.bf16.gmra.mxu1 %v3041_v49 }
 0x26f   : > { %v2946_v16 = vpop.f32.mrf.mxu1  ;;  %v3009_v27 = vmax.f32 %v2941_v50, 0.0  ;;  %v2943_v18 = vadd.f32 %v2942_v54, %v2830_v47  ;;  %v2834_v58 = vadd.f32 %v2833_v63, %v5954_v41 }
 0x270   : > { %v2835_v5 = vpop.f32.mrf.mxu0 }
 0x271   : > { %v2948_v19 = vpop.f32.mrf.mxu1  ;;  %v3045_v43 = vpack.c.bf16 %v3009_v27, %v3005_v35  ;;  %v3010_v17 = vmax.f32 %v2943_v18, 0.0  ;;  %v2836_v22 = vadd.f32 %v2835_v5, %v5956_v55  ;;  %v2947_v37 = vadd.f32 %v2946_v16, %v2834_v58 }
 0x272   : > { %v2837_v59 = vpop.f32.mrf.mxu0 }
 0x273   : > { %v2950_v33 = vpop.f32.mrf.mxu1  ;;  %v3046_v46 = vpack.c.bf16 %v3010_v17, %v3006_v61  ;;  %v2838_v28 = vadd.f32 %v2837_v59, %v2725_v53  ;;  %v2949_v31 = vadd.f32 %v2948_v19, %v2836_v22  ;;  %v3013_v23 = vmax.f32 %v2947_v37, 0.0 }
 0x274   : > { %v2839_v24 = vpop.f32.mrf.mxu0 }
 0x275   : > { %v2951_v36 = vadd.f32 %v2950_v33, %v2838_v28  ;;  %v2840_v8 = vadd.f32 %v2839_v24, %v2727_v7  ;;  %3491 = vmatprep.mubr.bf16.mxu1 %v3046_v46  ;;  %v2952_v9 = vpop.f32.mrf.mxu1  ;;  %v3014_v15 = vmax.f32 %v2949_v31, 0.0 }
 0x276   : > { %3492 = vmatmul.mubr.bf16.gmra.mxu1 %v3045_v43 }
 0x277   : > { %v3017_v42 = vmax.f32 %v2951_v36, 0.0  ;;  %v2953_v60 = vadd.f32 %v2952_v9, %v2840_v8 }
 0x279   : > { %v3049_v6 = vpack.c.bf16 %v3017_v42, %v3013_v23  ;;  %v3018_v26 = vmax.f32 %v2953_v60, 0.0 }
 0x27b   : > { %v3050_v57 = vpack.c.bf16 %v3018_v26, %v3014_v15 }
 0x27d   : > { %3499 = vmatprep.mubr.bf16.mxu1 %v3050_v57 }
 0x27e   : > { %3500 = vmatmul.mubr.bf16.gmra.mxu1 %v3049_v6 }
 0x286   : > { %v3980_v62 = vpop.f32.mrf.mxu0 }
 0x288   : > { %v3981_v29 = vpop.f32.mrf.mxu0 }
 0x289   : > { %v3982_v3 = vadd.f32 %v3981_v29, %v3980_v62 }
 0x28a   : > { %v3983_v56 = vpop.f32.mrf.mxu0 }
 0x28b   : > { %v3349_v14 = vadd.f32 %v3982_v3, %v5772_v21 }
 0x28c   : > { %v3984_v13 = vpop.f32.mrf.mxu0 }
 0x28d   : > { %v3985_v12 = vadd.f32 %v3984_v13, %v3983_v56 }
 0x28e   : > { %v3986_v2 = vpop.f32.mrf.mxu0 }
 0x28f   : > { %v3352_v63 = vadd.f32 %v3985_v12, %v5772_v21 }
 0x290   : > { %v3987_v40 = vpop.f32.mrf.mxu0 }
 0x291   : > { %v3988_v16 = vadd.f32 %v3987_v40, %v3986_v2 }
 0x292   : > { %v3989_v45 = vpop.f32.mrf.mxu0 }
 0x293   : > { %v3357_v51 = vadd.f32 %v3988_v16, %v5772_v21 }
 0x294   : > { %v3990_v32 = vpop.f32.mrf.mxu0 }
 0x295   : > { %v3991_v53 = vadd.f32 %v3990_v32, %v3989_v45 }
 0x296   : > { %v3992_v38 = vpop.f32.mrf.mxu0 }
 0x297   : > { %v3360_v55 = vadd.f32 %v3991_v53, %v5772_v21 }
 0x298   : > { %v3993_v44 = vpop.f32.mrf.mxu0 }
 0x299   : > { %v3994_v22 = vadd.f32 %v3993_v44, %v3992_v38 }
 0x29a   : > { %v3995_v30 = vpop.f32.mrf.mxu0 }
 0x29b   : > { %v3365_v37 = vadd.f32 %v3994_v22, %v5772_v21 }
 0x29c   : > { %v3996_v10 = vpop.f32.mrf.mxu0 }
 0x29d   : > { %v3997_v28 = vadd.f32 %v3996_v10, %v3995_v30 }
 0x29e   : > { %v3998_v1 = vpop.f32.mrf.mxu0 }
 0x29f   : > { %v3368_v23 = vadd.f32 %v3997_v28, %v5772_v21 }
 0x2a0   : > { %v3999_v49 = vpop.f32.mrf.mxu0 }
 0x2a1   : > { %v4000_v42 = vadd.f32 %v3999_v49, %v3998_v1 }
 0x2a2   : > { %v4001_v48 = vpop.f32.mrf.mxu0 }
 0x2a3   : > { %v3373_v62 = vadd.f32 %v4000_v42, %v5772_v21 }
 0x2a4   : > { %v4002_v52 = vpop.f32.mrf.mxu0 }
 0x2a5   : > { %v4003_v29 = vadd.f32 %v4002_v52, %v4001_v48 }
 0x2a6   : > { %v5770_v34 = vpop.f32.mrf.mxu0 }
 0x2a7   : > { %v3376_v32 = vadd.f32 %v4003_v29, %v5772_v21 }
 0x2a8   : > { %v4005_v4 = vpop.f32.mrf.mxu0 }
 0x2a9   : > { %v4006_v38 = vadd.f32 %v4005_v4, %v5770_v34 }
 0x2aa   : > { %v4007_v20 = vpop.f32.mrf.mxu0 }
 0x2ab   : > { %v3381_v48 = vadd.f32 %v4006_v38, %v5772_v21 }
 0x2ac   : > { %v4008_v27 = vpop.f32.mrf.mxu0 }
 0x2ad   : > { %v4009_v52 = vadd.f32 %v4008_v27, %v4007_v20 }
 0x2ae   : > { %v4010_v19 = vpop.f32.mrf.mxu0 }
 0x2b0   : > { %v4011_v33 = vpop.f32.mrf.mxu0 }
 0x2b1   : > { %v4012_v34 = vadd.f32 %v4011_v33, %v4010_v19 }
 0x2b2   : > { %v4013_v31 = vpop.f32.mrf.mxu0 }
 0x2b3   : > { %v3389_v16 = vadd.f32 %v4012_v34, %v5772_v21 }
 0x2b4   : > { %v4014_v15 = vpop.f32.mrf.mxu0 }
 0x2b5   : > { %v4015_v20 = vadd.f32 %v4014_v15, %v4013_v31 }
 0x2b6   : > { %v4016_v13 = vpop.f32.mrf.mxu0 }
 0x2b8   : > { %v4017_v30 = vpop.f32.mrf.mxu0 }
 0x2b9   : > { %v4018_v53 = vadd.f32 %v4017_v30, %v4016_v13 }
 0x306   : > { %v4044_v0 = vpop.f32.mrf.mxu1 }
 0x308   : > { %v4045_v11 = vpop.f32.mrf.mxu1 }
 0x309   : > { %v4046_v54 = vadd.f32 %v4045_v11, %v4044_v0  ;;  %v4019_v0 = vpop.f32.mrf.mxu0 }
 0x30a   : > { %v4047_v50 = vpop.f32.mrf.mxu1 }
 0x30b   : > { %v3446_v47 = vadd.f32 %v4046_v54, %v3349_v14  ;;  %v3384_v54 = vadd.f32 %v4009_v52, %v5772_v21 }
 0x30c   : > { %v4048_v39 = vpop.f32.mrf.mxu1 }
 0x30d   : > { %3508 = vst [vmem:[%s5777_s26] sm:$0xff] %v3446_v47  ;;  %v4049_v35 = vadd.f32 %v4048_v39, %v4047_v50  ;;  %v4020_v50 = vpop.f32.mrf.mxu0 }
 0x30e   : > { %v4050_v18 = vpop.f32.mrf.mxu1  ;;  %v4021_v22 = vadd.f32 %v4020_v50, %v4019_v0 }
 0x30f   : > { %v3449_v41 = vadd.f32 %v4049_v35, %v3352_v63  ;;  %v4022_v27 = vpop.f32.mrf.mxu0 }
 0x310   : > { %v4051_v58 = vpop.f32.mrf.mxu1 }
 0x311   : > { %3509 = vst [vmem:[%s5777_s26 + $0x8] sm:$0xff] %v3449_v41  ;;  %v4052_v5 = vadd.f32 %v4051_v58, %v4050_v18  ;;  %v4023_v19 = vpop.f32.mrf.mxu0 }
 0x312   : > { %v4053_v61 = vpop.f32.mrf.mxu1  ;;  %v4024_v28 = vadd.f32 %v4023_v19, %v4022_v27 }
 0x313   : > { %v3454_v43 = vadd.f32 %v4052_v5, %v3357_v51  ;;  %v3392_v51 = vadd.f32 %v4015_v20, %v5772_v21  ;;  %v4025_v33 = vpop.f32.mrf.mxu0 }
 0x314   : > { %v4054_v17 = vpop.f32.mrf.mxu1 }
 0x315   : > { %3510 = vst [vmem:[%s5777_s26 + $0x10] sm:$0xff] %v3454_v43  ;;  %v4055_v59 = vadd.f32 %v4054_v17, %v4053_v61  ;;  %v4026_v31 = vpop.f32.mrf.mxu0 }
 0x316   : > { %v4056_v25 = vpop.f32.mrf.mxu1  ;;  %v4027_v42 = vadd.f32 %v4026_v31, %v4025_v33 }
 0x317   : > { %v3457_v7 = vadd.f32 %v4055_v59, %v3360_v55  ;;  %v3397_v55 = vadd.f32 %v4018_v53, %v5772_v21 }
 0x318   : > { %v4057_v46 = vpop.f32.mrf.mxu1 }
 0x319   : > { %3511 = vst [vmem:[%s5777_s26 + $0x18] sm:$0xff] %v3457_v7  ;;  %v4058_v24 = vadd.f32 %v4057_v46, %v4056_v25 }
 0x31a   : > { %v4059_v36 = vpop.f32.mrf.mxu1 }
 0x31b   : > { %v3462_v8 = vadd.f32 %v4058_v24, %v3365_v37  ;;  %v3400_v37 = vadd.f32 %v4021_v22, %v5772_v21 }
 0x31c   : > { %v4060_v9 = vpop.f32.mrf.mxu1 }
 0x31d   : > { %3512 = vst [vmem:[%s5777_s26 + $0x20] sm:$0xff] %v3462_v8  ;;  %v4061_v60 = vadd.f32 %v4060_v9, %v4059_v36 }
 0x31e   : > { %v4062_v6 = vpop.f32.mrf.mxu1 }
 0x31f   : > { %v3465_v26 = vadd.f32 %v4061_v60, %v3368_v23  ;;  %v3405_v23 = vadd.f32 %v4024_v28, %v5772_v21 }
 0x320   : > { %v4063_v57 = vpop.f32.mrf.mxu1 }
 0x321   : > { %3513 = vst [vmem:[%s5777_s26 + $0x28] sm:$0xff] %v3465_v26  ;;  %v4064_v56 = vadd.f32 %v4063_v57, %v4062_v6  ;;  %v3408_v57 = vadd.f32 %v4027_v42, %v5772_v21 }
 0x322   : > { %v4065_v2 = vpop.f32.mrf.mxu1 }
 0x323   : > { %v3470_v40 = vadd.f32 %v4064_v56, %v3373_v62 }
 0x324   : > { %v4066_v45 = vpop.f32.mrf.mxu1 }
 0x325   : > { %3514 = vst [vmem:[%s5777_s26 + $0x30] sm:$0xff] %v3470_v40  ;;  %v4067_v44 = vadd.f32 %v4066_v45, %v4065_v2 }
 0x326   : > { %v4068_v10 = vpop.f32.mrf.mxu1 }
 0x327   : > { %v3473_v1 = vadd.f32 %v4067_v44, %v3376_v32 }
 0x328   : > { %v4069_v49 = vpop.f32.mrf.mxu1 }
 0x329   : > { %3515 = vst [vmem:[%s5777_s26 + $0x38] sm:$0xff] %v3473_v1  ;;  %v4070_v3 = vadd.f32 %v4069_v49, %v4068_v10 }
 0x32a   : > { %v4071_v11 = vpop.f32.mrf.mxu1 }
 0x32b   : > { %v3478_v14 = vadd.f32 %v4070_v3, %v3381_v48 }
 0x32c   : > { %v4072_v12 = vpop.f32.mrf.mxu1 }
 0x32d   : > { %3516 = vst [vmem:[%s5777_s26 + $0x40] sm:$0xff] %v3478_v14  ;;  %v4073_v4 = vadd.f32 %v4072_v12, %v4071_v11 }
 0x32e   : > { %v4074_v47 = vpop.f32.mrf.mxu1 }
 0x32f   : > { %v3481_v39 = vadd.f32 %v4073_v4, %v3384_v54 }
 0x330   : > { %v4075_v63 = vpop.f32.mrf.mxu1 }
 0x331   : > { %3517 = vst [vmem:[%s5777_s26 + $0x48] sm:$0xff] %v3481_v39  ;;  %v4076_v35 = vadd.f32 %v4075_v63, %v4074_v47 }
 0x332   : > { %v4077_v18 = vpop.f32.mrf.mxu1 }
 0x333   : > { %v3486_v41 = vadd.f32 %v4076_v35, %v3389_v16 }
 0x334   : > { %v4078_v58 = vpop.f32.mrf.mxu1 }
 0x335   : > { %3518 = vst [vmem:[%s5777_s26 + $0x50] sm:$0xff] %v3486_v41  ;;  %v4079_v5 = vadd.f32 %v4078_v58, %v4077_v18 }
 0x336   : > { %v4080_v61 = vpop.f32.mrf.mxu1 }
 0x337   : > { %v3489_v43 = vadd.f32 %v4079_v5, %v3392_v51 }
 0x338   : > { %v4081_v17 = vpop.f32.mrf.mxu1 }
 0x339   : > { %3519 = vst [vmem:[%s5777_s26 + $0x58] sm:$0xff] %v3489_v43  ;;  %v4082_v59 = vadd.f32 %v4081_v17, %v4080_v61 }
 0x33a   : > { %v4083_v25 = vpop.f32.mrf.mxu1 }
 0x33b   : > { %v3494_v7 = vadd.f32 %v4082_v59, %v3397_v55 }
 0x33c   : > { %v4084_v46 = vpop.f32.mrf.mxu1 }
 0x33d   : > { %3520 = vst [vmem:[%s5777_s26 + $0x60] sm:$0xff] %v3494_v7  ;;  %v4085_v24 = vadd.f32 %v4084_v46, %v4083_v25 }
 0x33e   : > { %v4086_v36 = vpop.f32.mrf.mxu1 }
 0x33f   : > { %v3497_v8 = vadd.f32 %v4085_v24, %v3400_v37 }
 0x340   : > { %v4087_v9 = vpop.f32.mrf.mxu1 }
 0x341   : > { %3521 = vst [vmem:[%s5777_s26 + $0x68] sm:$0xff] %v3497_v8  ;;  %v4088_v60 = vadd.f32 %v4087_v9, %v4086_v36 }
 0x342   : > { %v4089_v15 = vpop.f32.mrf.mxu1 }
 0x343   : > { %v3502_v6 = vadd.f32 %v4088_v60, %v3405_v23 }
 0x344   : > { %v4090_v26 = vpop.f32.mrf.mxu1 }
 0x345   : > { %3522 = vst [vmem:[%s5777_s26 + $0x70] sm:$0xff] %v3502_v6  ;;  %v4091_v62 = vadd.f32 %v4090_v26, %v4089_v15 }
 0x347   : > { %v3505_v29 = vadd.f32 %v4091_v62, %v3408_v57 }
 0x349   : > { %3523 = vst [vmem:[%s5777_s26 + $0x78] sm:$0xff] %v3505_v29 }
 0x34a   : > { %4747 = shalt.err (!%p4744_p1)
}
 0x34b   : > { %s4748_s11 = scalar_lea.hbm %s5814_s10, 2048  ;;  %s4752_s28 = scalar_lea.hbm %s5864_s5, 8192 }
 0x34c   : > { %p4749_p0 = scmp.ne.s32.totalorder %s5814_s10, %s4748_s11  ;;  %p4753_p10 = scmp.lt.s32.totalorder %s5814_s10, %s5864_s5 }
 0x34d   : > { %p4754_p2 = scmp.lt.s32.totalorder %s4752_s28, %s4748_s11 }
 0x34e   : > { %p4750_p8 = pnand %p4749_p0, %p5958_p11 }
 0x34f   : > { %p4755_p5 = por %p4754_p2, %p4753_p10 }
 0x350   : > { %p4751_p12 = pneg %p4750_p8 }
 0x352   : > { %p4756_p4 = pnand %p4755_p5, %p4751_p12 }
 0x354   : > { %4759 = shalt.err (!%p4756_p4)
}
 0x355   : > { %s4819_s13 = smov 128   ;;  %s4820_s8 = smov 8  }
 0x356   : > { %4110 = dma.vmem_to_hbm [thread:$0]  (%p5958_p11), %s5816_s6, 2048, %s5814_s10, %s3525_s17, %s4819_s13, %s4819_s13, %s4820_s8  }
 0x357 PF: > { %p4142_p6 = scmp.ge.s32.totalorder %s4806_s21, 2  ;;  %s3553_s9 = sand.u32 1, %s4794_s18  }
 0x358   : > { %p5959_p7 = scmp.ne.s32.totalorder %s5890_s25, 0  ;;  %s3554_s22 = scalar_lea.sflag [#allocation4], %s3553_s9 }
 0x35a   : > { %p4130_p9 = pnand %p4142_p6, %p5959_p7 }
 0x35c   : > { %p4131_p13 = pneg %p4130_p9 }
 0x35e   : > { %4789 = dma.done.wait (%p4131_p13), %s3554_s22, 2048  }
 0x35f   : > { %4791 = vsyncadd (%p4131_p13), %s3554_s22, 4294965248  ;;  %p20_p3 = scmp.ge.s32.totalorder %s4940_s12, 6   ;;  %s5960_s18 = smov %s4798_s19 }
 0x360   : > { %s5961_s19 = smov %s4802_s20  ;;  %s5962_s20 = smov %s4949_s15 }
 0x361   : > { %s5963_s21 = smov %s4940_s12  ;;  %22 = sbr.rel (!%p20_p3) target bundleno = 7 (0x7), region = 101 }
 0x366   :  { %3559 = vsyncpa [#allocation3], 1 }
 0x367   :  { %3561 = vsyncpa [#allocation3 + $0x1], 1 }
 0x368   :  { %3562 = vsyncpa [#allocation6], 1 }
 0x369   :  { %3563 = vsyncpa [#allocation9], 1 }
 0x36a   :  { %3564 = vsyncpa [#allocation4], 1 }
 0x36b   :  { %3566 = vsyncpa [#allocation4 + $0x1], 1 }

</bundles_post_ra>
